<compile_context>
chip_gen: v6e
topology: v6e:2x2x1
jax: 0.10.0
libtpu: 0.0.40
codegen_flags: <defaults>
</compile_context>

<pallas_src>
import jax
import jax.numpy as jnp
from jax.experimental import pallas as pl
from jax.experimental.pallas import tpu as pltpu

FEATURES = 32
DIMS = [FEATURES, 384, 896, 896, 394, 1]
PAD4 = 512      # 394 -> 512 (128-aligned hidden width)
PAD5 = 128      # 1   -> 128 (lane-dense output; column 0 is the real output)
BN_EPS = 1e-5

# Static layout of the concatenated bias row (all offsets are multiples of 128).
_B_SIZES = [384, 896, 896, PAD4, PAD5]
_B_OFFS = [0, 384, 1280, 2176, 2688]
_B_TOTAL = sum(_B_SIZES)  # 2816


def _mlp_kernel(x_ref, w1_ref, w2_ref, w3_ref, w4_ref, w5_ref, bias_ref, out_ref):
    """Whole forward pass fused in one kernel (everything resident in VMEM).

    Weights are bf16 (MXU operands), biases/activations are fp32.
    """
    h = x_ref[...]                                     # (B, 32) fp32

    def dense(h, w_ref, idx, silu):
        off, size = _B_OFFS[idx], _B_SIZES[idx]
        b = bias_ref[:, off:off + size]                # (1, size) fp32, static 128-aligned slice
        y = jnp.dot(h.astype(jnp.bfloat16), w_ref[...],
                    preferred_element_type=jnp.float32) + b
        if silu:
            y = y * jax.nn.sigmoid(y)                  # SiLU in fp32
        return y

    h = dense(h, w1_ref, 0, True)
    h = dense(h, w2_ref, 1, True)
    h = dense(h, w3_ref, 2, True)
    h = dense(h, w4_ref, 3, True)
    out_ref[...] = dense(h, w5_ref, 4, False)          # (B, 128); only column 0 is meaningful


def _fold_bn(gamma, beta, mean, var):
    """eval-mode BatchNorm1d -> per-feature (scale, bias)."""
    inv_std = 1.0 / jnp.sqrt(var + BN_EPS)
    scale = gamma * inv_std
    bias = beta - mean * scale
    return scale, bias


def _fold_params(params):
    """Fold every BatchNorm affine into the neighboring Linear, pad ragged dims to
    128-multiples, cast weights to bf16, and concatenate biases into one fp32 row."""
    s0, c0 = _fold_bn(params["bn0_gamma"], params["bn0_beta"],
                      params["bn0_mean"], params["bn0_var"])
    ws, bs = [], []
    for i in range(1, 5):
        w = params[f"w{i}"]
        b = params[f"b{i}"]
        if i == 1:
            # (x*s0 + c0) @ W1 + b1  ==  x @ (s0[:,None]*W1) + (c0 @ W1 + b1)
            b = c0 @ w + b
            w = s0[:, None] * w
        s, c = _fold_bn(params[f"bn{i}_gamma"], params[f"bn{i}_beta"],
                        params[f"bn{i}_mean"], params[f"bn{i}_var"])
        w = w * s[None, :]
        b = b * s + c
        ws.append(w)
        bs.append(b)
    ws.append(params["w5"])
    bs.append(params["b5"])

    # Zero-pad the 394-wide layer to 512 and the 1-wide output to 128 (no semantic change:
    # padded columns produce 0, SiLU(0)=0, and the padded w5 rows are zero).
    ws[3] = jnp.pad(ws[3], ((0, 0), (0, PAD4 - DIMS[4])))
    bs[3] = jnp.pad(bs[3], (0, PAD4 - DIMS[4]))
    ws[4] = jnp.pad(ws[4], ((0, PAD4 - DIMS[4]), (0, PAD5 - DIMS[5])))
    bs[4] = jnp.pad(bs[4], (0, PAD5 - DIMS[5]))

    ws = [w.astype(jnp.bfloat16) for w in ws]
    bias_cat = jnp.concatenate(bs)[None, :].astype(jnp.float32)   # (1, 2816)
    return ws, bias_cat


@jax.jit
def mlp_forward(x, params):
    """params: dict with w1..w5, b1..b5, and bn{i}_{gamma,beta,mean,var} for i in 0..4."""
    ws, bias_cat = _fold_params(params)
    vmem = pl.BlockSpec(memory_space=pltpu.MemorySpace.VMEM)
    out = pl.pallas_call(
        _mlp_kernel,
        out_shape=jax.ShapeDtypeStruct((x.shape[0], PAD5), jnp.float32),
        in_specs=[vmem] * 7,
        out_specs=vmem,
        compiler_params=pltpu.CompilerParams(vmem_limit_bytes=32 * 1024 * 1024),
    )(x, *ws, bias_cat)
    return out[:, :DIMS[5]]


def _reference_fp32(x, params):
    """Pure-JAX fp32 reference with the original eval-mode semantics."""
    def bn(h, i):
        s, c = _fold_bn(params[f"bn{i}_gamma"], params[f"bn{i}_beta"],
                        params[f"bn{i}_mean"], params[f"bn{i}_var"])
        return h * s + c

    h = bn(x, 0)
    for i in range(1, 5):
        h = h @ params[f"w{i}"] + params[f"b{i}"]
        h = bn(h, i)
        h = h * jax.nn.sigmoid(h)
    return h @ params["w5"] + params["b5"]


def _reference_matched(x, params):
    """Reference mirroring the kernel's numerics (bf16 matmul operands, fp32 accumulate)."""
    ws, bias_cat = _fold_params(params)
    h = x
    for i, w in enumerate(ws):
        b = bias_cat[:, _B_OFFS[i]:_B_OFFS[i] + _B_SIZES[i]]
        h = (h.astype(jnp.bfloat16).astype(jnp.float32)
             @ w.astype(jnp.float32)) + b
        if i < 4:
            h = h * jax.nn.sigmoid(h)
    return h[:, :DIMS[5]]


def init_params(key):
    params = {}
    keys = jax.random.split(key, 32)
    ki = 0
    # Linear layers: weight (in, out), bias (out,), PyTorch-style uniform init.
    for i in range(1, 6):
        fan_in, fan_out = DIMS[i - 1], DIMS[i]
        bound = 1.0 / (fan_in ** 0.5)
        params[f"w{i}"] = jax.random.uniform(
            keys[ki], (fan_in, fan_out), jnp.float32, -bound, bound); ki += 1
        params[f"b{i}"] = jax.random.uniform(
            keys[ki], (fan_out,), jnp.float32, -bound, bound); ki += 1
    # BatchNorm layers over [FEATURES, 384, 896, 896, 394]; non-trivial running stats.
    bn_dims = [DIMS[0], DIMS[1], DIMS[2], DIMS[3], DIMS[4]]
    for i, c in enumerate(bn_dims):
        params[f"bn{i}_gamma"] = 1.0 + 0.1 * jax.random.normal(keys[ki], (c,), jnp.float32); ki += 1
        params[f"bn{i}_beta"] = 0.05 * jax.random.normal(keys[ki], (c,), jnp.float32); ki += 1
        params[f"bn{i}_mean"] = 0.1 * jax.random.normal(keys[ki], (c,), jnp.float32); ki += 1
        params[f"bn{i}_var"] = jnp.abs(
            1.0 + 0.1 * jax.random.normal(keys[ki], (c,), jnp.float32)); ki += 1
    return params


if __name__ == "__main__":
    key = jax.random.PRNGKey(0)
    k_params, k_x = jax.random.split(key)
    params = init_params(k_params)

    batch = 8
    x = jax.random.normal(k_x, (batch, FEATURES), jnp.float32)

    out = mlp_forward(x, params)
    out = jax.block_until_ready(out)
    assert out.shape == (batch, 1), out.shape

    # Tight check against a reference that uses the same bf16-rounded operands.
    ref_matched = _reference_matched(x, params)
    assert jnp.allclose(out, ref_matched, atol=1e-3, rtol=1e-3), (out, ref_matched)

    # Loose check against the full-fp32 eval-mode reference (bf16 weight rounding only).
    ref_fp32 = _reference_fp32(x, params)
    assert jnp.allclose(out, ref_fp32, atol=1e-1, rtol=1e-1), (out, ref_fp32)

    print("KERNEL_OK")
</pallas_src>

<mosaic_0001>
module attributes {stable_mosaic.version = 11 : i64} {
  func.func @_mlp_kernel(%arg0: memref<8x32xf32, #tpu.memory_space<vmem>>, %arg1: memref<32x384xbf16, #tpu.memory_space<vmem>>, %arg2: memref<384x896xbf16, #tpu.memory_space<vmem>>, %arg3: memref<896x896xbf16, #tpu.memory_space<vmem>>, %arg4: memref<896x512xbf16, #tpu.memory_space<vmem>>, %arg5: memref<512x128xbf16, #tpu.memory_space<vmem>>, %arg6: memref<1x2816xf32, #tpu.memory_space<vmem>>, %arg7: memref<8x128xf32, #tpu.memory_space<vmem>>) attributes {dimension_semantics = [], scalar_prefetch = 0 : i64, scratch_operands = 0 : i64, tpu.core_type = #tpu.core_type<tc>} {
    %c0 = arith.constant 0 : index
    %c0_0 = arith.constant 0 : index
    %0 = vector.load %arg0[%c0, %c0_0] : memref<8x32xf32, #tpu.memory_space<vmem>>, vector<8x32xf32>
    %c0_1 = arith.constant 0 : index
    %c0_2 = arith.constant 0 : index
    %1 = vector.load %arg6[%c0_1, %c0_2] : memref<1x2816xf32, #tpu.memory_space<vmem>>, vector<1x384xf32>
    %2 = arith.truncf %0 : vector<8x32xf32> to vector<8x32xbf16>
    %c0_3 = arith.constant 0 : index
    %c0_4 = arith.constant 0 : index
    %3 = vector.load %arg1[%c0_3, %c0_4] : memref<32x384xbf16, #tpu.memory_space<vmem>>, vector<32x384xbf16>
    %cst = arith.constant dense<0.000000e+00> : vector<8x384xf32>
    %4 = tpu.matmul %2, %3, %cst {dimension_numbers = #tpu.dot_dimension_numbers<[1], [0], [0], [1], [0, 0, 1, 1], [], []>} : vector<8x32xbf16>, vector<32x384xbf16>, vector<8x384xf32> -> vector<8x384xf32>
    %5 = vector.broadcast %1 : vector<1x384xf32> to vector<8x384xf32>
    %6 = arith.addf %4, %5 : vector<8x384xf32>
    %7 = arith.negf %6 : vector<8x384xf32>
    %8 = math.exp %7 : vector<8x384xf32>
    %cst_5 = arith.constant 1.000000e+00 : f32
    %9 = vector.broadcast %cst_5 : f32 to vector<8x384xf32>
    %10 = arith.addf %9, %8 : vector<8x384xf32>
    %11 = arith.divf %9, %10 : vector<8x384xf32>
    %12 = arith.mulf %6, %11 : vector<8x384xf32>
    %c0_6 = arith.constant 0 : index
    %c384 = arith.constant 384 : index
    %13 = vector.load %arg6[%c0_6, %c384] : memref<1x2816xf32, #tpu.memory_space<vmem>>, vector<1x896xf32>
    %14 = arith.truncf %12 : vector<8x384xf32> to vector<8x384xbf16>
    %c0_7 = arith.constant 0 : index
    %c0_8 = arith.constant 0 : index
    %15 = vector.load %arg2[%c0_7, %c0_8] : memref<384x896xbf16, #tpu.memory_space<vmem>>, vector<384x896xbf16>
    %cst_9 = arith.constant dense<0.000000e+00> : vector<8x896xf32>
    %16 = tpu.matmul %14, %15, %cst_9 {dimension_numbers = #tpu.dot_dimension_numbers<[1], [0], [0], [1], [0, 0, 1, 1], [], []>} : vector<8x384xbf16>, vector<384x896xbf16>, vector<8x896xf32> -> vector<8x896xf32>
    %17 = vector.broadcast %13 : vector<1x896xf32> to vector<8x896xf32>
    %18 = arith.addf %16, %17 : vector<8x896xf32>
    %19 = arith.negf %18 : vector<8x896xf32>
    %20 = math.exp %19 : vector<8x896xf32>
    %cst_10 = arith.constant 1.000000e+00 : f32
    %21 = vector.broadcast %cst_10 : f32 to vector<8x896xf32>
    %22 = arith.addf %21, %20 : vector<8x896xf32>
    %23 = arith.divf %21, %22 : vector<8x896xf32>
    %24 = arith.mulf %18, %23 : vector<8x896xf32>
    %c0_11 = arith.constant 0 : index
    %c1280 = arith.constant 1280 : index
    %25 = vector.load %arg6[%c0_11, %c1280] : memref<1x2816xf32, #tpu.memory_space<vmem>>, vector<1x896xf32>
    %26 = arith.truncf %24 : vector<8x896xf32> to vector<8x896xbf16>
    %c0_12 = arith.constant 0 : index
    %c0_13 = arith.constant 0 : index
    %27 = vector.load %arg3[%c0_12, %c0_13] : memref<896x896xbf16, #tpu.memory_space<vmem>>, vector<896x896xbf16>
    %cst_14 = arith.constant dense<0.000000e+00> : vector<8x896xf32>
    %28 = tpu.matmul %26, %27, %cst_14 {dimension_numbers = #tpu.dot_dimension_numbers<[1], [0], [0], [1], [0, 0, 1, 1], [], []>} : vector<8x896xbf16>, vector<896x896xbf16>, vector<8x896xf32> -> vector<8x896xf32>
    %29 = vector.broadcast %25 : vector<1x896xf32> to vector<8x896xf32>
    %30 = arith.addf %28, %29 : vector<8x896xf32>
    %31 = arith.negf %30 : vector<8x896xf32>
    %32 = math.exp %31 : vector<8x896xf32>
    %cst_15 = arith.constant 1.000000e+00 : f32
    %33 = vector.broadcast %cst_15 : f32 to vector<8x896xf32>
    %34 = arith.addf %33, %32 : vector<8x896xf32>
    %35 = arith.divf %33, %34 : vector<8x896xf32>
    %36 = arith.mulf %30, %35 : vector<8x896xf32>
    %c0_16 = arith.constant 0 : index
    %c2176 = arith.constant 2176 : index
    %37 = vector.load %arg6[%c0_16, %c2176] : memref<1x2816xf32, #tpu.memory_space<vmem>>, vector<1x512xf32>
    %38 = arith.truncf %36 : vector<8x896xf32> to vector<8x896xbf16>
    %c0_17 = arith.constant 0 : index
    %c0_18 = arith.constant 0 : index
    %39 = vector.load %arg4[%c0_17, %c0_18] : memref<896x512xbf16, #tpu.memory_space<vmem>>, vector<896x512xbf16>
    %cst_19 = arith.constant dense<0.000000e+00> : vector<8x512xf32>
    %40 = tpu.matmul %38, %39, %cst_19 {dimension_numbers = #tpu.dot_dimension_numbers<[1], [0], [0], [1], [0, 0, 1, 1], [], []>} : vector<8x896xbf16>, vector<896x512xbf16>, vector<8x512xf32> -> vector<8x512xf32>
    %41 = vector.broadcast %37 : vector<1x512xf32> to vector<8x512xf32>
    %42 = arith.addf %40, %41 : vector<8x512xf32>
    %43 = arith.negf %42 : vector<8x512xf32>
    %44 = math.exp %43 : vector<8x512xf32>
    %cst_20 = arith.constant 1.000000e+00 : f32
    %45 = vector.broadcast %cst_20 : f32 to vector<8x512xf32>
    %46 = arith.addf %45, %44 : vector<8x512xf32>
    %47 = arith.divf %45, %46 : vector<8x512xf32>
    %48 = arith.mulf %42, %47 : vector<8x512xf32>
    %c0_21 = arith.constant 0 : index
    %c2688 = arith.constant 2688 : index
    %49 = vector.load %arg6[%c0_21, %c2688] : memref<1x2816xf32, #tpu.memory_space<vmem>>, vector<1x128xf32>
    %50 = arith.truncf %48 : vector<8x512xf32> to vector<8x512xbf16>
    %c0_22 = arith.constant 0 : index
    %c0_23 = arith.constant 0 : index
    %51 = vector.load %arg5[%c0_22, %c0_23] : memref<512x128xbf16, #tpu.memory_space<vmem>>, vector<512x128xbf16>
    %cst_24 = arith.constant dense<0.000000e+00> : vector<8x128xf32>
    %52 = tpu.matmul %50, %51, %cst_24 {dimension_numbers = #tpu.dot_dimension_numbers<[1], [0], [0], [1], [0, 0, 1, 1], [], []>} : vector<8x512xbf16>, vector<512x128xbf16>, vector<8x128xf32> -> vector<8x128xf32>
    %53 = vector.broadcast %49 : vector<1x128xf32> to vector<8x128xf32>
    %54 = arith.addf %52, %53 : vector<8x128xf32>
    %c0_25 = arith.constant 0 : index
    %c0_26 = arith.constant 0 : index
    %55 = vector.load %arg7[%c0_25, %c0_26] : memref<8x128xf32, #tpu.memory_space<vmem>>, vector<8x128xf32>
    tpu.vector_store %arg7[%c0_25, %c0_26], %54 {strides = array<i32>} : memref<8x128xf32, #tpu.memory_space<vmem>>, vector<8x128xf32>,
    return
  }
}

</mosaic_0001>

<bundles_post_ra>
// kernel: custom-call
= control target key start
LH: loop header
LB: loop body
LE: loop exit
PB: predicated region body
PF: predicated region fallthrough
CT: control target
= control target key end

     0   :  { %s6_s0 = inlined_call_operand.vmem [shape: f32[2816], index: 0, kind: output, shape index: {}]  }

// kernel: mlp_forward.1
= control target key start
LH: loop header
LB: loop body
LE: loop exit
PB: predicated region body
PF: predicated region fallthrough
CT: control target
= control target key end

     0   :  { %v9264_v0 = vmov 0.0   ;;  %vm9265_vm0 = vmmov 0   ;;  %v9266_v3 = vmov 0   ;;  %vm86_vm1 = vcmask 261120   ;;  %s12057_s1 = inlined_call_operand.vmem [shape: bf16[32,384], index: 1, kind: input, shape index: {}]   ;;  %s12058_s0 = inlined_call_operand.vmem [shape: f32[8,32], index: 0, kind: input, shape index: {}]   ;;  %s12059_s2 = inlined_call_operand.vmem [shape: bf16[384,896], index: 2, kind: input, shape index: {}]   ;;  %s12060_s6 = inlined_call_operand.vmem [shape: f32[1,2816], index: 6, kind: input, shape index: {}]   ;;  %s12061_s3 = inlined_call_operand.vmem [shape: bf16[896,896], index: 3, kind: input, shape index: {}]   ;;  %s12062_s4 = inlined_call_operand.vmem [shape: bf16[896,512], index: 4, kind: input, shape index: {}]   ;;  %s12063_s5 = inlined_call_operand.vmem [shape: bf16[512,128], index: 5, kind: input, shape index: {}]   ;;  %s12064_s7 = inlined_call_operand.vmem [shape: f32[8,128], index: 7, kind: output, shape index: {}]  }
   0x1   :  { %7952 = vmatprep.subr.bf16.mxu1 %v9264_v0  ;;  %v8003_v1 = vld [vmem:[%s12057_s1 + $0x1c] ss:$12 sps:$4 sm:$0xff]   ;;  %7956 = vmatprep.mubr.msk.bf16.mxu1 %vm9265_vm0, %v9264_v0  ;;  %v8005_v2 = vld [vmem:[%s12057_s1 + $0x20] ss:$12 sps:$4 sm:$0xff]   ;;  %v8006_v4 = vld [vmem:[%s12057_s1 + $0x18] ss:$12 sps:$4 sm:$0xff]   ;;  %v39_v60 = vlaneseq }
   0x2   :  { %122 = vmatprep.mubr.bf16.mxu0 %v9266_v3  ;;  %102 = vmatprep.subr.bf16.mxu0 %v8003_v1  ;;  %v8007_v5 = vld [vmem:[%s12057_s1 + $0x4] ss:$12 sps:$4 sm:$0xff]   ;;  %v8009_v6 = vld [vmem:[%s12057_s1 + $0x8] ss:$12 sps:$4 sm:$0xff]   ;;  %v8010_v7 = vld [vmem:[%s12057_s1] ss:$12 sps:$4 sm:$0xff]  }
   0x3   :  { %7953 = vmatpush3.bf16.msra.mxu1 %v8005_v2  ;;  %103 = vmatpush1.bf16.msra.mxu0 %v8006_v4  ;;  %v27_v8 = vld [vmem:[%s12058_s0] sm:$0xff]  ;;  %v8013_v10 = vld [vmem:[%s12059_s2 + $0x18c] ss:$28 sps:$4 sm:$0xff]   ;;  %v8016_v12 = vld [vmem:[%s12059_s2 + $0x154] ss:$28 sps:$4 sm:$0xff]   ;;  %v9484_v61 = vshrl.u32 %v39_v60, 7 }
   0x4   :  { %7954 = vmatprep.subr.bf16.mxu1 %v9264_v0  ;;  %104 = vmatprep.subr.bf16.mxu0 %v8007_v5  ;;  %v29_v9 = vpack.c.bf16 %v27_v8, %v27_v8  ;;  %v8011_v11 = vld [vmem:[%s12059_s2 + $0x188] ss:$28 sps:$4 sm:$0xff]   ;;  %v8014_v13 = vld [vmem:[%s12059_s2 + $0x150] ss:$28 sps:$4 sm:$0xff]   ;;  %v8019_v14 = vld [vmem:[%s12059_s2 + $0x11c] ss:$28 sps:$4 sm:$0xff]  }
   0x5   :  { %v8017_v15 = vld [vmem:[%s12059_s2 + $0x118] ss:$28 sps:$4 sm:$0xff]   ;;  %v8022_v16 = vld [vmem:[%s12059_s2 + $0xe4] ss:$28 sps:$4 sm:$0xff]   ;;  %v8025_v18 = vld [vmem:[%s12059_s2 + $0xac] ss:$28 sps:$4 sm:$0xff]  }
   0x6   :  { %v8020_v17 = vld [vmem:[%s12059_s2 + $0xe0] ss:$28 sps:$4 sm:$0xff]   ;;  %v8023_v19 = vld [vmem:[%s12059_s2 + $0xa8] ss:$28 sps:$4 sm:$0xff]   ;;  %v8028_v20 = vld [vmem:[%s12059_s2 + $0x74] ss:$28 sps:$4 sm:$0xff]  }
   0x7   :  { %7955 = vmatpush3.bf16.msra.mxu1 %v8009_v6  ;;  %105 = vmatpush1.bf16.msra.mxu0 %v8010_v7  ;;  %v8026_v21 = vld [vmem:[%s12059_s2 + $0x70] ss:$28 sps:$4 sm:$0xff]   ;;  %v8031_v22 = vld [vmem:[%s12059_s2 + $0x3c] ss:$28 sps:$4 sm:$0xff]   ;;  %v8034_v24 = vld [vmem:[%s12059_s2 + $0x4] ss:$28 sps:$4 sm:$0xff]  }
   0x8   :  { %1288 = vmatprep.subr.bf16.mxu0 %v8013_v10  ;;  %v8029_v23 = vld [vmem:[%s12059_s2 + $0x38] ss:$28 sps:$4 sm:$0xff]   ;;  %v8037_v25 = vld [vmem:[%s12059_s2 + $0x50c] ss:$28 sps:$4 sm:$0xff]   ;;  %v8032_v26 = vld [vmem:[%s12059_s2] ss:$28 sps:$4 sm:$0xff]  }
   0x9   :  { %v8035_v27 = vld [vmem:[%s12059_s2 + $0x508] ss:$28 sps:$4 sm:$0xff]   ;;  %1329 = vmatprep.subr.bf16.mxu1 %v8037_v25  ;;  %v8043_v29 = vld [vmem:[%s12059_s2 + $0x4d4] ss:$28 sps:$4 sm:$0xff]   ;;  %v8049_v33 = vld [vmem:[%s12059_s2 + $0x49c] ss:$28 sps:$4 sm:$0xff]  }
   0xa   :  { %7957 = vmatmul.mubr.msk.bf16.vlgmr.msra.gmra.mxu1 %vm86_vm1, %v29_v9  ;;  %6959 = vmatmul.mubr.msk.bf16.vlgmr.msra.gmra.mxu0 %vm86_vm1, %v29_v9  ;;  %v8040_v28 = vld [vmem:[%s12059_s2 + $0x34c] ss:$28 sps:$4 sm:$0xff]   ;;  %v8046_v32 = vld [vmem:[%s12059_s2 + $0x314] ss:$28 sps:$4 sm:$0xff]   ;;  %v8052_v36 = vld [vmem:[%s12059_s2 + $0x2dc] ss:$28 sps:$4 sm:$0xff]  }
   0xb   :  { %1361 = vmatprep.mubr.bf16.mxu1 %v9266_v3  ;;  %1289 = vmatpush1.bf16.msra.mxu0 %v8011_v11  ;;  %v8038_v30 = vld [vmem:[%s12059_s2 + $0x348] ss:$28 sps:$4 sm:$0xff]   ;;  %v8041_v31 = vld [vmem:[%s12059_s2 + $0x4d0] ss:$28 sps:$4 sm:$0xff]   ;;  %v8047_v35 = vld [vmem:[%s12059_s2 + $0x498] ss:$28 sps:$4 sm:$0xff]  }
   0xc   :  { %1290 = vmatprep.subr.bf16.mxu0 %v8016_v12  ;;  %1330 = vmatpush1.bf16.msra.mxu1 %v8035_v27  ;;  %v8044_v34 = vld [vmem:[%s12059_s2 + $0x310] ss:$28 sps:$4 sm:$0xff]   ;;  %v8055_v37 = vld [vmem:[%s12059_s2 + $0x464] ss:$28 sps:$4 sm:$0xff]   ;;  %v8050_v38 = vld [vmem:[%s12059_s2 + $0x2d8] ss:$28 sps:$4 sm:$0xff]  }
   0xd   :  { %1331 = vmatprep.subr.bf16.mxu1 %v8043_v29  ;;  %v8053_v39 = vld [vmem:[%s12059_s2 + $0x460] ss:$28 sps:$4 sm:$0xff]   ;;  %v8061_v41 = vld [vmem:[%s12059_s2 + $0x42c] ss:$28 sps:$4 sm:$0xff]   ;;  %v8067_v45 = vld [vmem:[%s12059_s2 + $0x3f4] ss:$28 sps:$4 sm:$0xff]  }
   0xe   :  { %v8058_v40 = vld [vmem:[%s12059_s2 + $0x2a4] ss:$28 sps:$4 sm:$0xff]   ;;  %v8064_v44 = vld [vmem:[%s12059_s2 + $0x26c] ss:$28 sps:$4 sm:$0xff]   ;;  %v8070_v48 = vld [vmem:[%s12059_s2 + $0x234] ss:$28 sps:$4 sm:$0xff]  }
   0xf   :  { %1291 = vmatpush1.bf16.msra.mxu0 %v8014_v13  ;;  %v8056_v42 = vld [vmem:[%s12059_s2 + $0x2a0] ss:$28 sps:$4 sm:$0xff]   ;;  %v8059_v43 = vld [vmem:[%s12059_s2 + $0x428] ss:$28 sps:$4 sm:$0xff]   ;;  %v8065_v47 = vld [vmem:[%s12059_s2 + $0x3f0] ss:$28 sps:$4 sm:$0xff]  }
  0x10   :  { %1292 = vmatprep.subr.bf16.mxu0 %v8019_v14  ;;  %1332 = vmatpush1.bf16.msra.mxu1 %v8041_v31  ;;  %v8062_v46 = vld [vmem:[%s12059_s2 + $0x268] ss:$28 sps:$4 sm:$0xff]   ;;  %v8073_v49 = vld [vmem:[%s12059_s2 + $0x3bc] ss:$28 sps:$4 sm:$0xff]   ;;  %v8068_v50 = vld [vmem:[%s12059_s2 + $0x230] ss:$28 sps:$4 sm:$0xff]  }
  0x11   :  { %1333 = vmatprep.subr.bf16.mxu1 %v8049_v33  ;;  %v8071_v51 = vld [vmem:[%s12059_s2 + $0x3b8] ss:$28 sps:$4 sm:$0xff]   ;;  %v8079_v53 = vld [vmem:[%s12059_s2 + $0x384] ss:$28 sps:$4 sm:$0xff]   ;;  %v9487_v62 = vsub.s32 2, %v9484_v61  ;;  %v9493_v1 = vsub.s32 0, %v9484_v61 }
  0x12   :  { %v8076_v52 = vld [vmem:[%s12059_s2 + $0x1fc] ss:$28 sps:$4 sm:$0xff]   ;;  %v8082_v56 = vld [vmem:[%s12059_s2 + $0x1c4] ss:$28 sps:$4 sm:$0xff]   ;;  %v8085_v57 = vld [vmem:[%s12059_s2 + $0x194] ss:$28 sps:$4 sm:$0xff]  }
  0x13   :  { %1293 = vmatpush1.bf16.msra.mxu0 %v8017_v15  ;;  %v8074_v54 = vld [vmem:[%s12059_s2 + $0x1f8] ss:$28 sps:$4 sm:$0xff]   ;;  %v8077_v55 = vld [vmem:[%s12059_s2 + $0x380] ss:$28 sps:$4 sm:$0xff]   ;;  %v9496_v2 = vsub.s32 1, %v9484_v61 }
  0x14   :  { %1294 = vmatprep.subr.bf16.mxu0 %v8022_v16  ;;  %1334 = vmatpush1.bf16.msra.mxu1 %v8047_v35  ;;  %v8080_v58 = vld [vmem:[%s12059_s2 + $0x1c0] ss:$28 sps:$4 sm:$0xff]   ;;  %v8091_v59 = vld [vmem:[%s12059_s2 + $0x514] ss:$28 sps:$4 sm:$0xff]   ;;  %v8124_v60 = vld [vmem:[%s12059_s2 + $0xc] ss:$28 sps:$4 sm:$0xff]  }
  0x15   :  { %1335 = vmatprep.subr.bf16.mxu1 %v8055_v37  ;;  %v28_v63 = vld [vmem:[%s12060_s6] sm:$0x7]  ;;  %v8086_v37 = vld [vmem:[%s12059_s2 + $0x158] ss:$28 sps:$4 sm:$0xff]  }
  0x16   :  { %v50_v4 = vrot.slane %v28_v63, %v9487_v62  ;;  %v42_v5 = vrot.slane %v28_v63, %v9493_v1  ;;  %v46_v7 = vrot.slane %v28_v63, %v9496_v2  ;;  %v8127_v63 = vld [vmem:[%s12059_s2 + $0x3c4] ss:$28 sps:$4 sm:$0xff]  }
  0x17   :  { %1295 = vmatpush1.bf16.msra.mxu0 %v8020_v17 }
  0x18   :  { %1296 = vmatprep.subr.bf16.mxu0 %v8025_v18  ;;  %1336 = vmatpush1.bf16.msra.mxu1 %v8053_v39 }
  0x19   :  { %1337 = vmatprep.subr.bf16.mxu1 %v8061_v41  ;;  %v8097_v41 = vld [vmem:[%s12059_s2 + $0x4dc] ss:$28 sps:$4 sm:$0xff]  }
  0x1b   :  { %1297 = vmatpush1.bf16.msra.mxu0 %v8023_v19 }
  0x1c   :  { %1298 = vmatprep.subr.bf16.mxu0 %v8028_v20  ;;  %1338 = vmatpush1.bf16.msra.mxu1 %v8059_v43  ;;  %v8095_v43 = vld [vmem:[%s12059_s2 + $0x4d8] ss:$28 sps:$4 sm:$0xff]  }
  0x1d   :  { %1339 = vmatprep.subr.bf16.mxu1 %v8067_v45  ;;  %v8103_v45 = vld [vmem:[%s12059_s2 + $0x4a4] ss:$28 sps:$4 sm:$0xff]  }
  0x1f   :  { %1299 = vmatpush1.bf16.msra.mxu0 %v8026_v21 }
  0x20   :  { %1300 = vmatprep.subr.bf16.mxu0 %v8031_v22  ;;  %1340 = vmatpush1.bf16.msra.mxu1 %v8065_v47  ;;  %v8101_v47 = vld [vmem:[%s12059_s2 + $0x4a0] ss:$28 sps:$4 sm:$0xff]  }
  0x21   :  { %1341 = vmatprep.subr.bf16.mxu1 %v8073_v49  ;;  %v8109_v49 = vld [vmem:[%s12059_s2 + $0x46c] ss:$28 sps:$4 sm:$0xff]  }
  0x23   :  { %1301 = vmatpush1.bf16.msra.mxu0 %v8029_v23 }
  0x24   :  { %1302 = vmatprep.subr.bf16.mxu0 %v8034_v24  ;;  %1342 = vmatpush1.bf16.msra.mxu1 %v8071_v51  ;;  %v8107_v51 = vld [vmem:[%s12059_s2 + $0x468] ss:$28 sps:$4 sm:$0xff]  }
  0x25   :  { %1343 = vmatprep.subr.bf16.mxu1 %v8079_v53  ;;  %v8115_v53 = vld [vmem:[%s12059_s2 + $0x434] ss:$28 sps:$4 sm:$0xff]  }
  0x27   :  { %1303 = vmatpush1.bf16.msra.mxu0 %v8032_v26 }
  0x28   :  { %1304 = vmatprep.subr.bf16.mxu0 %v8040_v28  ;;  %1344 = vmatpush1.bf16.msra.mxu1 %v8077_v55  ;;  %v8113_v55 = vld [vmem:[%s12059_s2 + $0x430] ss:$28 sps:$4 sm:$0xff]  }
  0x29   :  { %1370 = vmatprep.subr.bf16.mxu1 %v8085_v57  ;;  %v8121_v57 = vld [vmem:[%s12059_s2 + $0x3fc] ss:$28 sps:$4 sm:$0xff]  }
  0x2b   :  { %1305 = vmatpush2.bf16.msra.mxu0 %v8038_v30  ;;  %v8083_v30 = vld [vmem:[%s12059_s2 + $0x190] ss:$28 sps:$4 sm:$0xff]  }
  0x2c   :  { %1306 = vmatprep.subr.bf16.mxu0 %v8046_v32 }
  0x2f   :  { %1307 = vmatpush2.bf16.msra.mxu0 %v8044_v34  ;;  %v8088_v34 = vld [vmem:[%s12059_s2 + $0x15c] ss:$28 sps:$4 sm:$0xff]  }
  0x30   :  { %1308 = vmatprep.subr.bf16.mxu0 %v8052_v36 }
  0x33   :  { %1309 = vmatpush2.bf16.msra.mxu0 %v8050_v38  ;;  %v8089_v38 = vld [vmem:[%s12059_s2 + $0x510] ss:$28 sps:$4 sm:$0xff]  }
  0x34   :  { %1310 = vmatprep.subr.bf16.mxu0 %v8058_v40  ;;  %v8094_v40 = vld [vmem:[%s12059_s2 + $0x124] ss:$28 sps:$4 sm:$0xff]  }
  0x37   :  { %1311 = vmatpush2.bf16.msra.mxu0 %v8056_v42  ;;  %v8092_v42 = vld [vmem:[%s12059_s2 + $0x120] ss:$28 sps:$4 sm:$0xff]  }
  0x38   :  { %1312 = vmatprep.subr.bf16.mxu0 %v8064_v44  ;;  %v8100_v44 = vld [vmem:[%s12059_s2 + $0xec] ss:$28 sps:$4 sm:$0xff]  }
  0x3b   :  { %1313 = vmatpush2.bf16.msra.mxu0 %v8062_v46  ;;  %v8098_v46 = vld [vmem:[%s12059_s2 + $0xe8] ss:$28 sps:$4 sm:$0xff]  }
  0x3c   :  { %1314 = vmatprep.subr.bf16.mxu0 %v8070_v48  ;;  %v8106_v48 = vld [vmem:[%s12059_s2 + $0xb4] ss:$28 sps:$4 sm:$0xff]  }
  0x3f   :  { %1315 = vmatpush2.bf16.msra.mxu0 %v8068_v50  ;;  %v8104_v50 = vld [vmem:[%s12059_s2 + $0xb0] ss:$28 sps:$4 sm:$0xff]  }
  0x40   :  { %1316 = vmatprep.subr.bf16.mxu0 %v8076_v52  ;;  %v8112_v52 = vld [vmem:[%s12059_s2 + $0x7c] ss:$28 sps:$4 sm:$0xff]  }
  0x43   :  { %1317 = vmatpush2.bf16.msra.mxu0 %v8074_v54  ;;  %v8110_v54 = vld [vmem:[%s12059_s2 + $0x78] ss:$28 sps:$4 sm:$0xff]  }
  0x44   :  { %1318 = vmatprep.subr.bf16.mxu0 %v8082_v56  ;;  %v8118_v56 = vld [vmem:[%s12059_s2 + $0x44] ss:$28 sps:$4 sm:$0xff]  }
  0x47   :  { %1319 = vmatpush2.bf16.msra.mxu0 %v8080_v58  ;;  %v8116_v58 = vld [vmem:[%s12059_s2 + $0x40] ss:$28 sps:$4 sm:$0xff]  }
  0x48   :  { %1411 = vmatprep.subr.bf16.mxu0 %v8091_v59  ;;  %v8119_v59 = vld [vmem:[%s12059_s2 + $0x3f8] ss:$28 sps:$4 sm:$0xff]  }
  0xca   :  { %v165_v6 = vpop.f32.mrf.mxu1  ;;  %v124_v9 = vpop.f32.mrf.mxu0 }
  0xcb   :  { %v166_v8 = vadd.f32 %v165_v6, %v50_v4  ;;  %v125_v10 = vadd.f32 %v124_v9, %v42_v5  ;;  %v8122_v4 = vld [vmem:[%s12059_s2 + $0x8] ss:$28 sps:$4 sm:$0xff]   ;;  %v8125_v5 = vld [vmem:[%s12059_s2 + $0x3c0] ss:$28 sps:$4 sm:$0xff]   ;;  %v8130_v6 = vld [vmem:[%s12059_s2 + $0x354] ss:$28 sps:$4 sm:$0xff]  }
  0xcc   :  { %v7958_v11 = vpop.f32.mrf.mxu1  ;;  %v126_v13 = vpop.f32.mrf.mxu0  ;;  %v8131_v9 = vld [vmem:[%s12059_s2 + $0x388] ss:$28 sps:$4 sm:$0xff]  }
  0xcd   :  { %v6963_v12 = vmul.f32 -1.442695, %v166_v8  ;;  %v6961_v14 = vmul.f32 -1.442695, %v125_v10  ;;  %v127_v15 = vadd.f32 %v126_v13, %v46_v7  ;;  %v8133_v7 = vld [vmem:[%s12059_s2 + $0x38c] ss:$28 sps:$4 sm:$0xff]  }
  0xce   :  { %v168_v16 = vpop.f32.mrf.mxu1  ;;  %v128_v17 = vpop.f32.mrf.mxu0  ;;  %v8139_v11 = vld [vmem:[%s12059_s2 + $0x19c] ss:$28 sps:$4 sm:$0xff]  }
  0xcf   :  { %9179 = vpow2.f32 %v6963_v12  ;;  %v6962_v18 = vmul.f32 -1.442695, %v127_v15  ;;  %v8134_v12 = vld [vmem:[%s12059_s2 + $0x318] ss:$28 sps:$4 sm:$0xff]   ;;  %v8140_v16 = vld [vmem:[%s12059_s2 + $0x2e0] ss:$28 sps:$4 sm:$0xff]  }
  0xd0   :  { %9181 = vpow2.f32 %v6961_v14  ;;  %v7959_v19 = vpop.f32.mrf.mxu1  ;;  %v129_v20 = vpop.f32.mrf.mxu0  ;;  %v8137_v13 = vld [vmem:[%s12059_s2 + $0x198] ss:$28 sps:$4 sm:$0xff]   ;;  %v8142_v14 = vld [vmem:[%s12059_s2 + $0x2e4] ss:$28 sps:$4 sm:$0xff]  }
  0xd1   :  { %9183 = vpow2.f32 %v6962_v18  ;;  %v8143_v17 = vld [vmem:[%s12059_s2 + $0x160] ss:$28 sps:$4 sm:$0xff]   ;;  %v8148_v18 = vld [vmem:[%s12059_s2 + $0x2ac] ss:$28 sps:$4 sm:$0xff]  }
  0xd2   :  { %v8151_v19 = vld [vmem:[%s12059_s2 + $0x12c] ss:$28 sps:$4 sm:$0xff]  }
  0xd3   :  { %v8146_v20 = vld [vmem:[%s12059_s2 + $0x2a8] ss:$28 sps:$4 sm:$0xff]  }
  0xdc   :  { %v9180_v21 = vpop.eup %9179 }
  0xdd   :  { %v9182_v22 = vpop.eup %9181  ;;  %v182_v23 = vadd.f32 1.0, %v9180_v21  ;;  %v8149_v21 = vld [vmem:[%s12059_s2 + $0x128] ss:$28 sps:$4 sm:$0xff]  }
  0xde   :  { %v180_v24 = vadd.f32 1.0, %v9182_v22  ;;  %v9184_v25 = vpop.eup %9183  ;;  %v8154_v22 = vld [vmem:[%s12059_s2 + $0x274] ss:$28 sps:$4 sm:$0xff]  }
  0xdf   :  { %9185 = vrcp.f32 %v182_v23  ;;  %v181_v26 = vadd.f32 1.0, %v9184_v25  ;;  %v8157_v23 = vld [vmem:[%s12059_s2 + $0xf4] ss:$28 sps:$4 sm:$0xff]  }
  0xe0   :  { %9187 = vrcp.f32 %v180_v24  ;;  %v8152_v24 = vld [vmem:[%s12059_s2 + $0x270] ss:$28 sps:$4 sm:$0xff]  }
  0xe1   :  { %9189 = vrcp.f32 %v181_v26  ;;  %v8155_v25 = vld [vmem:[%s12059_s2 + $0xf0] ss:$28 sps:$4 sm:$0xff]   ;;  %v8160_v26 = vld [vmem:[%s12059_s2 + $0x23c] ss:$28 sps:$4 sm:$0xff]  }
  0xec   :  { %v9186_v27 = vpop.eup %9185 }
  0xed   :  { %v9188_v28 = vpop.eup %9187  ;;  %v191_v29 = vmul.f32 %v9186_v27, %v166_v8  ;;  %v8128_v8 = vld [vmem:[%s12059_s2 + $0x350] ss:$28 sps:$4 sm:$0xff]   ;;  %v8163_v27 = vld [vmem:[%s12059_s2 + $0xbc] ss:$28 sps:$4 sm:$0xff]  }
  0xee   :  { %v9190_v31 = vpop.eup %9189  ;;  %v189_v33 = vmul.f32 %v9188_v28, %v125_v10  ;;  %v8136_v10 = vld [vmem:[%s12059_s2 + $0x31c] ss:$28 sps:$4 sm:$0xff]  }
  0xef   :  { %v9504_v32 = vpack.c.bf16 %v191_v29, %v191_v29  ;;  %v190_v35 = vmul.f32 %v9190_v31, %v127_v15  ;;  %v8145_v15 = vld [vmem:[%s12059_s2 + $0x164] ss:$28 sps:$4 sm:$0xff]   ;;  %v8158_v28 = vld [vmem:[%s12059_s2 + $0x238] ss:$28 sps:$4 sm:$0xff]  }
  0xf0   :  { %v9518_v39 = vpack.c.bf16 %v189_v33, %v189_v33  ;;  %v8161_v29 = vld [vmem:[%s12059_s2 + $0xb8] ss:$28 sps:$4 sm:$0xff]   ;;  %v8169_v31 = vld [vmem:[%s12059_s2 + $0x84] ss:$28 sps:$4 sm:$0xff]  }
  0xf1   :  { %1362 = vmatmul.mubr.bf16.vlgmr.msra.gmra.mxu1 %v9504_v32  ;;  %v9510_v36 = vpack.c.bf16 %v190_v35, %v190_v35  ;;  %v8164_v33 = vld [vmem:[%s12059_s2 + $0x200] ss:$28 sps:$4 sm:$0xff]   ;;  %v8172_v35 = vld [vmem:[%s12059_s2 + $0x1cc] ss:$28 sps:$4 sm:$0xff]  }
  0xf2   :  { %1371 = vmatpush1.bf16.msra.mxu1 %v8083_v30  ;;  %v8166_v30 = vld [vmem:[%s12059_s2 + $0x204] ss:$28 sps:$4 sm:$0xff]  }
  0xf3   :  { %1372 = vmatprep.subr.bf16.mxu1 %v8088_v34  ;;  %1320 = vmatprep.mubr.bf16.mxu0 %v9510_v36  ;;  %v8167_v34 = vld [vmem:[%s12059_s2 + $0x80] ss:$28 sps:$4 sm:$0xff]  }
  0xf4   :  { %1402 = vmatprep.mubr.bf16.mxu1 %v9510_v36  ;;  %1321 = vmatmul.mubr.bf16.vlgmr.msra.gmra.mxu0 %v9518_v39 }
  0xf5   :  { %1412 = vmatpush1.bf16.msra.mxu0 %v8089_v38  ;;  %1443 = vmatprep.mubr.bf16.mxu0 %v9266_v3  ;;  %v8170_v38 = vld [vmem:[%s12059_s2 + $0x1c8] ss:$28 sps:$4 sm:$0xff]  }
  0xf6   :  { %1373 = vmatpush1.bf16.msra.mxu1 %v8086_v37  ;;  %1413 = vmatprep.subr.bf16.mxu0 %v8097_v41  ;;  %v8175_v37 = vld [vmem:[%s12059_s2 + $0x4c] ss:$28 sps:$4 sm:$0xff]   ;;  %v8178_v41 = vld [vmem:[%s12059_s2 + $0x14] ss:$28 sps:$4 sm:$0xff]  }
  0xf7   :  { %1374 = vmatprep.subr.bf16.mxu1 %v8094_v40  ;;  %v8173_v40 = vld [vmem:[%s12059_s2 + $0x48] ss:$28 sps:$4 sm:$0xff]  }
  0xf9   :  { %1414 = vmatpush1.bf16.msra.mxu0 %v8095_v43  ;;  %v8176_v43 = vld [vmem:[%s12059_s2 + $0x10] ss:$28 sps:$4 sm:$0xff]  }
  0xfa   :  { %1375 = vmatpush1.bf16.msra.mxu1 %v8092_v42  ;;  %1415 = vmatprep.subr.bf16.mxu0 %v8103_v45  ;;  %v8181_v42 = vld [vmem:[%s12059_s2 + $0x51c] ss:$28 sps:$4 sm:$0xff]  }
  0xfb   :  { %1376 = vmatprep.subr.bf16.mxu1 %v8100_v44  ;;  %v8179_v44 = vld [vmem:[%s12059_s2 + $0x518] ss:$28 sps:$4 sm:$0xff]  }
  0xfc   :  { %v8184_v45 = vld [vmem:[%s12059_s2 + $0x35c] ss:$28 sps:$4 sm:$0xff]  }
  0xfd   :  { %1416 = vmatpush1.bf16.msra.mxu0 %v8101_v47  ;;  %v8182_v47 = vld [vmem:[%s12059_s2 + $0x358] ss:$28 sps:$4 sm:$0xff]  }
  0xfe   :  { %1377 = vmatpush1.bf16.msra.mxu1 %v8098_v46  ;;  %1417 = vmatprep.subr.bf16.mxu0 %v8109_v49  ;;  %v8187_v46 = vld [vmem:[%s12059_s2 + $0x4e4] ss:$28 sps:$4 sm:$0xff]  }
  0xff   :  { %1378 = vmatprep.subr.bf16.mxu1 %v8106_v48  ;;  %v8185_v48 = vld [vmem:[%s12059_s2 + $0x4e0] ss:$28 sps:$4 sm:$0xff]  }
 0x100   :  { %v8190_v49 = vld [vmem:[%s12059_s2 + $0x324] ss:$28 sps:$4 sm:$0xff]  }
 0x101   :  { %1418 = vmatpush1.bf16.msra.mxu0 %v8107_v51  ;;  %v8188_v51 = vld [vmem:[%s12059_s2 + $0x320] ss:$28 sps:$4 sm:$0xff]  }
 0x102   :  { %1379 = vmatpush1.bf16.msra.mxu1 %v8104_v50  ;;  %1419 = vmatprep.subr.bf16.mxu0 %v8115_v53  ;;  %v8193_v50 = vld [vmem:[%s12059_s2 + $0x4ac] ss:$28 sps:$4 sm:$0xff]  }
 0x103   :  { %1380 = vmatprep.subr.bf16.mxu1 %v8112_v52  ;;  %v8191_v52 = vld [vmem:[%s12059_s2 + $0x4a8] ss:$28 sps:$4 sm:$0xff]  }
 0x104   :  { %v8196_v53 = vld [vmem:[%s12059_s2 + $0x2ec] ss:$28 sps:$4 sm:$0xff]  }
 0x105   :  { %1420 = vmatpush1.bf16.msra.mxu0 %v8113_v55  ;;  %v8194_v55 = vld [vmem:[%s12059_s2 + $0x2e8] ss:$28 sps:$4 sm:$0xff]  }
 0x106   :  { %1381 = vmatpush1.bf16.msra.mxu1 %v8110_v54  ;;  %1421 = vmatprep.subr.bf16.mxu0 %v8121_v57  ;;  %v8199_v54 = vld [vmem:[%s12059_s2 + $0x474] ss:$28 sps:$4 sm:$0xff]  }
 0x107   :  { %1382 = vmatprep.subr.bf16.mxu1 %v8118_v56  ;;  %v8197_v56 = vld [vmem:[%s12059_s2 + $0x470] ss:$28 sps:$4 sm:$0xff]  }
 0x108   :  { %v8202_v57 = vld [vmem:[%s12059_s2 + $0x2b4] ss:$28 sps:$4 sm:$0xff]  }
 0x109   :  { %1422 = vmatpush1.bf16.msra.mxu0 %v8119_v59  ;;  %v8200_v59 = vld [vmem:[%s12059_s2 + $0x2b0] ss:$28 sps:$4 sm:$0xff]  }
 0x10a   :  { %1383 = vmatpush1.bf16.msra.mxu1 %v8116_v58  ;;  %1423 = vmatprep.subr.bf16.mxu0 %v8127_v63  ;;  %v8205_v58 = vld [vmem:[%s12059_s2 + $0x43c] ss:$28 sps:$4 sm:$0xff]  }
 0x10b   :  { %1384 = vmatprep.subr.bf16.mxu1 %v8124_v60  ;;  %v8203_v60 = vld [vmem:[%s12059_s2 + $0x438] ss:$28 sps:$4 sm:$0xff]  }
 0x10c   :  { %v8208_v63 = vld [vmem:[%s12059_s2 + $0x27c] ss:$28 sps:$4 sm:$0xff]  }
 0x10d   :  { %1424 = vmatpush1.bf16.msra.mxu0 %v8125_v5  ;;  %v8206_v5 = vld [vmem:[%s12059_s2 + $0x278] ss:$28 sps:$4 sm:$0xff]  }
 0x10e   :  { %1385 = vmatpush1.bf16.msra.mxu1 %v8122_v4  ;;  %1425 = vmatprep.subr.bf16.mxu0 %v8133_v7  ;;  %v8211_v4 = vld [vmem:[%s12059_s2 + $0x404] ss:$28 sps:$4 sm:$0xff]  }
 0x10f   :  { %1386 = vmatprep.subr.bf16.mxu1 %v8130_v6  ;;  %v8209_v6 = vld [vmem:[%s12059_s2 + $0x400] ss:$28 sps:$4 sm:$0xff]  }
 0x110   :  { %v8214_v7 = vld [vmem:[%s12059_s2 + $0x244] ss:$28 sps:$4 sm:$0xff]  }
 0x111   :  { %1426 = vmatpush1.bf16.msra.mxu0 %v8131_v9  ;;  %v8212_v9 = vld [vmem:[%s12059_s2 + $0x240] ss:$28 sps:$4 sm:$0xff]  }
 0x112   :  { %1387 = vmatpush2.bf16.msra.mxu1 %v8128_v8  ;;  %1452 = vmatprep.subr.bf16.mxu0 %v8139_v11  ;;  %v8217_v8 = vld [vmem:[%s12059_s2 + $0x3cc] ss:$28 sps:$4 sm:$0xff]  }
 0x113   :  { %1388 = vmatprep.subr.bf16.mxu1 %v8136_v10  ;;  %v8215_v10 = vld [vmem:[%s12059_s2 + $0x3c8] ss:$28 sps:$4 sm:$0xff]  }
 0x114   :  { %1444 = vmatmul.mubr.bf16.vlgmr.msra.gmra.mxu0 %v9504_v32  ;;  %v8220_v11 = vld [vmem:[%s12059_s2 + $0x20c] ss:$28 sps:$4 sm:$0xff]  }
 0x115   :  { %1453 = vmatpush1.bf16.msra.mxu0 %v8137_v13  ;;  %1484 = vmatprep.mubr.bf16.mxu0 %v9510_v36  ;;  %v8218_v13 = vld [vmem:[%s12059_s2 + $0x208] ss:$28 sps:$4 sm:$0xff]  }
 0x116   :  { %1389 = vmatpush2.bf16.msra.mxu1 %v8134_v12  ;;  %1454 = vmatprep.subr.bf16.mxu0 %v8145_v15  ;;  %v8223_v12 = vld [vmem:[%s12059_s2 + $0x394] ss:$28 sps:$4 sm:$0xff]  }
 0x117   :  { %1390 = vmatprep.subr.bf16.mxu1 %v8142_v14  ;;  %v8221_v14 = vld [vmem:[%s12059_s2 + $0x390] ss:$28 sps:$4 sm:$0xff]  }
 0x118   :  { %v8226_v15 = vld [vmem:[%s12059_s2 + $0x1d4] ss:$28 sps:$4 sm:$0xff]  }
 0x119   :  { %1455 = vmatpush1.bf16.msra.mxu0 %v8143_v17  ;;  %v8224_v17 = vld [vmem:[%s12059_s2 + $0x1d0] ss:$28 sps:$4 sm:$0xff]  }
 0x11a   :  { %1391 = vmatpush2.bf16.msra.mxu1 %v8140_v16  ;;  %1456 = vmatprep.subr.bf16.mxu0 %v8151_v19  ;;  %v8227_v16 = vld [vmem:[%s12059_s2 + $0x360] ss:$28 sps:$4 sm:$0xff]   ;;  %v8229_v19 = vld [vmem:[%s12059_s2 + $0x328] ss:$28 sps:$4 sm:$0xff]  }
 0x11b   :  { %1392 = vmatprep.subr.bf16.mxu1 %v8148_v18  ;;  %v8228_v18 = vld [vmem:[%s12059_s2 + $0x1a0] ss:$28 sps:$4 sm:$0xff]  }
 0x11d   :  { %1457 = vmatpush1.bf16.msra.mxu0 %v8149_v21  ;;  %v8231_v21 = vld [vmem:[%s12059_s2 + $0x520] ss:$28 sps:$4 sm:$0xff]  }
 0x11e   :  { %1393 = vmatpush2.bf16.msra.mxu1 %v8146_v20  ;;  %1458 = vmatprep.subr.bf16.mxu0 %v8157_v23  ;;  %v8230_v20 = vld [vmem:[%s12059_s2 + $0x168] ss:$28 sps:$4 sm:$0xff]   ;;  %v8233_v23 = vld [vmem:[%s12059_s2 + $0x130] ss:$28 sps:$4 sm:$0xff]  }
 0x11f   :  { %1394 = vmatprep.subr.bf16.mxu1 %v8154_v22  ;;  %v8232_v22 = vld [vmem:[%s12059_s2 + $0x2f0] ss:$28 sps:$4 sm:$0xff]  }
 0x121   :  { %1459 = vmatpush1.bf16.msra.mxu0 %v8155_v25  ;;  %v8235_v25 = vld [vmem:[%s12059_s2 + $0x2b8] ss:$28 sps:$4 sm:$0xff]  }
 0x122   :  { %1395 = vmatpush2.bf16.msra.mxu1 %v8152_v24  ;;  %1460 = vmatprep.subr.bf16.mxu0 %v8163_v27  ;;  %v8234_v24 = vld [vmem:[%s12059_s2 + $0x4e8] ss:$28 sps:$4 sm:$0xff]   ;;  %v8238_v27 = vld [vmem:[%s12059_s2 + $0x280] ss:$28 sps:$4 sm:$0xff]  }
 0x123   :  { %1396 = vmatprep.subr.bf16.mxu1 %v8160_v26  ;;  %v8237_v26 = vld [vmem:[%s12059_s2 + $0x4b0] ss:$28 sps:$4 sm:$0xff]  }
 0x125   :  { %1461 = vmatpush1.bf16.msra.mxu0 %v8161_v29  ;;  %v8240_v29 = vld [vmem:[%s12059_s2 + $0x478] ss:$28 sps:$4 sm:$0xff]  }
 0x126   :  { %1397 = vmatpush2.bf16.msra.mxu1 %v8158_v28  ;;  %1462 = vmatprep.subr.bf16.mxu0 %v8169_v31  ;;  %v8239_v28 = vld [vmem:[%s12059_s2 + $0xc0] ss:$28 sps:$4 sm:$0xff]   ;;  %v8242_v31 = vld [vmem:[%s12059_s2 + $0x88] ss:$28 sps:$4 sm:$0xff]  }
 0x127   :  { %1398 = vmatprep.subr.bf16.mxu1 %v8166_v30  ;;  %v8241_v30 = vld [vmem:[%s12059_s2 + $0x248] ss:$28 sps:$4 sm:$0xff]  }
 0x129   :  { %1463 = vmatpush1.bf16.msra.mxu0 %v8167_v34  ;;  %v8244_v34 = vld [vmem:[%s12059_s2 + $0x210] ss:$28 sps:$4 sm:$0xff]  }
 0x12a   :  { %1399 = vmatpush2.bf16.msra.mxu1 %v8164_v33  ;;  %1464 = vmatprep.subr.bf16.mxu0 %v8175_v37  ;;  %v8243_v33 = vld [vmem:[%s12059_s2 + $0x440] ss:$28 sps:$4 sm:$0xff]   ;;  %v8246_v37 = vld [vmem:[%s12059_s2 + $0x408] ss:$28 sps:$4 sm:$0xff]  }
 0x12b   :  { %1400 = vmatprep.subr.bf16.mxu1 %v8172_v35  ;;  %v8245_v35 = vld [vmem:[%s12059_s2 + $0x50] ss:$28 sps:$4 sm:$0xff]  }
 0x12d   :  { %1465 = vmatpush1.bf16.msra.mxu0 %v8173_v40  ;;  %v8248_v40 = vld [vmem:[%s12059_s2 + $0x18] ss:$28 sps:$4 sm:$0xff]  }
 0x12e   :  { %1401 = vmatpush2.bf16.msra.mxu1 %v8170_v38  ;;  %1466 = vmatprep.subr.bf16.mxu0 %v8178_v41  ;;  %v8247_v38 = vld [vmem:[%s12059_s2 + $0x1d8] ss:$28 sps:$4 sm:$0xff]   ;;  %v8249_v41 = vld [vmem:[%s12059_s2 + $0x3d0] ss:$28 sps:$4 sm:$0xff]  }
 0x12f   :  { %1493 = vmatprep.subr.bf16.mxu1 %v8181_v42  ;;  %v8253_v42 = vld [vmem:[%s12061_s3 + $0x18c] ss:$28 sps:$4 sm:$0xff]  }
 0x131   :  { %1403 = vmatmul.mubr.bf16.vlgmr.msra.gmra.mxu1 %v9518_v39  ;;  %1467 = vmatpush1.bf16.msra.mxu0 %v8176_v43  ;;  %v8250_v43 = vld [vmem:[%s12059_s2 + $0x398] ss:$28 sps:$4 sm:$0xff]  }
 0x132   :  { %1494 = vmatpush1.bf16.msra.mxu1 %v8179_v44  ;;  %1468 = vmatprep.subr.bf16.mxu0 %v8184_v45  ;;  %v8251_v44 = vld [vmem:[%s12061_s3 + $0x188] ss:$28 sps:$4 sm:$0xff]   ;;  %v8256_v45 = vld [vmem:[%s12061_s3 + $0x154] ss:$28 sps:$4 sm:$0xff]  }
 0x133   :  { %1495 = vmatprep.subr.bf16.mxu1 %v8187_v46  ;;  %1525 = vmatprep.mubr.bf16.mxu1 %v9266_v3  ;;  %v8298_v46 = vld [vmem:[%s12061_s3 + $0x50c] ss:$28 sps:$4 sm:$0xff]  }
 0x135   :  { %1469 = vmatpush2.bf16.msra.mxu0 %v8182_v47  ;;  %v8254_v47 = vld [vmem:[%s12061_s3 + $0x150] ss:$28 sps:$4 sm:$0xff]  }
 0x136   :  { %1496 = vmatpush1.bf16.msra.mxu1 %v8185_v48  ;;  %1470 = vmatprep.subr.bf16.mxu0 %v8190_v49  ;;  %v8296_v48 = vld [vmem:[%s12061_s3 + $0x508] ss:$28 sps:$4 sm:$0xff]   ;;  %v8259_v49 = vld [vmem:[%s12061_s3 + $0x11c] ss:$28 sps:$4 sm:$0xff]  }
 0x137   :  { %1497 = vmatprep.subr.bf16.mxu1 %v8193_v50  ;;  %v8304_v50 = vld [vmem:[%s12061_s3 + $0x4d4] ss:$28 sps:$4 sm:$0xff]  }
 0x139   :  { %1471 = vmatpush2.bf16.msra.mxu0 %v8188_v51  ;;  %v8257_v51 = vld [vmem:[%s12061_s3 + $0x118] ss:$28 sps:$4 sm:$0xff]  }
 0x13a   :  { %1498 = vmatpush1.bf16.msra.mxu1 %v8191_v52  ;;  %1472 = vmatprep.subr.bf16.mxu0 %v8196_v53  ;;  %v8262_v52 = vld [vmem:[%s12061_s3 + $0xe4] ss:$28 sps:$4 sm:$0xff]   ;;  %v8307_v53 = vld [vmem:[%s12061_s3 + $0x49c] ss:$28 sps:$4 sm:$0xff]  }
 0x13b   :  { %1499 = vmatprep.subr.bf16.mxu1 %v8199_v54  ;;  %v8260_v54 = vld [vmem:[%s12061_s3 + $0xe0] ss:$28 sps:$4 sm:$0xff]  }
 0x13d   :  { %1473 = vmatpush2.bf16.msra.mxu0 %v8194_v55  ;;  %v8265_v55 = vld [vmem:[%s12061_s3 + $0xac] ss:$28 sps:$4 sm:$0xff]  }
 0x13e   :  { %1500 = vmatpush1.bf16.msra.mxu1 %v8197_v56  ;;  %1474 = vmatprep.subr.bf16.mxu0 %v8202_v57  ;;  %v8310_v56 = vld [vmem:[%s12061_s3 + $0x464] ss:$28 sps:$4 sm:$0xff]  }
 0x13f   :  { %1501 = vmatprep.subr.bf16.mxu1 %v8205_v58  ;;  %v8263_v57 = vld [vmem:[%s12061_s3 + $0xa8] ss:$28 sps:$4 sm:$0xff]   ;;  %v8268_v58 = vld [vmem:[%s12061_s3 + $0x74] ss:$28 sps:$4 sm:$0xff]  }
 0x141   :  { %1475 = vmatpush2.bf16.msra.mxu0 %v8200_v59  ;;  %v8308_v59 = vld [vmem:[%s12061_s3 + $0x460] ss:$28 sps:$4 sm:$0xff]  }
 0x142   :  { %1502 = vmatpush1.bf16.msra.mxu1 %v8203_v60  ;;  %1476 = vmatprep.subr.bf16.mxu0 %v8208_v63  ;;  %v8313_v60 = vld [vmem:[%s12061_s3 + $0x42c] ss:$28 sps:$4 sm:$0xff]  }
 0x143   :  { %1503 = vmatprep.subr.bf16.mxu1 %v8211_v4  ;;  %v8266_v63 = vld [vmem:[%s12061_s3 + $0x70] ss:$28 sps:$4 sm:$0xff]   ;;  %v8271_v4 = vld [vmem:[%s12061_s3 + $0x3c] ss:$28 sps:$4 sm:$0xff]  }
 0x145   :  { %1477 = vmatpush2.bf16.msra.mxu0 %v8206_v5  ;;  %v8311_v5 = vld [vmem:[%s12061_s3 + $0x428] ss:$28 sps:$4 sm:$0xff]  }
 0x146   :  { %1504 = vmatpush1.bf16.msra.mxu1 %v8209_v6  ;;  %1478 = vmatprep.subr.bf16.mxu0 %v8214_v7  ;;  %v8316_v6 = vld [vmem:[%s12061_s3 + $0x3f4] ss:$28 sps:$4 sm:$0xff]  }
 0x147   :  { %1505 = vmatprep.subr.bf16.mxu1 %v8217_v8  ;;  %v8269_v7 = vld [vmem:[%s12061_s3 + $0x38] ss:$28 sps:$4 sm:$0xff]   ;;  %v8274_v8 = vld [vmem:[%s12061_s3 + $0x4] ss:$28 sps:$4 sm:$0xff]  }
 0x149   :  { %1479 = vmatpush2.bf16.msra.mxu0 %v8212_v9  ;;  %v8314_v9 = vld [vmem:[%s12061_s3 + $0x3f0] ss:$28 sps:$4 sm:$0xff]  }
 0x14a   :  { %1506 = vmatpush1.bf16.msra.mxu1 %v8215_v10  ;;  %1480 = vmatprep.subr.bf16.mxu0 %v8220_v11  ;;  %v8319_v10 = vld [vmem:[%s12061_s3 + $0x3bc] ss:$28 sps:$4 sm:$0xff]  }
 0x14b   :  { %1507 = vmatprep.subr.bf16.mxu1 %v8223_v12  ;;  %v8272_v11 = vld [vmem:[%s12061_s3] ss:$28 sps:$4 sm:$0xff]   ;;  %v8277_v12 = vld [vmem:[%s12061_s3 + $0x34c] ss:$28 sps:$4 sm:$0xff]  }
 0x14d   :  { %1481 = vmatpush2.bf16.msra.mxu0 %v8218_v13  ;;  %v8317_v13 = vld [vmem:[%s12061_s3 + $0x3b8] ss:$28 sps:$4 sm:$0xff]  }
 0x14e   :  { %1508 = vmatpush1.bf16.msra.mxu1 %v8221_v14  ;;  %1482 = vmatprep.subr.bf16.mxu0 %v8226_v15  ;;  %v8322_v14 = vld [vmem:[%s12061_s3 + $0x384] ss:$28 sps:$4 sm:$0xff]  }
 0x14f   :  { %7802 = vmatprep.subr.bf16.mxu1 %v8227_v16  ;;  %v8275_v15 = vld [vmem:[%s12061_s3 + $0x348] ss:$28 sps:$4 sm:$0xff]   ;;  %v8280_v16 = vld [vmem:[%s12061_s3 + $0x314] ss:$28 sps:$4 sm:$0xff]  }
 0x151   :  { %1526 = vmatmul.mubr.bf16.vlgmr.msra.gmra.mxu1 %v9504_v32  ;;  %1483 = vmatpush2.bf16.msra.mxu0 %v8224_v17  ;;  %v8320_v17 = vld [vmem:[%s12061_s3 + $0x380] ss:$28 sps:$4 sm:$0xff]  }
 0x152   :  { %7803 = vmatpush3.bf16.msra.mxu1 %v8228_v18  ;;  %1566 = vmatprep.mubr.bf16.mxu1 %v9510_v36  ;;  %v8236_v36 = vld [vmem:[%s12059_s2 + $0xf8] ss:$28 sps:$4 sm:$0xff]   ;;  %v8325_v18 = vld [vmem:[%s12061_s3 + $0x6cc] ss:$28 sps:$4 sm:$0xff]  }
 0x153   :  { %7804 = vmatprep.subr.bf16.mxu1 %v8229_v19  ;;  %7960 = vmatprep.subr.bf16.mxu0 %v9264_v0  ;;  %v8278_v19 = vld [vmem:[%s12061_s3 + $0x310] ss:$28 sps:$4 sm:$0xff]  }
 0x154   :  { %1485 = vmatmul.mubr.bf16.vlgmr.msra.gmra.mxu0 %v9518_v39 }
 0x155   :  { %7961 = vmatpush3.bf16.msra.mxu0 %v8231_v21  ;;  %7976 = vmatprep.mubr.msk.bf16.mxu0 %vm9265_vm0, %v9264_v0  ;;  %v8283_v21 = vld [vmem:[%s12061_s3 + $0x2dc] ss:$28 sps:$4 sm:$0xff]  }
 0x156   :  { %7805 = vmatpush3.bf16.msra.mxu1 %v8230_v20  ;;  %7962 = vmatprep.subr.bf16.mxu0 %v9264_v0  ;;  %v8323_v20 = vld [vmem:[%s12061_s3 + $0x6c8] ss:$28 sps:$4 sm:$0xff]  }
 0x157   :  { %7806 = vmatprep.subr.bf16.mxu1 %v8232_v22  ;;  %v8331_v22 = vld [vmem:[%s12061_s3 + $0x694] ss:$28 sps:$4 sm:$0xff]  }
 0x159   :  { %7963 = vmatpush3.bf16.msra.mxu0 %v8234_v24  ;;  %v8286_v24 = vld [vmem:[%s12061_s3 + $0x2a4] ss:$28 sps:$4 sm:$0xff]  }
 0x15a   :  { %7807 = vmatpush3.bf16.msra.mxu1 %v8233_v23  ;;  %7964 = vmatprep.subr.bf16.mxu0 %v9264_v0  ;;  %v8281_v23 = vld [vmem:[%s12061_s3 + $0x2d8] ss:$28 sps:$4 sm:$0xff]  }
 0x15b   :  { %7808 = vmatprep.subr.bf16.mxu1 %v8235_v25  ;;  %v8329_v25 = vld [vmem:[%s12061_s3 + $0x690] ss:$28 sps:$4 sm:$0xff]  }
 0x15d   :  { %7965 = vmatpush3.bf16.msra.mxu0 %v8237_v26  ;;  %v8284_v26 = vld [vmem:[%s12061_s3 + $0x2a0] ss:$28 sps:$4 sm:$0xff]  }
 0x15e   :  { %7809 = vmatpush3.bf16.msra.mxu1 %v8236_v36  ;;  %7966 = vmatprep.subr.bf16.mxu0 %v9264_v0  ;;  %v8337_v36 = vld [vmem:[%s12061_s3 + $0x65c] ss:$28 sps:$4 sm:$0xff]  }
 0x15f   :  { %7810 = vmatprep.subr.bf16.mxu1 %v8238_v27  ;;  %v8289_v27 = vld [vmem:[%s12061_s3 + $0x26c] ss:$28 sps:$4 sm:$0xff]  }
 0x161   :  { %7967 = vmatpush3.bf16.msra.mxu0 %v8240_v29  ;;  %v8343_v29 = vld [vmem:[%s12061_s3 + $0x624] ss:$28 sps:$4 sm:$0xff]  }
 0x162   :  { %7811 = vmatpush3.bf16.msra.mxu1 %v8239_v28  ;;  %7968 = vmatprep.subr.bf16.mxu0 %v9264_v0  ;;  %v8335_v28 = vld [vmem:[%s12061_s3 + $0x658] ss:$28 sps:$4 sm:$0xff]  }
 0x163   :  { %7812 = vmatprep.subr.bf16.mxu1 %v8241_v30  ;;  %v8287_v30 = vld [vmem:[%s12061_s3 + $0x268] ss:$28 sps:$4 sm:$0xff]  }
 0x165   :  { %7969 = vmatpush3.bf16.msra.mxu0 %v8243_v33  ;;  %v8292_v33 = vld [vmem:[%s12061_s3 + $0x234] ss:$28 sps:$4 sm:$0xff]  }
 0x166   :  { %7813 = vmatpush3.bf16.msra.mxu1 %v8242_v31  ;;  %7970 = vmatprep.subr.bf16.mxu0 %v9264_v0  ;;  %v8341_v31 = vld [vmem:[%s12061_s3 + $0x620] ss:$28 sps:$4 sm:$0xff]  }
 0x167   :  { %7814 = vmatprep.subr.bf16.mxu1 %v8244_v34  ;;  %v8349_v34 = vld [vmem:[%s12061_s3 + $0x5ec] ss:$28 sps:$4 sm:$0xff]  }
 0x169   :  { %7971 = vmatpush3.bf16.msra.mxu0 %v8246_v37  ;;  %v8347_v37 = vld [vmem:[%s12061_s3 + $0x5e8] ss:$28 sps:$4 sm:$0xff]  }
 0x16a   :  { %7815 = vmatpush3.bf16.msra.mxu1 %v8245_v35  ;;  %7972 = vmatprep.subr.bf16.mxu0 %v9264_v0  ;;  %v8290_v35 = vld [vmem:[%s12061_s3 + $0x230] ss:$28 sps:$4 sm:$0xff]  }
 0x16b   :  { %7816 = vmatprep.subr.bf16.mxu1 %v8247_v38  ;;  %v8295_v38 = vld [vmem:[%s12061_s3 + $0x1fc] ss:$28 sps:$4 sm:$0xff]  }
 0x16d   :  { %7973 = vmatpush3.bf16.msra.mxu0 %v8249_v41  ;;  %v8293_v41 = vld [vmem:[%s12061_s3 + $0x1f8] ss:$28 sps:$4 sm:$0xff]  }
 0x16e   :  { %7817 = vmatpush3.bf16.msra.mxu1 %v8248_v40  ;;  %7974 = vmatprep.subr.bf16.mxu0 %v9264_v0  ;;  %v8355_v40 = vld [vmem:[%s12061_s3 + $0x5b4] ss:$28 sps:$4 sm:$0xff]  }
 0x16f   :  { %4171 = vmatprep.subr.bf16.mxu1 %v8253_v42  ;;  %v8353_v42 = vld [vmem:[%s12061_s3 + $0x5b0] ss:$28 sps:$4 sm:$0xff]  }
 0x171   :  { %1567 = vmatmul.mubr.bf16.vlgmr.msra.gmra.mxu1 %v9518_v39  ;;  %7975 = vmatpush3.bf16.msra.mxu0 %v8250_v43  ;;  %v8302_v39 = vld [vmem:[%s12061_s3 + $0x4d0] ss:$28 sps:$4 sm:$0xff]   ;;  %v8301_v43 = vld [vmem:[%s12061_s3 + $0x1c4] ss:$28 sps:$4 sm:$0xff]  }
 0x172   :  { %4172 = vmatpush1.bf16.msra.mxu1 %v8251_v44  ;;  %4212 = vmatprep.subr.bf16.mxu0 %v8298_v46  ;;  %v8361_v44 = vld [vmem:[%s12061_s3 + $0x57c] ss:$28 sps:$4 sm:$0xff]  }
 0x173   :  { %4173 = vmatprep.subr.bf16.mxu1 %v8256_v45  ;;  %v8299_v45 = vld [vmem:[%s12061_s3 + $0x1c0] ss:$28 sps:$4 sm:$0xff]   ;;  %v8359_v46 = vld [vmem:[%s12061_s3 + $0x578] ss:$28 sps:$4 sm:$0xff]  }
 0x174   :  { %7977 = vmatmul.mubr.bf16.vlgmr.msra.gmra.mxu0 %v9504_v32  ;;  %v8305_v32 = vld [vmem:[%s12061_s3 + $0x498] ss:$28 sps:$4 sm:$0xff]  }
 0x175   :  { %4213 = vmatpush1.bf16.msra.mxu0 %v8296_v48  ;;  %v8367_v48 = vld [vmem:[%s12061_s3 + $0x544] ss:$28 sps:$4 sm:$0xff]  }
 0x176   :  { %4174 = vmatpush1.bf16.msra.mxu1 %v8254_v47  ;;  %4214 = vmatprep.subr.bf16.mxu0 %v8304_v50  ;;  %v8328_v47 = vld [vmem:[%s12061_s3 + $0x88c] ss:$28 sps:$4 sm:$0xff]  }
 0x177   :  { %4175 = vmatprep.subr.bf16.mxu1 %v8259_v49  ;;  %v8365_v49 = vld [vmem:[%s12061_s3 + $0x540] ss:$28 sps:$4 sm:$0xff]  }
 0x178   :  { %v10083_v50 = vld [vmem:[%s12060_s6 + $0x3] sm:$0xff] }
 0x179   :  { %4215 = vmatpush1.bf16.msra.mxu0 %v8302_v39  ;;  %v392_v39 = vrot.slane %v10083_v50, %v9493_v1 }
 0x17a   :  { %4176 = vmatpush1.bf16.msra.mxu1 %v8257_v51  ;;  %4216 = vmatprep.subr.bf16.mxu0 %v8307_v53  ;;  %v396_v53 = vrot.slane %v10083_v50, %v9496_v2 }
 0x17b   :  { %4177 = vmatprep.subr.bf16.mxu1 %v8262_v52 }
 0x17d   :  { %4217 = vmatpush1.bf16.msra.mxu0 %v8305_v32 }
 0x17e   :  { %4178 = vmatpush1.bf16.msra.mxu1 %v8260_v54  ;;  %4218 = vmatprep.subr.bf16.mxu0 %v8310_v56 }
 0x17f   :  { %4179 = vmatprep.subr.bf16.mxu1 %v8265_v55 }
 0x181   :  { %4219 = vmatpush1.bf16.msra.mxu0 %v8308_v59 }
 0x182   :  { %4180 = vmatpush1.bf16.msra.mxu1 %v8263_v57  ;;  %4220 = vmatprep.subr.bf16.mxu0 %v8313_v60 }
 0x183   :  { %4181 = vmatprep.subr.bf16.mxu1 %v8268_v58 }
 0x185   :  { %4221 = vmatpush1.bf16.msra.mxu0 %v8311_v5 }
 0x186   :  { %4182 = vmatpush1.bf16.msra.mxu1 %v8266_v63  ;;  %4222 = vmatprep.subr.bf16.mxu0 %v8316_v6 }
 0x187   :  { %4183 = vmatprep.subr.bf16.mxu1 %v8271_v4 }
 0x189   :  { %4223 = vmatpush1.bf16.msra.mxu0 %v8314_v9 }
 0x18a   :  { %4184 = vmatpush1.bf16.msra.mxu1 %v8269_v7  ;;  %4224 = vmatprep.subr.bf16.mxu0 %v8319_v10  ;;  %v8397_v7 = vld [vmem:[%s12061_s3 + $0xc0c] ss:$28 sps:$4 sm:$0xff]  }
 0x18b   :  { %4185 = vmatprep.subr.bf16.mxu1 %v8274_v8 }
 0x18d   :  { %4225 = vmatpush1.bf16.msra.mxu0 %v8317_v13 }
 0x18e   :  { %4186 = vmatpush1.bf16.msra.mxu1 %v8272_v11  ;;  %4226 = vmatprep.subr.bf16.mxu0 %v8322_v14 }
 0x18f   :  { %4187 = vmatprep.subr.bf16.mxu1 %v8277_v12 }
 0x191   :  { %4227 = vmatpush1.bf16.msra.mxu0 %v8320_v17 }
 0x192   :  { %4188 = vmatpush2.bf16.msra.mxu1 %v8275_v15  ;;  %4228 = vmatprep.subr.bf16.mxu0 %v8325_v18 }
 0x193   :  { %4189 = vmatprep.subr.bf16.mxu1 %v8280_v16 }
 0x195   :  { %4229 = vmatpush2.bf16.msra.mxu0 %v8323_v20 }
 0x196   :  { %4190 = vmatpush2.bf16.msra.mxu1 %v8278_v19  ;;  %4230 = vmatprep.subr.bf16.mxu0 %v8331_v22 }
 0x197   :  { %4191 = vmatprep.subr.bf16.mxu1 %v8283_v21  ;;  %v8326_v21 = vld [vmem:[%s12061_s3 + $0x888] ss:$28 sps:$4 sm:$0xff]  }
 0x199   :  { %4231 = vmatpush2.bf16.msra.mxu0 %v8329_v25  ;;  %v8340_v25 = vld [vmem:[%s12061_s3 + $0x81c] ss:$28 sps:$4 sm:$0xff]  }
 0x19a   :  { %4192 = vmatpush2.bf16.msra.mxu1 %v8281_v23  ;;  %4232 = vmatprep.subr.bf16.mxu0 %v8337_v36  ;;  %v8334_v23 = vld [vmem:[%s12061_s3 + $0x854] ss:$28 sps:$4 sm:$0xff]  }
 0x19b   :  { %4193 = vmatprep.subr.bf16.mxu1 %v8286_v24  ;;  %v8332_v24 = vld [vmem:[%s12061_s3 + $0x850] ss:$28 sps:$4 sm:$0xff]   ;;  %v8338_v36 = vld [vmem:[%s12061_s3 + $0x818] ss:$28 sps:$4 sm:$0xff]  }
 0x19d   :  { %4233 = vmatpush2.bf16.msra.mxu0 %v8335_v28  ;;  %v8352_v28 = vld [vmem:[%s12061_s3 + $0x7ac] ss:$28 sps:$4 sm:$0xff]  }
 0x19e   :  { %4194 = vmatpush2.bf16.msra.mxu1 %v8284_v26  ;;  %4234 = vmatprep.subr.bf16.mxu0 %v8343_v29  ;;  %v8346_v26 = vld [vmem:[%s12061_s3 + $0x7e4] ss:$28 sps:$4 sm:$0xff]   ;;  %v10123_v29 = vsub.s32 3, %v9484_v61 }
 0x19f   :  { %4195 = vmatprep.subr.bf16.mxu1 %v8289_v27  ;;  %v8344_v27 = vld [vmem:[%s12061_s3 + $0x7e0] ss:$28 sps:$4 sm:$0xff]  }
 0x1a1   :  { %4235 = vmatpush2.bf16.msra.mxu0 %v8341_v31  ;;  %v8350_v31 = vld [vmem:[%s12061_s3 + $0x7a8] ss:$28 sps:$4 sm:$0xff]  }
 0x1a2   :  { %4196 = vmatpush2.bf16.msra.mxu1 %v8287_v30  ;;  %4236 = vmatprep.subr.bf16.mxu0 %v8349_v34  ;;  %v400_v30 = vrot.slane %v10083_v50, %v9487_v62  ;;  %v404_v34 = vrot.slane %v10083_v50, %v10123_v29 }
 0x1a3   :  { %4197 = vmatprep.subr.bf16.mxu1 %v8292_v33  ;;  %v8358_v33 = vld [vmem:[%s12061_s3 + $0x774] ss:$28 sps:$4 sm:$0xff]  }
 0x1a5   :  { %4237 = vmatpush2.bf16.msra.mxu0 %v8347_v37 }
 0x1a6   :  { %4198 = vmatpush2.bf16.msra.mxu1 %v8290_v35  ;;  %4238 = vmatprep.subr.bf16.mxu0 %v8355_v40 }
 0x1a7   :  { %4199 = vmatprep.subr.bf16.mxu1 %v8295_v38  ;;  %v8356_v38 = vld [vmem:[%s12061_s3 + $0x770] ss:$28 sps:$4 sm:$0xff]  }
 0x1a9   :  { %4239 = vmatpush2.bf16.msra.mxu0 %v8353_v42 }
 0x1aa   :  { %4200 = vmatpush2.bf16.msra.mxu1 %v8293_v41  ;;  %4240 = vmatprep.subr.bf16.mxu0 %v8361_v44  ;;  %v8364_v41 = vld [vmem:[%s12061_s3 + $0x73c] ss:$28 sps:$4 sm:$0xff]  }
 0x1ab   :  { %4201 = vmatprep.subr.bf16.mxu1 %v8301_v43 }
 0x1ad   :  { %4241 = vmatpush2.bf16.msra.mxu0 %v8359_v46 }
 0x1ae   :  { %4202 = vmatpush2.bf16.msra.mxu1 %v8299_v45  ;;  %4242 = vmatprep.subr.bf16.mxu0 %v8367_v48 }
 0x1af   :  { %4253 = vmatprep.subr.bf16.mxu1 %v8328_v47  ;;  %v8362_v47 = vld [vmem:[%s12061_s3 + $0x738] ss:$28 sps:$4 sm:$0xff]  }
 0x1b1   :  { %v1363_v51 = vpop.f32.mrf.mxu1  ;;  %4243 = vmatpush2.bf16.msra.mxu0 %v8365_v49  ;;  %v8370_v49 = vld [vmem:[%s12061_s3 + $0x704] ss:$28 sps:$4 sm:$0xff]  }
 0x1b2   :  { %4294 = vmatprep.subr.bf16.mxu0 %v8397_v7  ;;  %v8383_v7 = vld [vmem:[%s12061_s3 + $0x968] ss:$28 sps:$4 sm:$0xff]  }
 0x1b3   :  { %v1365_v52 = vpop.f32.mrf.mxu1 }
 0x1b4   :  { %v1322_v54 = vpop.f32.mrf.mxu0 }
 0x1b5   :  { %v1367_v32 = vpop.f32.mrf.mxu1  ;;  %v1323_v55 = vadd.f32 %v1322_v54, %v392_v39  ;;  %v8368_v39 = vld [vmem:[%s12061_s3 + $0x700] ss:$28 sps:$4 sm:$0xff]   ;;  %v8376_v54 = vld [vmem:[%s12061_s3 + $0xa14] ss:$28 sps:$4 sm:$0xff]  }
 0x1b6   :  { %v1324_v56 = vpop.f32.mrf.mxu0  ;;  %v8374_v32 = vld [vmem:[%s12061_s3 + $0xa10] ss:$28 sps:$4 sm:$0xff]  }
 0x1b7   :  { %v1368_v57 = vpop.f32.mrf.mxu1  ;;  %v1364_v58 = vadd.f32 %v1363_v51, %v1323_v55  ;;  %v1325_v59 = vadd.f32 %v1324_v56, %v396_v53  ;;  %v8371_v53 = vld [vmem:[%s12061_s3 + $0xa48] ss:$28 sps:$4 sm:$0xff]   ;;  %v8379_v55 = vld [vmem:[%s12061_s3 + $0x9dc] ss:$28 sps:$4 sm:$0xff]  }
 0x1b8   :  { %v1326_v60 = vpop.f32.mrf.mxu0 }
 0x1b9   :  { %v7132_v63 = vmul.f32 -1.442695, %v1364_v58  ;;  %v1366_v4 = vadd.f32 %v1365_v52, %v1325_v59  ;;  %v8373_v52 = vld [vmem:[%s12061_s3 + $0xa4c] ss:$28 sps:$4 sm:$0xff]   ;;  %v8382_v60 = vld [vmem:[%s12061_s3 + $0x9a4] ss:$28 sps:$4 sm:$0xff]  }
 0x1ba   :  { %v1327_v5 = vpop.f32.mrf.mxu0 }
 0x1bb   :  { %9191 = vpow2.f32 %v7132_v63  ;;  %v7133_v6 = vmul.f32 -1.442695, %v1366_v4  ;;  %v8385_v5 = vld [vmem:[%s12061_s3 + $0x96c] ss:$28 sps:$4 sm:$0xff]  }
 0x1bd   :  { %9193 = vpow2.f32 %v7133_v6  ;;  %v407_v6 = vsub.s32 4, %v9484_v61 }
 0x1c8   :  { %v9192_v8 = vpop.eup %9191 }
 0x1c9   :  { %v1635_v9 = vadd.f32 1.0, %v9192_v8  ;;  %v8388_v8 = vld [vmem:[%s12061_s3 + $0x934] ss:$28 sps:$4 sm:$0xff]  }
 0x1ca   :  { %v9194_v10 = vpop.eup %9193 }
 0x1cb   :  { %9195 = vrcp.f32 %v1635_v9  ;;  %v1636_v11 = vadd.f32 1.0, %v9194_v10  ;;  %v411_v9 = vsub.s32 5, %v9484_v61 }
 0x1cd   :  { %9197 = vrcp.f32 %v1636_v11  ;;  %v408_v11 = vrot.slane %v10083_v50, %v407_v6 }
 0x1d4   :  { %v1445_v12 = vpop.f32.mrf.mxu0 }
 0x1d6   :  { %v1447_v13 = vpop.f32.mrf.mxu0 }
 0x1d8   :  { %v9196_v14 = vpop.eup %9195  ;;  %v1449_v15 = vpop.f32.mrf.mxu0 }
 0x1d9   :  { %v1656_v17 = vmul.f32 %v9196_v14, %v1364_v58  ;;  %v8377_v58 = vld [vmem:[%s12061_s3 + $0x9d8] ss:$28 sps:$4 sm:$0xff]   ;;  %v412_v15 = vrot.slane %v10083_v50, %v411_v9 }
 0x1da   :  { %v9198_v16 = vpop.eup %9197  ;;  %v1450_v18 = vpop.f32.mrf.mxu0  ;;  %v8391_v14 = vld [vmem:[%s12061_s3 + $0x8fc] ss:$28 sps:$4 sm:$0xff]  }
 0x1db   :  { %v1657_v19 = vmul.f32 %v9198_v16, %v1366_v4  ;;  %v10097_v22 = vpack.c.bf16 %v1656_v17, %v1656_v17  ;;  %v8380_v4 = vld [vmem:[%s12061_s3 + $0x9a0] ss:$28 sps:$4 sm:$0xff]  }
 0x1dd   :  { %v10092_v20 = vpack.c.bf16 %v1657_v19, %v1657_v19 }
 0x1df   :  { %4203 = vmatprep.mubr.bf16.mxu1 %v10092_v20 }
 0x1e0   :  { %4204 = vmatmul.mubr.bf16.vlgmr.msra.gmra.mxu1 %v10097_v22 }
 0x1e1   :  { %4254 = vmatpush1.bf16.msra.mxu1 %v8326_v21  ;;  %v8389_v21 = vld [vmem:[%s12061_s3 + $0x8f8] ss:$28 sps:$4 sm:$0xff]  }
 0x1e2   :  { %4255 = vmatprep.subr.bf16.mxu1 %v8334_v23 }
 0x1e5   :  { %4256 = vmatpush1.bf16.msra.mxu1 %v8332_v24 }
 0x1e6   :  { %4257 = vmatprep.subr.bf16.mxu1 %v8340_v25 }
 0x1e9   :  { %4258 = vmatpush1.bf16.msra.mxu1 %v8338_v36 }
 0x1ea   :  { %4259 = vmatprep.subr.bf16.mxu1 %v8346_v26  ;;  %v8394_v26 = vld [vmem:[%s12061_s3 + $0x8c4] ss:$28 sps:$4 sm:$0xff]  }
 0x1ed   :  { %4260 = vmatpush1.bf16.msra.mxu1 %v8344_v27 }
 0x1ee   :  { %4261 = vmatprep.subr.bf16.mxu1 %v8352_v28 }
 0x1f1   :  { %v1404_v35 = vpop.f32.mrf.mxu1  ;;  %4262 = vmatpush1.bf16.msra.mxu1 %v8350_v31 }
 0x1f2   :  { %v1405_v37 = vadd.f32 %v1404_v35, %v400_v30  ;;  %4263 = vmatprep.subr.bf16.mxu1 %v8358_v33 }
 0x1f3   :  { %v1406_v40 = vpop.f32.mrf.mxu1 }
 0x1f4   :  { %v1446_v42 = vadd.f32 %v1445_v12, %v1405_v37  ;;  %v1407_v43 = vadd.f32 %v1406_v40, %v404_v34  ;;  %v8386_v12 = vld [vmem:[%s12061_s3 + $0x930] ss:$28 sps:$4 sm:$0xff]   ;;  %v8392_v37 = vld [vmem:[%s12061_s3 + $0x8c0] ss:$28 sps:$4 sm:$0xff]  }
 0x1f5   :  { %v1408_v44 = vpop.f32.mrf.mxu1  ;;  %4264 = vmatpush1.bf16.msra.mxu1 %v8356_v38  ;;  %v8395_v38 = vld [vmem:[%s12061_s3 + $0xc08] ss:$28 sps:$4 sm:$0xff]  }
 0x1f6   :  { %v7134_v45 = vmul.f32 -1.442695, %v1446_v42  ;;  %v1448_v46 = vadd.f32 %v1447_v13, %v1407_v43  ;;  %4265 = vmatprep.subr.bf16.mxu1 %v8364_v41  ;;  %v8403_v43 = vld [vmem:[%s12061_s3 + $0xbd4] ss:$28 sps:$4 sm:$0xff]  }
 0x1f7   :  { %v1409_v48 = vpop.f32.mrf.mxu1 }
 0x1f8   :  { %9199 = vpow2.f32 %v7134_v45  ;;  %v7135_v51 = vmul.f32 -1.442695, %v1448_v46  ;;  %v8401_v45 = vld [vmem:[%s12061_s3 + $0xbd0] ss:$28 sps:$4 sm:$0xff]   ;;  %v8415_v48 = vld [vmem:[%s12061_s3 + $0xb64] ss:$28 sps:$4 sm:$0xff]  }
 0x1f9   :  { %4266 = vmatpush1.bf16.msra.mxu1 %v8362_v47  ;;  %v8407_v47 = vld [vmem:[%s12061_s3 + $0xb98] ss:$28 sps:$4 sm:$0xff]  }
 0x1fa   :  { %9201 = vpow2.f32 %v7135_v51  ;;  %4267 = vmatprep.subr.bf16.mxu1 %v8370_v49  ;;  %v8413_v49 = vld [vmem:[%s12061_s3 + $0xb60] ss:$28 sps:$4 sm:$0xff]   ;;  %v8421_v51 = vld [vmem:[%s12061_s3 + $0xb2c] ss:$28 sps:$4 sm:$0xff]  }
 0x1fd   :  { %4268 = vmatpush1.bf16.msra.mxu1 %v8368_v39 }
 0x1fe   :  { %4269 = vmatprep.subr.bf16.mxu1 %v8373_v52 }
 0x201   :  { %4270 = vmatpush2.bf16.msra.mxu1 %v8371_v53  ;;  %v8419_v53 = vld [vmem:[%s12061_s3 + $0xb28] ss:$28 sps:$4 sm:$0xff]  }
 0x202   :  { %4271 = vmatprep.subr.bf16.mxu1 %v8376_v54 }
 0x205   :  { %v9200_v56 = vpop.eup %9199  ;;  %4272 = vmatpush2.bf16.msra.mxu1 %v8374_v32  ;;  %v8427_v32 = vld [vmem:[%s12061_s3 + $0xaf4] ss:$28 sps:$4 sm:$0xff]  }
 0x206   :  { %v1637_v57 = vadd.f32 1.0, %v9200_v56  ;;  %4273 = vmatprep.subr.bf16.mxu1 %v8379_v55  ;;  %v415_v56 = vsub.s32 6, %v9484_v61 }
 0x207   :  { %v9202_v59 = vpop.eup %9201 }
 0x208   :  { %9203 = vrcp.f32 %v1637_v57  ;;  %v1638_v63 = vadd.f32 1.0, %v9202_v59  ;;  %v8425_v57 = vld [vmem:[%s12061_s3 + $0xaf0] ss:$28 sps:$4 sm:$0xff]  }
 0x209   :  { %4274 = vmatpush2.bf16.msra.mxu1 %v8377_v58  ;;  %v8433_v58 = vld [vmem:[%s12061_s3 + $0xabc] ss:$28 sps:$4 sm:$0xff]  }
 0x20a   :  { %9205 = vrcp.f32 %v1638_v63  ;;  %4275 = vmatprep.subr.bf16.mxu1 %v8382_v60  ;;  %v416_v60 = vrot.slane %v10083_v50, %v415_v56  ;;  %v8431_v63 = vld [vmem:[%s12061_s3 + $0xab8] ss:$28 sps:$4 sm:$0xff]   ;;  %v8437_v50 = vld [vmem:[%s12061_s3 + $0xa80] ss:$28 sps:$4 sm:$0xff]  }
 0x20d   :  { %4276 = vmatpush2.bf16.msra.mxu1 %v8380_v4 }
 0x20e   :  { %4277 = vmatprep.subr.bf16.mxu1 %v8385_v5  ;;  %v8439_v5 = vld [vmem:[%s12061_s3 + $0xa84] ss:$28 sps:$4 sm:$0xff]  }
 0x211   :  { %v1527_v10 = vpop.f32.mrf.mxu1  ;;  %4278 = vmatpush2.bf16.msra.mxu1 %v8383_v7 }
 0x212   :  { %4279 = vmatprep.subr.bf16.mxu1 %v8388_v8 }
 0x213   :  { %v1529_v13 = vpop.f32.mrf.mxu1 }
 0x214   :  { %v1486_v17 = vpop.f32.mrf.mxu0 }
 0x215   :  { %v9204_v16 = vpop.eup %9203  ;;  %v1531_v18 = vpop.f32.mrf.mxu1  ;;  %v1487_v19 = vadd.f32 %v1486_v17, %v408_v11  ;;  %4280 = vmatpush2.bf16.msra.mxu1 %v8386_v12 }
 0x216   :  { %v1658_v24 = vmul.f32 %v9204_v16, %v1446_v42  ;;  %v1488_v25 = vpop.f32.mrf.mxu0  ;;  %4281 = vmatprep.subr.bf16.mxu1 %v8391_v14  ;;  %v8400_v42 = vld [vmem:[%s12061_s3 + $0x514] ss:$28 sps:$4 sm:$0xff]  }
 0x217   :  { %v9206_v23 = vpop.eup %9205  ;;  %v1532_v36 = vpop.f32.mrf.mxu1  ;;  %v10203_v28 = vadd.f32 %v1527_v10, %v1487_v19  ;;  %v1489_v30 = vadd.f32 %v1488_v25, %v412_v15  ;;  %v8445_v14 = vld [vmem:[%s12061_s3 + $0x194] ss:$28 sps:$4 sm:$0xff]  }
 0x218   :  { %v1659_v27 = vmul.f32 %v9206_v23, %v1448_v46  ;;  %v1490_v31 = vpop.f32.mrf.mxu0  ;;  %v10216_v40 = vpack.c.bf16 %v1658_v24, %v1658_v24  ;;  %v8409_v46 = vld [vmem:[%s12061_s3 + $0xb9c] ss:$28 sps:$4 sm:$0xff]   ;;  %v8398_v36 = vld [vmem:[%s12061_s3 + $0x510] ss:$28 sps:$4 sm:$0xff]  }
 0x219   :  { %v7136_v34 = vmul.f32 -1.442695, %v10203_v28  ;;  %v10208_v35 = vadd.f32 %v1529_v13, %v1489_v30  ;;  %4282 = vmatpush2.bf16.msra.mxu1 %v8389_v21  ;;  %v8412_v30 = vld [vmem:[%s12061_s3 + $0x4a4] ss:$28 sps:$4 sm:$0xff]  }
 0x21a   :  { %v10205_v33 = vpack.c.bf16 %v1659_v27, %v1659_v27  ;;  %v1491_v41 = vpop.f32.mrf.mxu0  ;;  %4283 = vmatprep.subr.bf16.mxu1 %v8394_v26  ;;  %v8406_v27 = vld [vmem:[%s12061_s3 + $0x4dc] ss:$28 sps:$4 sm:$0xff]  }
 0x21b   :  { %9207 = vpow2.f32 %v7136_v34  ;;  %v7137_v44 = vmul.f32 -1.442695, %v10208_v35  ;;  %v8410_v31 = vld [vmem:[%s12061_s3 + $0x4a0] ss:$28 sps:$4 sm:$0xff]   ;;  %v8418_v34 = vld [vmem:[%s12061_s3 + $0x46c] ss:$28 sps:$4 sm:$0xff]  }
 0x21c   :  { %4244 = vmatprep.mubr.bf16.mxu0 %v10205_v33  ;;  %v8424_v41 = vld [vmem:[%s12061_s3 + $0x434] ss:$28 sps:$4 sm:$0xff]  }
 0x21d   :  { %4245 = vmatmul.mubr.bf16.vlgmr.msra.gmra.mxu0 %v10216_v40  ;;  %9209 = vpow2.f32 %v7137_v44  ;;  %4284 = vmatpush2.bf16.msra.mxu1 %v8392_v37  ;;  %v8428_v44 = vld [vmem:[%s12061_s3 + $0x3f8] ss:$28 sps:$4 sm:$0xff]  }
 0x21e   :  { %4295 = vmatpush1.bf16.msra.mxu0 %v8395_v38  ;;  %4376 = vmatprep.subr.bf16.mxu1 %v8400_v42  ;;  %v8416_v38 = vld [vmem:[%s12061_s3 + $0x468] ss:$28 sps:$4 sm:$0xff]   ;;  %v8422_v42 = vld [vmem:[%s12061_s3 + $0x430] ss:$28 sps:$4 sm:$0xff]  }
 0x21f   :  { %4296 = vmatprep.subr.bf16.mxu0 %v8403_v43  ;;  %4326 = vmatprep.mubr.bf16.mxu0 %v9266_v3  ;;  %v8430_v43 = vld [vmem:[%s12061_s3 + $0x3fc] ss:$28 sps:$4 sm:$0xff]  }
 0x222   :  { %4297 = vmatpush1.bf16.msra.mxu0 %v8401_v45  ;;  %v8436_v45 = vld [vmem:[%s12061_s3 + $0x3c4] ss:$28 sps:$4 sm:$0xff]  }
 0x223   :  { %4298 = vmatprep.subr.bf16.mxu0 %v8409_v46  ;;  %v8434_v46 = vld [vmem:[%s12061_s3 + $0x3c0] ss:$28 sps:$4 sm:$0xff]  }
 0x226   :  { %4299 = vmatpush1.bf16.msra.mxu0 %v8407_v47  ;;  %v8442_v47 = vld [vmem:[%s12061_s3 + $0x38c] ss:$28 sps:$4 sm:$0xff]  }
 0x227   :  { %4300 = vmatprep.subr.bf16.mxu0 %v8415_v48 }
 0x228   :  { %v9208_v39 = vpop.eup %9207 }
 0x229   :  { %v1639_v52 = vadd.f32 1.0, %v9208_v39  ;;  %v8443_v39 = vld [vmem:[%s12061_s3 + $0x190] ss:$28 sps:$4 sm:$0xff]  }
 0x22a   :  { %4301 = vmatpush1.bf16.msra.mxu0 %v8413_v49  ;;  %v9210_v54 = vpop.eup %9209 }
 0x22b   :  { %4302 = vmatprep.subr.bf16.mxu0 %v8421_v51  ;;  %9211 = vrcp.f32 %v1639_v52  ;;  %v1640_v55 = vadd.f32 1.0, %v9210_v54  ;;  %v8440_v51 = vld [vmem:[%s12061_s3 + $0x388] ss:$28 sps:$4 sm:$0xff]   ;;  %v8451_v54 = vld [vmem:[%s12061_s3 + $0x15c] ss:$28 sps:$4 sm:$0xff]  }
 0x22d   :  { %9213 = vrcp.f32 %v1640_v55  ;;  %v8449_v55 = vld [vmem:[%s12061_s3 + $0x158] ss:$28 sps:$4 sm:$0xff]  }
 0x22e   :  { %4303 = vmatpush1.bf16.msra.mxu0 %v8419_v53  ;;  %v8448_v53 = vld [vmem:[%s12061_s3 + $0x6d4] ss:$28 sps:$4 sm:$0xff]  }
 0x22f   :  { %4304 = vmatprep.subr.bf16.mxu0 %v8427_v32  ;;  %v8446_v32 = vld [vmem:[%s12061_s3 + $0x6d0] ss:$28 sps:$4 sm:$0xff]  }
 0x231   :  { %v7818_v59 = vpop.f32.mrf.mxu1 }
 0x232   :  { %4305 = vmatpush1.bf16.msra.mxu0 %v8425_v57  ;;  %v8454_v57 = vld [vmem:[%s12061_s3 + $0x69c] ss:$28 sps:$4 sm:$0xff]  }
 0x233   :  { %v7819_v4 = vpop.f32.mrf.mxu1  ;;  %4306 = vmatprep.subr.bf16.mxu0 %v8433_v58  ;;  %v8457_v58 = vld [vmem:[%s12061_s3 + $0x124] ss:$28 sps:$4 sm:$0xff]  }
 0x234   :  { %v7820_v7 = vadd.f32 %v7819_v4, %v7818_v59  ;;  %v1608_v10 = vpop.f32.mrf.mxu0  ;;  %v8452_v59 = vld [vmem:[%s12061_s3 + $0x698] ss:$28 sps:$4 sm:$0xff]   ;;  %v8463_v4 = vld [vmem:[%s12061_s3 + $0xec] ss:$28 sps:$4 sm:$0xff]  }
 0x235   :  { %v7821_v8 = vpop.f32.mrf.mxu1 }
 0x236   :  { %v1569_v11 = vadd.f32 %v7820_v7, %v416_v60  ;;  %4307 = vmatpush1.bf16.msra.mxu0 %v8431_v63  ;;  %v7978_v13 = vpop.f32.mrf.mxu0  ;;  %v8455_v60 = vld [vmem:[%s12061_s3 + $0x120] ss:$28 sps:$4 sm:$0xff]   ;;  %v8461_v7 = vld [vmem:[%s12061_s3 + $0xe8] ss:$28 sps:$4 sm:$0xff]  }
 0x237   :  { %v7822_v12 = vpop.f32.mrf.mxu1  ;;  %4308 = vmatprep.subr.bf16.mxu0 %v8439_v5  ;;  %v8460_v63 = vld [vmem:[%s12061_s3 + $0x664] ss:$28 sps:$4 sm:$0xff]   ;;  %v8466_v8 = vld [vmem:[%s12061_s3 + $0x62c] ss:$28 sps:$4 sm:$0xff]   ;;  %v8475_v13 = vld [vmem:[%s12061_s3 + $0x7c] ss:$28 sps:$4 sm:$0xff]  }
 0x238   :  { %v1609_v15 = vadd.f32 %v1608_v10, %v1569_v11  ;;  %v9212_v16 = vpop.eup %9211  ;;  %v1611_v17 = vpop.f32.mrf.mxu0  ;;  %v8458_v5 = vld [vmem:[%s12061_s3 + $0x660] ss:$28 sps:$4 sm:$0xff]   ;;  %v8469_v10 = vld [vmem:[%s12061_s3 + $0xb4] ss:$28 sps:$4 sm:$0xff]   ;;  %v8464_v11 = vld [vmem:[%s12061_s3 + $0x628] ss:$28 sps:$4 sm:$0xff]  }
 0x239   :  { %v1660_v21 = vmul.f32 %v9212_v16, %v10203_v28  ;;  %v8404_v28 = vld [vmem:[%s12061_s3 + $0x4d8] ss:$28 sps:$4 sm:$0xff]   ;;  %v8481_v17 = vld [vmem:[%s12061_s3 + $0x44] ss:$28 sps:$4 sm:$0xff]  }
 0x23a   :  { %v7138_v18 = vmul.f32 -1.442695, %v1609_v15  ;;  %4309 = vmatpush1.bf16.msra.mxu0 %v8437_v50  ;;  %v9214_v19 = vpop.eup %9213  ;;  %v7979_v23 = vpop.f32.mrf.mxu0  ;;  %v8467_v50 = vld [vmem:[%s12061_s3 + $0xb0] ss:$28 sps:$4 sm:$0xff]   ;;  %v8478_v16 = vld [vmem:[%s12061_s3 + $0x5bc] ss:$28 sps:$4 sm:$0xff]  }
 0x23b   :  { %4335 = vmatprep.subr.bf16.mxu0 %v8445_v14  ;;  %v1661_v24 = vmul.f32 %v9214_v19, %v10208_v35  ;;  %v10281_v26 = vpack.c.bf16 %v1660_v21, %v1660_v21  ;;  %v8472_v12 = vld [vmem:[%s12061_s3 + $0x5f4] ss:$28 sps:$4 sm:$0xff]   ;;  %v8479_v19 = vld [vmem:[%s12061_s3 + $0x40] ss:$28 sps:$4 sm:$0xff]   ;;  %v8487_v23 = vld [vmem:[%s12061_s3 + $0xc] ss:$28 sps:$4 sm:$0xff]  }
 0x23c   :  { %9215 = vpow2.f32 %v7138_v18  ;;  %v8470_v14 = vld [vmem:[%s12061_s3 + $0x5f0] ss:$28 sps:$4 sm:$0xff]   ;;  %v8476_v18 = vld [vmem:[%s12061_s3 + $0x5b8] ss:$28 sps:$4 sm:$0xff]   ;;  %v8484_v21 = vld [vmem:[%s12061_s3 + $0x584] ss:$28 sps:$4 sm:$0xff]  }
 0x23d   :  { %v10276_v25 = vpack.c.bf16 %v1661_v24, %v1661_v24  ;;  %v8482_v24 = vld [vmem:[%s12061_s3 + $0x580] ss:$28 sps:$4 sm:$0xff]  }
 0x23f   :  { %4285 = vmatprep.mubr.bf16.mxu1 %v10276_v25 }
 0x240   :  { %4286 = vmatmul.mubr.bf16.vlgmr.msra.gmra.mxu1 %v10281_v26 }
 0x241   :  { %4377 = vmatpush1.bf16.msra.mxu1 %v8398_v36  ;;  %4408 = vmatprep.mubr.bf16.mxu1 %v10205_v33  ;;  %v8485_v36 = vld [vmem:[%s12061_s3 + $0x8] ss:$28 sps:$4 sm:$0xff]  }
 0x242   :  { %4378 = vmatprep.subr.bf16.mxu1 %v8406_v27  ;;  %v8490_v27 = vld [vmem:[%s12061_s3 + $0x54c] ss:$28 sps:$4 sm:$0xff]  }
 0x245   :  { %4379 = vmatpush1.bf16.msra.mxu1 %v8404_v28  ;;  %v8493_v28 = vld [vmem:[%s12061_s3 + $0x354] ss:$28 sps:$4 sm:$0xff]  }
 0x246   :  { %4380 = vmatprep.subr.bf16.mxu1 %v8412_v30  ;;  %v8488_v30 = vld [vmem:[%s12061_s3 + $0x548] ss:$28 sps:$4 sm:$0xff]  }
 0x249   :  { %v9216_v35 = vpop.eup %9215  ;;  %4381 = vmatpush1.bf16.msra.mxu1 %v8410_v31  ;;  %v8491_v31 = vld [vmem:[%s12061_s3 + $0x350] ss:$28 sps:$4 sm:$0xff]  }
 0x24a   :  { %v1641_v37 = vadd.f32 1.0, %v9216_v35  ;;  %4382 = vmatprep.subr.bf16.mxu1 %v8418_v34  ;;  %v8496_v34 = vld [vmem:[%s12061_s3 + $0xc14] ss:$28 sps:$4 sm:$0xff]   ;;  %v8499_v35 = vld [vmem:[%s12061_s3 + $0x31c] ss:$28 sps:$4 sm:$0xff]  }
 0x24c   :  { %9217 = vrcp.f32 %v1641_v37  ;;  %v8494_v37 = vld [vmem:[%s12061_s3 + $0xc10] ss:$28 sps:$4 sm:$0xff]  }
 0x24d   :  { %4383 = vmatpush1.bf16.msra.mxu1 %v8416_v38  ;;  %v8497_v38 = vld [vmem:[%s12061_s3 + $0x318] ss:$28 sps:$4 sm:$0xff]  }
 0x24e   :  { %4384 = vmatprep.subr.bf16.mxu1 %v8424_v41  ;;  %v8502_v41 = vld [vmem:[%s12061_s3 + $0xbdc] ss:$28 sps:$4 sm:$0xff]  }
 0x251   :  { %4385 = vmatpush1.bf16.msra.mxu1 %v8422_v42  ;;  %v8505_v42 = vld [vmem:[%s12061_s3 + $0x2e4] ss:$28 sps:$4 sm:$0xff]  }
 0x252   :  { %4386 = vmatprep.subr.bf16.mxu1 %v8430_v43  ;;  %v8500_v43 = vld [vmem:[%s12061_s3 + $0xbd8] ss:$28 sps:$4 sm:$0xff]  }
 0x255   :  { %4387 = vmatpush1.bf16.msra.mxu1 %v8428_v44  ;;  %v8503_v44 = vld [vmem:[%s12061_s3 + $0x2e0] ss:$28 sps:$4 sm:$0xff]  }
 0x256   :  { %4388 = vmatprep.subr.bf16.mxu1 %v8436_v45  ;;  %v8508_v45 = vld [vmem:[%s12061_s3 + $0xba4] ss:$28 sps:$4 sm:$0xff]  }
 0x259   :  { %v9218_v48 = vpop.eup %9217  ;;  %4389 = vmatpush1.bf16.msra.mxu1 %v8434_v46  ;;  %v8511_v46 = vld [vmem:[%s12061_s3 + $0x2ac] ss:$28 sps:$4 sm:$0xff]  }
 0x25a   :  { %v1662_v49 = vmul.f32 %v9218_v48, %v1609_v15  ;;  %4390 = vmatprep.subr.bf16.mxu1 %v8442_v47  ;;  %v8473_v15 = vld [vmem:[%s12061_s3 + $0x78] ss:$28 sps:$4 sm:$0xff]   ;;  %v8506_v47 = vld [vmem:[%s12061_s3 + $0xba0] ss:$28 sps:$4 sm:$0xff]   ;;  %v8509_v48 = vld [vmem:[%s12061_s3 + $0x2a8] ss:$28 sps:$4 sm:$0xff]  }
 0x25c   :  { %v10331_v52 = vpack.c.bf16 %v1662_v49, %v1662_v49  ;;  %v8514_v49 = vld [vmem:[%s12061_s3 + $0xb6c] ss:$28 sps:$4 sm:$0xff]  }
 0x25d   :  { %4391 = vmatpush1.bf16.msra.mxu1 %v8440_v51  ;;  %v8517_v51 = vld [vmem:[%s12061_s3 + $0x274] ss:$28 sps:$4 sm:$0xff]  }
 0x25e   :  { %4327 = vmatmul.mubr.bf16.vlgmr.msra.gmra.mxu0 %v10331_v52  ;;  %4392 = vmatprep.subr.bf16.mxu1 %v8448_v53  ;;  %v8515_v53 = vld [vmem:[%s12061_s3 + $0x270] ss:$28 sps:$4 sm:$0xff]  }
 0x25f   :  { %4336 = vmatpush1.bf16.msra.mxu0 %v8443_v39  ;;  %4367 = vmatprep.mubr.bf16.mxu0 %v10092_v20  ;;  %v8512_v39 = vld [vmem:[%s12061_s3 + $0xb68] ss:$28 sps:$4 sm:$0xff]  }
 0x260   :  { %4337 = vmatprep.subr.bf16.mxu0 %v8451_v54  ;;  %v8520_v54 = vld [vmem:[%s12061_s3 + $0xb34] ss:$28 sps:$4 sm:$0xff]  }
 0x261   :  { %4393 = vmatpush2.bf16.msra.mxu1 %v8446_v32  ;;  %v8523_v32 = vld [vmem:[%s12061_s3 + $0x23c] ss:$28 sps:$4 sm:$0xff]  }
 0x262   :  { %4394 = vmatprep.subr.bf16.mxu1 %v8454_v57  ;;  %v8521_v57 = vld [vmem:[%s12061_s3 + $0x238] ss:$28 sps:$4 sm:$0xff]  }
 0x263   :  { %4338 = vmatpush1.bf16.msra.mxu0 %v8449_v55  ;;  %v8518_v55 = vld [vmem:[%s12061_s3 + $0xb30] ss:$28 sps:$4 sm:$0xff]  }
 0x264   :  { %4339 = vmatprep.subr.bf16.mxu0 %v8457_v58  ;;  %v8526_v58 = vld [vmem:[%s12061_s3 + $0xafc] ss:$28 sps:$4 sm:$0xff]  }
 0x265   :  { %4395 = vmatpush2.bf16.msra.mxu1 %v8452_v59  ;;  %v8529_v59 = vld [vmem:[%s12061_s3 + $0x204] ss:$28 sps:$4 sm:$0xff]  }
 0x266   :  { %4396 = vmatprep.subr.bf16.mxu1 %v8460_v63  ;;  %v8527_v63 = vld [vmem:[%s12061_s3 + $0x200] ss:$28 sps:$4 sm:$0xff]  }
 0x267   :  { %4340 = vmatpush1.bf16.msra.mxu0 %v8455_v60  ;;  %v8524_v60 = vld [vmem:[%s12061_s3 + $0xaf8] ss:$28 sps:$4 sm:$0xff]  }
 0x268   :  { %4341 = vmatprep.subr.bf16.mxu0 %v8463_v4  ;;  %v8532_v4 = vld [vmem:[%s12061_s3 + $0xac4] ss:$28 sps:$4 sm:$0xff]  }
 0x269   :  { %4397 = vmatpush2.bf16.msra.mxu1 %v8458_v5  ;;  %v8535_v5 = vld [vmem:[%s12061_s3 + $0x1cc] ss:$28 sps:$4 sm:$0xff]  }
 0x26a   :  { %4398 = vmatprep.subr.bf16.mxu1 %v8466_v8  ;;  %v8533_v8 = vld [vmem:[%s12061_s3 + $0x1c8] ss:$28 sps:$4 sm:$0xff]  }
 0x26b   :  { %4342 = vmatpush1.bf16.msra.mxu0 %v8461_v7  ;;  %v8530_v7 = vld [vmem:[%s12061_s3 + $0xac0] ss:$28 sps:$4 sm:$0xff]  }
 0x26c   :  { %4343 = vmatprep.subr.bf16.mxu0 %v8469_v10  ;;  %v8538_v10 = vld [vmem:[%s12061_s3 + $0xa8c] ss:$28 sps:$4 sm:$0xff]  }
 0x26d   :  { %4399 = vmatpush2.bf16.msra.mxu1 %v8464_v11  ;;  %v8541_v11 = vld [vmem:[%s12061_s3 + $0x894] ss:$28 sps:$4 sm:$0xff]  }
 0x26e   :  { %4400 = vmatprep.subr.bf16.mxu1 %v8472_v12  ;;  %v8539_v12 = vld [vmem:[%s12061_s3 + $0x890] ss:$28 sps:$4 sm:$0xff]  }
 0x26f   :  { %4344 = vmatpush1.bf16.msra.mxu0 %v8467_v50  ;;  %v8536_v50 = vld [vmem:[%s12061_s3 + $0xa88] ss:$28 sps:$4 sm:$0xff]  }
 0x270   :  { %4345 = vmatprep.subr.bf16.mxu0 %v8475_v13  ;;  %v8544_v13 = vld [vmem:[%s12061_s3 + $0x19c] ss:$28 sps:$4 sm:$0xff]  }
 0x271   :  { %4401 = vmatpush2.bf16.msra.mxu1 %v8470_v14  ;;  %v8547_v14 = vld [vmem:[%s12061_s3 + $0x85c] ss:$28 sps:$4 sm:$0xff]  }
 0x272   :  { %4402 = vmatprep.subr.bf16.mxu1 %v8478_v16  ;;  %v8545_v16 = vld [vmem:[%s12061_s3 + $0x858] ss:$28 sps:$4 sm:$0xff]  }
 0x273   :  { %4346 = vmatpush1.bf16.msra.mxu0 %v8473_v15  ;;  %v8542_v15 = vld [vmem:[%s12061_s3 + $0x198] ss:$28 sps:$4 sm:$0xff]  }
 0x274   :  { %4347 = vmatprep.subr.bf16.mxu0 %v8481_v17  ;;  %v8550_v17 = vld [vmem:[%s12061_s3 + $0x164] ss:$28 sps:$4 sm:$0xff]  }
 0x275   :  { %4403 = vmatpush2.bf16.msra.mxu1 %v8476_v18  ;;  %v8553_v18 = vld [vmem:[%s12061_s3 + $0x824] ss:$28 sps:$4 sm:$0xff]  }
 0x276   :  { %4404 = vmatprep.subr.bf16.mxu1 %v8484_v21  ;;  %v8548_v21 = vld [vmem:[%s12061_s3 + $0x160] ss:$28 sps:$4 sm:$0xff]  }
 0x277   :  { %4348 = vmatpush1.bf16.msra.mxu0 %v8479_v19 }
 0x278   :  { %4349 = vmatprep.subr.bf16.mxu0 %v8487_v23 }
 0x279   :  { %4405 = vmatpush2.bf16.msra.mxu1 %v8482_v24  ;;  %v8551_v24 = vld [vmem:[%s12061_s3 + $0x820] ss:$28 sps:$4 sm:$0xff]  }
 0x27a   :  { %4406 = vmatprep.subr.bf16.mxu1 %v8490_v27  ;;  %v8559_v27 = vld [vmem:[%s12061_s3 + $0x7ec] ss:$28 sps:$4 sm:$0xff]  }
 0x27b   :  { %4350 = vmatpush1.bf16.msra.mxu0 %v8485_v36  ;;  %v8556_v36 = vld [vmem:[%s12061_s3 + $0x12c] ss:$28 sps:$4 sm:$0xff]  }
 0x27c   :  { %4351 = vmatprep.subr.bf16.mxu0 %v8493_v28 }
 0x27d   :  { %4407 = vmatpush2.bf16.msra.mxu1 %v8488_v30  ;;  %v8554_v30 = vld [vmem:[%s12061_s3 + $0x128] ss:$28 sps:$4 sm:$0xff]  }
 0x27e   :  { %4458 = vmatprep.subr.bf16.mxu1 %v8496_v34  ;;  %v8557_v34 = vld [vmem:[%s12061_s3 + $0x7e8] ss:$28 sps:$4 sm:$0xff]  }
 0x27f   :  { %4352 = vmatpush2.bf16.msra.mxu0 %v8491_v31 }
 0x280   :  { %4353 = vmatprep.subr.bf16.mxu0 %v8499_v35  ;;  %4409 = vmatmul.mubr.bf16.vlgmr.msra.gmra.mxu1 %v10216_v40  ;;  %v8562_v35 = vld [vmem:[%s12061_s3 + $0xf4] ss:$28 sps:$4 sm:$0xff]  }
 0x281   :  { %4459 = vmatpush1.bf16.msra.mxu1 %v8494_v37  ;;  %4490 = vmatprep.mubr.bf16.mxu1 %v9266_v3  ;;  %v8565_v37 = vld [vmem:[%s12061_s3 + $0x7b4] ss:$28 sps:$4 sm:$0xff]  }
 0x282   :  { %4460 = vmatprep.subr.bf16.mxu1 %v8502_v41  ;;  %v8563_v41 = vld [vmem:[%s12061_s3 + $0x7b0] ss:$28 sps:$4 sm:$0xff]  }
 0x283   :  { %4354 = vmatpush2.bf16.msra.mxu0 %v8497_v38  ;;  %v8560_v38 = vld [vmem:[%s12061_s3 + $0xf0] ss:$28 sps:$4 sm:$0xff]  }
 0x284   :  { %4355 = vmatprep.subr.bf16.mxu0 %v8505_v42  ;;  %v8568_v42 = vld [vmem:[%s12061_s3 + $0xbc] ss:$28 sps:$4 sm:$0xff]  }
 0x285   :  { %4461 = vmatpush1.bf16.msra.mxu1 %v8500_v43  ;;  %v8571_v43 = vld [vmem:[%s12061_s3 + $0x77c] ss:$28 sps:$4 sm:$0xff]  }
 0x286   :  { %4462 = vmatprep.subr.bf16.mxu1 %v8508_v45  ;;  %v8569_v45 = vld [vmem:[%s12061_s3 + $0x778] ss:$28 sps:$4 sm:$0xff]  }
 0x287   :  { %4356 = vmatpush2.bf16.msra.mxu0 %v8503_v44  ;;  %v8566_v44 = vld [vmem:[%s12061_s3 + $0xb8] ss:$28 sps:$4 sm:$0xff]  }
 0x288   :  { %4357 = vmatprep.subr.bf16.mxu0 %v8511_v46  ;;  %v8574_v46 = vld [vmem:[%s12061_s3 + $0x84] ss:$28 sps:$4 sm:$0xff]  }
 0x289   :  { %4463 = vmatpush1.bf16.msra.mxu1 %v8506_v47  ;;  %v8577_v47 = vld [vmem:[%s12061_s3 + $0x744] ss:$28 sps:$4 sm:$0xff]  }
 0x28a   :  { %4464 = vmatprep.subr.bf16.mxu1 %v8514_v49  ;;  %v8575_v49 = vld [vmem:[%s12061_s3 + $0x740] ss:$28 sps:$4 sm:$0xff]  }
 0x28b   :  { %4358 = vmatpush2.bf16.msra.mxu0 %v8509_v48  ;;  %v8572_v48 = vld [vmem:[%s12061_s3 + $0x80] ss:$28 sps:$4 sm:$0xff]  }
 0x28c   :  { %4359 = vmatprep.subr.bf16.mxu0 %v8517_v51  ;;  %v8580_v51 = vld [vmem:[%s12061_s3 + $0x4c] ss:$28 sps:$4 sm:$0xff]  }
 0x28d   :  { %4465 = vmatpush1.bf16.msra.mxu1 %v8512_v39  ;;  %v8583_v39 = vld [vmem:[%s12061_s3 + $0x70c] ss:$28 sps:$4 sm:$0xff]  }
 0x28e   :  { %4466 = vmatprep.subr.bf16.mxu1 %v8520_v54  ;;  %v8581_v54 = vld [vmem:[%s12061_s3 + $0x708] ss:$28 sps:$4 sm:$0xff]  }
 0x28f   :  { %4360 = vmatpush2.bf16.msra.mxu0 %v8515_v53  ;;  %v8578_v53 = vld [vmem:[%s12061_s3 + $0x48] ss:$28 sps:$4 sm:$0xff]  }
 0x290   :  { %4361 = vmatprep.subr.bf16.mxu0 %v8523_v32  ;;  %v8586_v32 = vld [vmem:[%s12061_s3 + $0x14] ss:$28 sps:$4 sm:$0xff]  }
 0x291   :  { %4467 = vmatpush1.bf16.msra.mxu1 %v8518_v55  ;;  %v8589_v55 = vld [vmem:[%s12061_s3 + $0xa54] ss:$28 sps:$4 sm:$0xff]  }
 0x292   :  { %4468 = vmatprep.subr.bf16.mxu1 %v8526_v58  ;;  %v8587_v58 = vld [vmem:[%s12061_s3 + $0xa50] ss:$28 sps:$4 sm:$0xff]  }
 0x293   :  { %4362 = vmatpush2.bf16.msra.mxu0 %v8521_v57  ;;  %v8584_v57 = vld [vmem:[%s12061_s3 + $0x10] ss:$28 sps:$4 sm:$0xff]  }
 0x294   :  { %4363 = vmatprep.subr.bf16.mxu0 %v8529_v59  ;;  %v8592_v59 = vld [vmem:[%s12061_s3 + $0x35c] ss:$28 sps:$4 sm:$0xff]  }
 0x295   :  { %4469 = vmatpush1.bf16.msra.mxu1 %v8524_v60  ;;  %v8595_v60 = vld [vmem:[%s12061_s3 + $0xa1c] ss:$28 sps:$4 sm:$0xff]  }
 0x296   :  { %4470 = vmatprep.subr.bf16.mxu1 %v8532_v4  ;;  %v8593_v4 = vld [vmem:[%s12061_s3 + $0xa18] ss:$28 sps:$4 sm:$0xff]  }
 0x297   :  { %4364 = vmatpush2.bf16.msra.mxu0 %v8527_v63  ;;  %v8590_v63 = vld [vmem:[%s12061_s3 + $0x358] ss:$28 sps:$4 sm:$0xff]  }
 0x298   :  { %4365 = vmatprep.subr.bf16.mxu0 %v8535_v5  ;;  %v8598_v5 = vld [vmem:[%s12061_s3 + $0x324] ss:$28 sps:$4 sm:$0xff]  }
 0x299   :  { %4471 = vmatpush1.bf16.msra.mxu1 %v8530_v7  ;;  %v8601_v7 = vld [vmem:[%s12061_s3 + $0x9e4] ss:$28 sps:$4 sm:$0xff]  }
 0x29a   :  { %4472 = vmatprep.subr.bf16.mxu1 %v8538_v10  ;;  %v8599_v10 = vld [vmem:[%s12061_s3 + $0x9e0] ss:$28 sps:$4 sm:$0xff]  }
 0x29b   :  { %4366 = vmatpush2.bf16.msra.mxu0 %v8533_v8  ;;  %v8596_v8 = vld [vmem:[%s12061_s3 + $0x320] ss:$28 sps:$4 sm:$0xff]  }
 0x29c   :  { %4417 = vmatprep.subr.bf16.mxu0 %v8541_v11  ;;  %v8604_v11 = vld [vmem:[%s12061_s3 + $0x2ec] ss:$28 sps:$4 sm:$0xff]  }
 0x29d   :  { %4473 = vmatpush1.bf16.msra.mxu1 %v8536_v50  ;;  %v8607_v50 = vld [vmem:[%s12061_s3 + $0x9ac] ss:$28 sps:$4 sm:$0xff]  }
 0x29e   :  { %4368 = vmatmul.mubr.bf16.vlgmr.msra.gmra.mxu0 %v10097_v22  ;;  %4499 = vmatprep.subr.bf16.mxu1 %v8544_v13  ;;  %v8605_v13 = vld [vmem:[%s12061_s3 + $0x9a8] ss:$28 sps:$4 sm:$0xff]  }
 0x29f   :  { %4418 = vmatpush1.bf16.msra.mxu0 %v8539_v12  ;;  %4449 = vmatprep.mubr.bf16.mxu0 %v10276_v25  ;;  %v8602_v12 = vld [vmem:[%s12061_s3 + $0x2e8] ss:$28 sps:$4 sm:$0xff]  }
 0x2a0   :  { %4419 = vmatprep.subr.bf16.mxu0 %v8547_v14  ;;  %4491 = vmatmul.mubr.bf16.vlgmr.msra.gmra.mxu1 %v10331_v52  ;;  %v10550_v19 = vpop.f32.mrf.mxu1  ;;  %v8610_v14 = vld [vmem:[%s12061_s3 + $0x2b4] ss:$28 sps:$4 sm:$0xff]  }
 0x2a1   :  { %4500 = vmatpush1.bf16.msra.mxu1 %v8542_v15  ;;  %4531 = vmatprep.mubr.bf16.mxu1 %v10092_v20  ;;  %v8613_v15 = vld [vmem:[%s12061_s3 + $0x974] ss:$28 sps:$4 sm:$0xff]  }
 0x2a2   :  { %v10556_v23 = vpop.f32.mrf.mxu1  ;;  %4501 = vmatprep.subr.bf16.mxu1 %v8550_v17  ;;  %v8611_v17 = vld [vmem:[%s12061_s3 + $0x970] ss:$28 sps:$4 sm:$0xff]  }
 0x2a3   :  { %4420 = vmatpush1.bf16.msra.mxu0 %v8545_v16  ;;  %v8608_v16 = vld [vmem:[%s12061_s3 + $0x2b0] ss:$28 sps:$4 sm:$0xff]  }
 0x2a4   :  { %4421 = vmatprep.subr.bf16.mxu0 %v8553_v18  ;;  %v4209_v28 = vpop.f32.mrf.mxu1  ;;  %v8616_v18 = vld [vmem:[%s12061_s3 + $0x27c] ss:$28 sps:$4 sm:$0xff]  }
 0x2a5   :  { %4502 = vmatpush1.bf16.msra.mxu1 %v8548_v21  ;;  %v8619_v21 = vld [vmem:[%s12061_s3 + $0x93c] ss:$28 sps:$4 sm:$0xff]   ;;  %v8625_v28 = vld [vmem:[%s12061_s3 + $0x904] ss:$28 sps:$4 sm:$0xff]  }
 0x2a6   :  { %v4210_v31 = vpop.f32.mrf.mxu1  ;;  %4503 = vmatprep.subr.bf16.mxu1 %v8556_v36  ;;  %v8617_v36 = vld [vmem:[%s12061_s3 + $0x938] ss:$28 sps:$4 sm:$0xff]  }
 0x2a7   :  { %4422 = vmatpush1.bf16.msra.mxu0 %v8551_v24  ;;  %v8614_v24 = vld [vmem:[%s12061_s3 + $0x278] ss:$28 sps:$4 sm:$0xff]   ;;  %v8623_v31 = vld [vmem:[%s12061_s3 + $0x900] ss:$28 sps:$4 sm:$0xff]  }
 0x2a8   :  { %4423 = vmatprep.subr.bf16.mxu0 %v8559_v27  ;;  %v8622_v27 = vld [vmem:[%s12061_s3 + $0x244] ss:$28 sps:$4 sm:$0xff]  }
 0x2a9   :  { %4504 = vmatpush1.bf16.msra.mxu1 %v8554_v30  ;;  %v8620_v30 = vld [vmem:[%s12061_s3 + $0x240] ss:$28 sps:$4 sm:$0xff]  }
 0x2aa   :  { %4505 = vmatprep.subr.bf16.mxu1 %v8562_v35  ;;  %v8631_v35 = vld [vmem:[%s12061_s3 + $0x8cc] ss:$28 sps:$4 sm:$0xff]  }
 0x2ab   :  { %4424 = vmatpush1.bf16.msra.mxu0 %v8557_v34  ;;  %v8628_v34 = vld [vmem:[%s12061_s3 + $0x20c] ss:$28 sps:$4 sm:$0xff]  }
 0x2ac   :  { %4425 = vmatprep.subr.bf16.mxu0 %v8565_v37  ;;  %v1663_v37 = vld [vmem:[%s12060_s6 + $0xa] sm:$0xff] }
 0x2ad   :  { %4506 = vmatpush1.bf16.msra.mxu1 %v8560_v38  ;;  %v8626_v38 = vld [vmem:[%s12061_s3 + $0x208] ss:$28 sps:$4 sm:$0xff]  }
 0x2ae   :  { %4507 = vmatprep.subr.bf16.mxu1 %v8568_v42  ;;  %v8634_v42 = vld [vmem:[%s12061_s3 + $0x1d4] ss:$28 sps:$4 sm:$0xff]  }
 0x2af   :  { %4426 = vmatpush1.bf16.msra.mxu0 %v8563_v41  ;;  %v8629_v41 = vld [vmem:[%s12061_s3 + $0x8c8] ss:$28 sps:$4 sm:$0xff]  }
 0x2b0   :  { %4427 = vmatprep.subr.bf16.mxu0 %v8571_v43  ;;  %v2123_v43 = vrot.slane %v1663_v37, %v9493_v1 }
 0x2b1   :  { %4508 = vmatpush1.bf16.msra.mxu1 %v8566_v44  ;;  %v8637_v44 = vld [vmem:[%s12061_s3 + $0x51c] ss:$28 sps:$4 sm:$0xff]  }
 0x2b2   :  { %4509 = vmatprep.subr.bf16.mxu1 %v8574_v46  ;;  %v8632_v46 = vld [vmem:[%s12061_s3 + $0x1d0] ss:$28 sps:$4 sm:$0xff]  }
 0x2b3   :  { %4428 = vmatpush1.bf16.msra.mxu0 %v8569_v45  ;;  %v2127_v45 = vrot.slane %v1663_v37, %v9496_v2  ;;  %v8680_v37 = vld [vmem:[%s12061_s3 + $0x710] ss:$28 sps:$4 sm:$0xff]  }
 0x2b4   :  { %4429 = vmatprep.subr.bf16.mxu0 %v8577_v47  ;;  %v8635_v47 = vld [vmem:[%s12061_s3 + $0x518] ss:$28 sps:$4 sm:$0xff]  }
 0x2b5   :  { %4510 = vmatpush1.bf16.msra.mxu1 %v8572_v48  ;;  %v4206_v48 = vadd.f32 %v10550_v19, %v2123_v43  ;;  %v8638_v19 = vld [vmem:[%s12061_s3 + $0x898] ss:$28 sps:$4 sm:$0xff]   ;;  %v8691_v43 = vld [vmem:[%s12061_s3 + $0x6a4] ss:$28 sps:$4 sm:$0xff]  }
 0x2b6   :  { %4511 = vmatprep.subr.bf16.mxu1 %v8580_v51  ;;  %v8643_v51 = vld [vmem:[%s12061_s3 + $0x4e4] ss:$28 sps:$4 sm:$0xff]  }
 0x2b7   :  { %4430 = vmatpush1.bf16.msra.mxu0 %v8575_v49  ;;  %v8640_v49 = vld [vmem:[%s12061_s3 + $0x89c] ss:$28 sps:$4 sm:$0xff]  }
 0x2b8   :  { %4431 = vmatprep.subr.bf16.mxu0 %v8583_v39 }
 0x2b9   :  { %4512 = vmatpush1.bf16.msra.mxu1 %v8578_v53  ;;  %v4208_v53 = vadd.f32 %v10556_v23, %v2127_v45  ;;  %v8646_v23 = vld [vmem:[%s12061_s3 + $0x864] ss:$28 sps:$4 sm:$0xff]  }
 0x2ba   :  { %4513 = vmatprep.subr.bf16.mxu1 %v8586_v32  ;;  %v8694_v45 = vld [vmem:[%s12061_s3 + $0xa24] ss:$28 sps:$4 sm:$0xff]  }
 0x2bb   :  { %4432 = vmatpush1.bf16.msra.mxu0 %v8581_v54 }
 0x2bc   :  { %4433 = vmatprep.subr.bf16.mxu0 %v8589_v55  ;;  %v8641_v55 = vld [vmem:[%s12061_s3 + $0x4e0] ss:$28 sps:$4 sm:$0xff]  }
 0x2bd   :  { %4514 = vmatpush1.bf16.msra.mxu1 %v8584_v57 }
 0x2be   :  { %4515 = vmatprep.subr.bf16.mxu1 %v8592_v59 }
 0x2bf   :  { %4434 = vmatpush2.bf16.msra.mxu0 %v8587_v58  ;;  %v8649_v58 = vld [vmem:[%s12061_s3 + $0x4ac] ss:$28 sps:$4 sm:$0xff]  }
 0x2c0   :  { %4435 = vmatprep.subr.bf16.mxu0 %v8595_v60  ;;  %v8644_v60 = vld [vmem:[%s12061_s3 + $0x860] ss:$28 sps:$4 sm:$0xff]  }
 0x2c1   :  { %4516 = vmatpush2.bf16.msra.mxu1 %v8590_v63 }
 0x2c2   :  { %4517 = vmatprep.subr.bf16.mxu1 %v8598_v5  ;;  %v8652_v5 = vld [vmem:[%s12061_s3 + $0x82c] ss:$28 sps:$4 sm:$0xff]  }
 0x2c3   :  { %4436 = vmatpush2.bf16.msra.mxu0 %v8593_v4  ;;  %v8647_v4 = vld [vmem:[%s12061_s3 + $0x4a8] ss:$28 sps:$4 sm:$0xff]  }
 0x2c4   :  { %4437 = vmatprep.subr.bf16.mxu0 %v8601_v7  ;;  %v8655_v7 = vld [vmem:[%s12061_s3 + $0x474] ss:$28 sps:$4 sm:$0xff]  }
 0x2c5   :  { %4518 = vmatpush2.bf16.msra.mxu1 %v8596_v8  ;;  %v8650_v8 = vld [vmem:[%s12061_s3 + $0x828] ss:$28 sps:$4 sm:$0xff]  }
 0x2c6   :  { %4519 = vmatprep.subr.bf16.mxu1 %v8604_v11  ;;  %v8658_v11 = vld [vmem:[%s12061_s3 + $0x7f4] ss:$28 sps:$4 sm:$0xff]  }
 0x2c7   :  { %4438 = vmatpush2.bf16.msra.mxu0 %v8599_v10  ;;  %v8653_v10 = vld [vmem:[%s12061_s3 + $0x470] ss:$28 sps:$4 sm:$0xff]  }
 0x2c8   :  { %4439 = vmatprep.subr.bf16.mxu0 %v8607_v50  ;;  %v8661_v50 = vld [vmem:[%s12061_s3 + $0x43c] ss:$28 sps:$4 sm:$0xff]  }
 0x2c9   :  { %4520 = vmatpush2.bf16.msra.mxu1 %v8602_v12  ;;  %v8656_v12 = vld [vmem:[%s12061_s3 + $0x7f0] ss:$28 sps:$4 sm:$0xff]  }
 0x2ca   :  { %4521 = vmatprep.subr.bf16.mxu1 %v8610_v14  ;;  %v8664_v14 = vld [vmem:[%s12061_s3 + $0x7bc] ss:$28 sps:$4 sm:$0xff]  }
 0x2cb   :  { %4440 = vmatpush2.bf16.msra.mxu0 %v8605_v13  ;;  %v8659_v13 = vld [vmem:[%s12061_s3 + $0x438] ss:$28 sps:$4 sm:$0xff]  }
 0x2cc   :  { %4441 = vmatprep.subr.bf16.mxu0 %v8613_v15  ;;  %v8667_v15 = vld [vmem:[%s12061_s3 + $0x404] ss:$28 sps:$4 sm:$0xff]  }
 0x2cd   :  { %4522 = vmatpush2.bf16.msra.mxu1 %v8608_v16  ;;  %v8662_v16 = vld [vmem:[%s12061_s3 + $0x7b8] ss:$28 sps:$4 sm:$0xff]  }
 0x2ce   :  { %4523 = vmatprep.subr.bf16.mxu1 %v8616_v18  ;;  %v8670_v18 = vld [vmem:[%s12061_s3 + $0x784] ss:$28 sps:$4 sm:$0xff]  }
 0x2cf   :  { %4442 = vmatpush2.bf16.msra.mxu0 %v8611_v17  ;;  %v8665_v17 = vld [vmem:[%s12061_s3 + $0x400] ss:$28 sps:$4 sm:$0xff]  }
 0x2d0   :  { %4443 = vmatprep.subr.bf16.mxu0 %v8619_v21  ;;  %v8673_v21 = vld [vmem:[%s12061_s3 + $0x3cc] ss:$28 sps:$4 sm:$0xff]  }
 0x2d1   :  { %4524 = vmatpush2.bf16.msra.mxu1 %v8614_v24  ;;  %v8668_v24 = vld [vmem:[%s12061_s3 + $0x780] ss:$28 sps:$4 sm:$0xff]  }
 0x2d2   :  { %4525 = vmatprep.subr.bf16.mxu1 %v8622_v27  ;;  %v8676_v27 = vld [vmem:[%s12061_s3 + $0x74c] ss:$28 sps:$4 sm:$0xff]  }
 0x2d3   :  { %4444 = vmatpush2.bf16.msra.mxu0 %v8617_v36  ;;  %v8671_v36 = vld [vmem:[%s12061_s3 + $0x3c8] ss:$28 sps:$4 sm:$0xff]  }
 0x2d4   :  { %4445 = vmatprep.subr.bf16.mxu0 %v8625_v28  ;;  %v8679_v28 = vld [vmem:[%s12061_s3 + $0x394] ss:$28 sps:$4 sm:$0xff]  }
 0x2d5   :  { %4526 = vmatpush2.bf16.msra.mxu1 %v8620_v30  ;;  %v8674_v30 = vld [vmem:[%s12061_s3 + $0x748] ss:$28 sps:$4 sm:$0xff]  }
 0x2d6   :  { %4527 = vmatprep.subr.bf16.mxu1 %v8628_v34  ;;  %v8682_v34 = vld [vmem:[%s12061_s3 + $0x714] ss:$28 sps:$4 sm:$0xff]  }
 0x2d7   :  { %4446 = vmatpush2.bf16.msra.mxu0 %v8623_v31  ;;  %v8677_v31 = vld [vmem:[%s12061_s3 + $0x390] ss:$28 sps:$4 sm:$0xff]  }
 0x2d8   :  { %4447 = vmatprep.subr.bf16.mxu0 %v8631_v35  ;;  %v8685_v35 = vld [vmem:[%s12061_s3 + $0x6dc] ss:$28 sps:$4 sm:$0xff]  }
 0x2d9   :  { %4528 = vmatpush2.bf16.msra.mxu1 %v8626_v38  ;;  %v8683_v38 = vld [vmem:[%s12061_s3 + $0x6d8] ss:$28 sps:$4 sm:$0xff]  }
 0x2da   :  { %4529 = vmatprep.subr.bf16.mxu1 %v8634_v42  ;;  %v8686_v42 = vld [vmem:[%s12061_s3 + $0xa58] ss:$28 sps:$4 sm:$0xff]  }
 0x2db   :  { %4448 = vmatpush2.bf16.msra.mxu0 %v8629_v41  ;;  %v8688_v41 = vld [vmem:[%s12061_s3 + $0xa5c] ss:$28 sps:$4 sm:$0xff]  }
 0x2dc   :  { %4540 = vmatprep.subr.bf16.mxu0 %v8637_v44  ;;  %v8689_v44 = vld [vmem:[%s12061_s3 + $0x6a0] ss:$28 sps:$4 sm:$0xff]  }
 0x2dd   :  { %v4246_v39 = vpop.f32.mrf.mxu0  ;;  %4530 = vmatpush2.bf16.msra.mxu1 %v8632_v46  ;;  %v8697_v46 = vld [vmem:[%s12061_s3 + $0x66c] ss:$28 sps:$4 sm:$0xff]  }
 0x2de   :  { %v10742_v54 = vadd.f32 %v4246_v39, %v4206_v48  ;;  %4450 = vmatmul.mubr.bf16.vlgmr.msra.gmra.mxu0 %v10281_v26  ;;  %4581 = vmatprep.subr.bf16.mxu1 %v8640_v49  ;;  %v8695_v49 = vld [vmem:[%s12061_s3 + $0x668] ss:$28 sps:$4 sm:$0xff]  }
 0x2df   :  { %4541 = vmatpush1.bf16.msra.mxu0 %v8635_v47  ;;  %4572 = vmatprep.mubr.bf16.mxu0 %v10205_v33  ;;  %v4248_v32 = vpop.f32.mrf.mxu0  ;;  %v8692_v47 = vld [vmem:[%s12061_s3 + $0xa20] ss:$28 sps:$4 sm:$0xff]  }
 0x2e0   :  { %v10755_v57 = vadd.f32 %v4248_v32, %v4208_v53  ;;  %4542 = vmatprep.subr.bf16.mxu0 %v8643_v51  ;;  %4532 = vmatmul.mubr.bf16.vlgmr.msra.gmra.mxu1 %v10097_v22  ;;  %v8700_v53 = vld [vmem:[%s12061_s3 + $0x9ec] ss:$28 sps:$4 sm:$0xff]  }
 0x2e1   :  { %v4250_v59 = vpop.f32.mrf.mxu0  ;;  %4582 = vmatpush1.bf16.msra.mxu1 %v8638_v19  ;;  %4613 = vmatprep.mubr.bf16.mxu1 %v10276_v25  ;;  %v8703_v19 = vld [vmem:[%s12061_s3 + $0x634] ss:$28 sps:$4 sm:$0xff]  }
 0x2e2   :  { %4583 = vmatprep.subr.bf16.mxu1 %v8646_v23  ;;  %v8706_v59 = vld [vmem:[%s12061_s3 + $0x9b4] ss:$28 sps:$4 sm:$0xff]  }
 0x2e3   :  { %4543 = vmatpush1.bf16.msra.mxu0 %v8641_v55  ;;  %v4251_v63 = vpop.f32.mrf.mxu0 }
 0x2e4   :  { %4544 = vmatprep.subr.bf16.mxu0 %v8649_v58  ;;  %v8701_v58 = vld [vmem:[%s12061_s3 + $0x630] ss:$28 sps:$4 sm:$0xff]   ;;  %v8707_v63 = vld [vmem:[%s12061_s3 + $0x5f8] ss:$28 sps:$4 sm:$0xff]  }
 0x2e5   :  { %4584 = vmatpush1.bf16.msra.mxu1 %v8644_v60  ;;  %v8709_v60 = vld [vmem:[%s12061_s3 + $0x5fc] ss:$28 sps:$4 sm:$0xff]  }
 0x2e6   :  { %4585 = vmatprep.subr.bf16.mxu1 %v8652_v5  ;;  %v8710_v5 = vld [vmem:[%s12061_s3 + $0x978] ss:$28 sps:$4 sm:$0xff]  }
 0x2e7   :  { %4545 = vmatpush1.bf16.msra.mxu0 %v8647_v4  ;;  %v8712_v4 = vld [vmem:[%s12061_s3 + $0x97c] ss:$28 sps:$4 sm:$0xff]  }
 0x2e8   :  { %4546 = vmatprep.subr.bf16.mxu0 %v8655_v7  ;;  %v8715_v7 = vld [vmem:[%s12061_s3 + $0x5c4] ss:$28 sps:$4 sm:$0xff]  }
 0x2e9   :  { %4586 = vmatpush1.bf16.msra.mxu1 %v8650_v8  ;;  %v8713_v8 = vld [vmem:[%s12061_s3 + $0x5c0] ss:$28 sps:$4 sm:$0xff]  }
 0x2ea   :  { %4587 = vmatprep.subr.bf16.mxu1 %v8658_v11  ;;  %v8716_v11 = vld [vmem:[%s12061_s3 + $0x940] ss:$28 sps:$4 sm:$0xff]  }
 0x2eb   :  { %4547 = vmatpush1.bf16.msra.mxu0 %v8653_v10  ;;  %v8718_v10 = vld [vmem:[%s12061_s3 + $0x944] ss:$28 sps:$4 sm:$0xff]  }
 0x2ec   :  { %4548 = vmatprep.subr.bf16.mxu0 %v8661_v50  ;;  %v8721_v50 = vld [vmem:[%s12061_s3 + $0x58c] ss:$28 sps:$4 sm:$0xff]  }
 0x2ed   :  { %4588 = vmatpush1.bf16.msra.mxu1 %v8656_v12  ;;  %v8719_v12 = vld [vmem:[%s12061_s3 + $0x588] ss:$28 sps:$4 sm:$0xff]  }
 0x2ee   :  { %4589 = vmatprep.subr.bf16.mxu1 %v8664_v14  ;;  %v8722_v14 = vld [vmem:[%s12061_s3 + $0x908] ss:$28 sps:$4 sm:$0xff]  }
 0x2ef   :  { %4549 = vmatpush1.bf16.msra.mxu0 %v8659_v13  ;;  %v8724_v13 = vld [vmem:[%s12061_s3 + $0x90c] ss:$28 sps:$4 sm:$0xff]  }
 0x2f0   :  { %4550 = vmatprep.subr.bf16.mxu0 %v8667_v15  ;;  %v8727_v15 = vld [vmem:[%s12061_s3 + $0x554] ss:$28 sps:$4 sm:$0xff]  }
 0x2f1   :  { %4590 = vmatpush1.bf16.msra.mxu1 %v8662_v16  ;;  %v8725_v16 = vld [vmem:[%s12061_s3 + $0x550] ss:$28 sps:$4 sm:$0xff]  }
 0x2f2   :  { %4591 = vmatprep.subr.bf16.mxu1 %v8670_v18  ;;  %v8728_v18 = vld [vmem:[%s12061_s3 + $0x8d0] ss:$28 sps:$4 sm:$0xff]  }
 0x2f3   :  { %4551 = vmatpush1.bf16.msra.mxu0 %v8665_v17  ;;  %v8730_v17 = vld [vmem:[%s12061_s3 + $0x8d4] ss:$28 sps:$4 sm:$0xff]  }
 0x2f4   :  { %4552 = vmatprep.subr.bf16.mxu0 %v8673_v21  ;;  %v8733_v21 = vld [vmem:[%s12061_s3 + $0xc1c] ss:$28 sps:$4 sm:$0xff]  }
 0x2f5   :  { %4592 = vmatpush1.bf16.msra.mxu1 %v8668_v24  ;;  %v8731_v24 = vld [vmem:[%s12061_s3 + $0xc18] ss:$28 sps:$4 sm:$0xff]  }
 0x2f6   :  { %4593 = vmatprep.subr.bf16.mxu1 %v8676_v27  ;;  %v8737_v27 = vld [vmem:[%s12061_s3 + $0xbe4] ss:$28 sps:$4 sm:$0xff]  }
 0x2f7   :  { %4553 = vmatpush1.bf16.msra.mxu0 %v8671_v36  ;;  %v8734_v36 = vld [vmem:[%s12061_s3 + $0x6e0] ss:$28 sps:$4 sm:$0xff]  }
 0x2f8   :  { %4554 = vmatprep.subr.bf16.mxu0 %v8679_v28  ;;  %v8738_v28 = vld [vmem:[%s12061_s3 + $0x520] ss:$28 sps:$4 sm:$0xff]  }
 0x2f9   :  { %4594 = vmatpush1.bf16.msra.mxu1 %v8674_v30  ;;  %v8735_v30 = vld [vmem:[%s12061_s3 + $0xbe0] ss:$28 sps:$4 sm:$0xff]  }
 0x2fa   :  { %4595 = vmatprep.subr.bf16.mxu1 %v8682_v34 }
 0x2fb   :  { %4555 = vmatpush1.bf16.msra.mxu0 %v8677_v31  ;;  %v8739_v31 = vld [vmem:[%s12061_s3 + $0x6a8] ss:$28 sps:$4 sm:$0xff]  }
 0x2fc   :  { %4556 = vmatprep.subr.bf16.mxu0 %v8685_v35 }
 0x2fd   :  { %4596 = vmatpush1.bf16.msra.mxu1 %v8680_v37 }
 0x2fe   :  { %4597 = vmatprep.subr.bf16.mxu1 %v8688_v41  ;;  %v8740_v41 = vld [vmem:[%s12061_s3 + $0xba8] ss:$28 sps:$4 sm:$0xff]  }
 0x2ff   :  { %4557 = vmatpush2.bf16.msra.mxu0 %v8683_v38  ;;  %v8742_v38 = vld [vmem:[%s12061_s3 + $0xbac] ss:$28 sps:$4 sm:$0xff]  }
 0x300   :  { %4558 = vmatprep.subr.bf16.mxu0 %v8691_v43  ;;  %v4287_v48 = vpop.f32.mrf.mxu1  ;;  %v8744_v43 = vld [vmem:[%s12061_s3 + $0x670] ss:$28 sps:$4 sm:$0xff]  }
 0x301   :  { %v10865_v51 = vadd.f32 %v4287_v48, %v10742_v54  ;;  %4598 = vmatpush2.bf16.msra.mxu1 %v8686_v42  ;;  %v8698_v54 = vld [vmem:[%s12061_s3 + $0x9e8] ss:$28 sps:$4 sm:$0xff]   ;;  %v8745_v48 = vld [vmem:[%s12061_s3 + $0xb70] ss:$28 sps:$4 sm:$0xff]  }
 0x302   :  { %v4289_v39 = vpop.f32.mrf.mxu1  ;;  %4599 = vmatprep.subr.bf16.mxu1 %v8694_v45  ;;  %v8743_v42 = vld [vmem:[%s12061_s3 + $0x4e8] ss:$28 sps:$4 sm:$0xff]  }
 0x303   :  { %4559 = vmatpush2.bf16.msra.mxu0 %v8689_v44  ;;  %v10874_v32 = vadd.f32 %v4289_v39, %v10755_v57  ;;  %v8704_v57 = vld [vmem:[%s12061_s3 + $0x9b0] ss:$28 sps:$4 sm:$0xff]   ;;  %v8750_v39 = vld [vmem:[%s12061_s3 + $0xb38] ss:$28 sps:$4 sm:$0xff]  }
 0x304   :  { %4560 = vmatprep.subr.bf16.mxu0 %v8697_v46  ;;  %v4291_v55 = vpop.f32.mrf.mxu1  ;;  %v8747_v46 = vld [vmem:[%s12061_s3 + $0xb74] ss:$28 sps:$4 sm:$0xff]  }
 0x305   :  { %4600 = vmatpush2.bf16.msra.mxu1 %v8692_v47  ;;  %v8748_v47 = vld [vmem:[%s12061_s3 + $0x4b0] ss:$28 sps:$4 sm:$0xff]   ;;  %v8755_v55 = vld [vmem:[%s12061_s3 + $0xb00] ss:$28 sps:$4 sm:$0xff]  }
 0x306   :  { %v4292_v23 = vpop.f32.mrf.mxu1  ;;  %4601 = vmatprep.subr.bf16.mxu1 %v8700_v53  ;;  %v8754_v53 = vld [vmem:[%s12061_s3 + $0x600] ss:$28 sps:$4 sm:$0xff]  }
 0x307   :  { %4561 = vmatpush2.bf16.msra.mxu0 %v8695_v49  ;;  %v8752_v49 = vld [vmem:[%s12061_s3 + $0xb3c] ss:$28 sps:$4 sm:$0xff]   ;;  %v8759_v23 = vld [vmem:[%s12061_s3 + $0x5c8] ss:$28 sps:$4 sm:$0xff]  }
 0x308   :  { %4562 = vmatprep.subr.bf16.mxu0 %v8703_v19  ;;  %v8757_v19 = vld [vmem:[%s12061_s3 + $0xb04] ss:$28 sps:$4 sm:$0xff]  }
 0x309   :  { %4602 = vmatpush2.bf16.msra.mxu1 %v8698_v54  ;;  %v8758_v54 = vld [vmem:[%s12061_s3 + $0x440] ss:$28 sps:$4 sm:$0xff]  }
 0x30a   :  { %4603 = vmatprep.subr.bf16.mxu1 %v8706_v59  ;;  %v8763_v59 = vld [vmem:[%s12061_s3 + $0x408] ss:$28 sps:$4 sm:$0xff]  }
 0x30b   :  { %4563 = vmatpush2.bf16.msra.mxu0 %v8701_v58  ;;  %v8762_v58 = vld [vmem:[%s12061_s3 + $0xacc] ss:$28 sps:$4 sm:$0xff]  }
 0x30c   :  { %4564 = vmatprep.subr.bf16.mxu0 %v8709_v60  ;;  %v8764_v60 = vld [vmem:[%s12061_s3 + $0x590] ss:$28 sps:$4 sm:$0xff]  }
 0x30d   :  { %4604 = vmatpush2.bf16.msra.mxu1 %v8704_v57  ;;  %v8760_v57 = vld [vmem:[%s12061_s3 + $0xac8] ss:$28 sps:$4 sm:$0xff]  }
 0x30e   :  { %4605 = vmatprep.subr.bf16.mxu1 %v8712_v4  ;;  %v8768_v4 = vld [vmem:[%s12061_s3 + $0x3d0] ss:$28 sps:$4 sm:$0xff]  }
 0x30f   :  { %4565 = vmatpush2.bf16.msra.mxu0 %v8707_v63  ;;  %v8767_v63 = vld [vmem:[%s12061_s3 + $0xa94] ss:$28 sps:$4 sm:$0xff]  }
 0x310   :  { %4566 = vmatprep.subr.bf16.mxu0 %v8715_v7  ;;  %v8769_v7 = vld [vmem:[%s12061_s3 + $0x558] ss:$28 sps:$4 sm:$0xff]  }
 0x311   :  { %4606 = vmatpush2.bf16.msra.mxu1 %v8710_v5  ;;  %v8765_v5 = vld [vmem:[%s12061_s3 + $0xa90] ss:$28 sps:$4 sm:$0xff]  }
 0x312   :  { %4607 = vmatprep.subr.bf16.mxu1 %v8718_v10  ;;  %v8771_v10 = vld [vmem:[%s12061_s3 + $0x398] ss:$28 sps:$4 sm:$0xff]  }
 0x313   :  { %4567 = vmatpush2.bf16.msra.mxu0 %v8713_v8  ;;  %v8770_v8 = vld [vmem:[%s12061_s3 + $0x360] ss:$28 sps:$4 sm:$0xff]  }
 0x314   :  { %4568 = vmatprep.subr.bf16.mxu0 %v8721_v50  ;;  %v8773_v50 = vld [vmem:[%s12061_s3 + $0x328] ss:$28 sps:$4 sm:$0xff]  }
 0x315   :  { %4608 = vmatpush2.bf16.msra.mxu1 %v8716_v11  ;;  %v8772_v11 = vld [vmem:[%s12061_s3 + $0x1a0] ss:$28 sps:$4 sm:$0xff]  }
 0x316   :  { %4609 = vmatprep.subr.bf16.mxu1 %v8724_v13  ;;  %v8775_v13 = vld [vmem:[%s12061_s3 + $0x168] ss:$28 sps:$4 sm:$0xff]  }
 0x317   :  { %4569 = vmatpush2.bf16.msra.mxu0 %v8719_v12  ;;  %v8774_v12 = vld [vmem:[%s12061_s3 + $0xc20] ss:$28 sps:$4 sm:$0xff]  }
 0x318   :  { %4570 = vmatprep.subr.bf16.mxu0 %v8727_v15  ;;  %v8777_v15 = vld [vmem:[%s12061_s3 + $0xbe8] ss:$28 sps:$4 sm:$0xff]  }
 0x319   :  { %4610 = vmatpush2.bf16.msra.mxu1 %v8722_v14  ;;  %v8776_v14 = vld [vmem:[%s12061_s3 + $0x2f0] ss:$28 sps:$4 sm:$0xff]  }
 0x31a   :  { %4611 = vmatprep.subr.bf16.mxu1 %v8730_v17  ;;  %v8778_v17 = vld [vmem:[%s12061_s3 + $0x130] ss:$28 sps:$4 sm:$0xff]  }
 0x31b   :  { %4571 = vmatpush2.bf16.msra.mxu0 %v8725_v16 }
 0x31c   :  { %4622 = vmatprep.subr.bf16.mxu0 %v8733_v21 }
 0x31d   :  { %4612 = vmatpush2.bf16.msra.mxu1 %v8728_v18 }
 0x31e   :  { %4573 = vmatmul.mubr.bf16.vlgmr.msra.gmra.mxu0 %v10216_v40  ;;  %v4328_v34 = vpop.f32.mrf.mxu0  ;;  %7855 = vmatprep.subr.bf16.mxu1 %v8734_v36  ;;  %v8782_v36 = vld [vmem:[%s12061_s3 + $0x280] ss:$28 sps:$4 sm:$0xff]  }
 0x31f   :  { %v10959_v35 = vadd.f32 %v4328_v34, %v10865_v51  ;;  %4623 = vmatpush1.bf16.msra.mxu0 %v8731_v24  ;;  %4654 = vmatprep.mubr.bf16.mxu0 %v9266_v3  ;;  %v8753_v51 = vld [vmem:[%s12061_s3 + $0x478] ss:$28 sps:$4 sm:$0xff]   ;;  %v8786_v34 = vld [vmem:[%s12061_s3 + $0xb40] ss:$28 sps:$4 sm:$0xff]  }
 0x320   :  { %v10961_v37 = vpop.f32.mrf.mxu0  ;;  %4624 = vmatprep.subr.bf16.mxu0 %v8737_v27  ;;  %4614 = vmatmul.mubr.bf16.vlgmr.msra.gmra.mxu1 %v10281_v26  ;;  %v8781_v24 = vld [vmem:[%s12061_s3 + $0xf8] ss:$28 sps:$4 sm:$0xff]  }
 0x321   :  { %7856 = vmatpush3.bf16.msra.mxu1 %v8738_v28  ;;  %4735 = vmatprep.mubr.bf16.mxu1 %v10205_v33  ;;  %v8749_v33 = vld [vmem:[%s12061_s3 + $0x638] ss:$28 sps:$4 sm:$0xff]  }
 0x322   :  { %v4332_v44 = vpop.f32.mrf.mxu0  ;;  %7857 = vmatprep.subr.bf16.mxu1 %v8739_v31  ;;  %v8783_v28 = vld [vmem:[%s12061_s3 + $0xb78] ss:$28 sps:$4 sm:$0xff]   ;;  %v8785_v31 = vld [vmem:[%s12061_s3 + $0x248] ss:$28 sps:$4 sm:$0xff]  }
 0x323   :  { %4625 = vmatpush1.bf16.msra.mxu0 %v8735_v30  ;;  %v8784_v30 = vld [vmem:[%s12061_s3 + $0xc0] ss:$28 sps:$4 sm:$0xff]   ;;  %v8791_v44 = vld [vmem:[%s12061_s3 + $0x1d8] ss:$28 sps:$4 sm:$0xff]  }
 0x324   :  { %v4333_v45 = vpop.f32.mrf.mxu0  ;;  %4626 = vmatprep.subr.bf16.mxu0 %v8742_v38  ;;  %v11104_v38 = vadd.f32 %v10961_v37, %v10874_v32  ;;  %v8790_v37 = vld [vmem:[%s12061_s3 + $0x50] ss:$28 sps:$4 sm:$0xff]  }
 0x325   :  { %7858 = vmatpush3.bf16.msra.mxu1 %v8743_v42  ;;  %v8788_v42 = vld [vmem:[%s12061_s3 + $0x210] ss:$28 sps:$4 sm:$0xff]  }
 0x326   :  { %7859 = vmatprep.subr.bf16.mxu1 %v8744_v43  ;;  %v8789_v43 = vld [vmem:[%s12061_s3 + $0xb08] ss:$28 sps:$4 sm:$0xff]   ;;  %v7532_v32 = vmul.f32 -1.442695, %v11104_v38  ;;  %v8792_v45 = vld [vmem:[%s12061_s3 + $0xad0] ss:$28 sps:$4 sm:$0xff]  }
 0x327   :  { %4627 = vmatpush1.bf16.msra.mxu0 %v8740_v41  ;;  %v8787_v41 = vld [vmem:[%s12061_s3 + $0x88] ss:$28 sps:$4 sm:$0xff]  }
 0x328   :  { %4628 = vmatprep.subr.bf16.mxu0 %v8747_v46  ;;  %9219 = vpow2.f32 %v7532_v32  ;;  %v8793_v46 = vld [vmem:[%s12061_s3 + $0x18] ss:$28 sps:$4 sm:$0xff]   ;;  %v8865_v32 = vld [vmem:[%s12062_s4 + $0x200] ss:$16 sps:$4 sm:$0xff]  }
 0x329   :  { %7860 = vmatpush3.bf16.msra.mxu1 %v8748_v47  ;;  %v8794_v47 = vld [vmem:[%s12061_s3 + $0xa60] ss:$28 sps:$4 sm:$0xff]  }
 0x32a   :  { %7861 = vmatprep.subr.bf16.mxu1 %v8749_v33  ;;  %v8796_v33 = vld [vmem:[%s12061_s3 + $0x8a0] ss:$28 sps:$4 sm:$0xff]  }
 0x32b   :  { %4629 = vmatpush1.bf16.msra.mxu0 %v8745_v48  ;;  %v8795_v48 = vld [vmem:[%s12061_s3 + $0xa98] ss:$28 sps:$4 sm:$0xff]  }
 0x32c   :  { %4630 = vmatprep.subr.bf16.mxu0 %v8752_v49  ;;  %v8797_v49 = vld [vmem:[%s12061_s3 + $0xa28] ss:$28 sps:$4 sm:$0xff]  }
 0x32d   :  { %7862 = vmatpush3.bf16.msra.mxu1 %v8753_v51  ;;  %v8825_v51 = vld [vmem:[%s12062_s4 + $0x2e4] ss:$16 sps:$4 sm:$0xff]  }
 0x32e   :  { %7863 = vmatprep.subr.bf16.mxu1 %v8754_v53  ;;  %v8823_v53 = vld [vmem:[%s12062_s4 + $0x2e0] ss:$16 sps:$4 sm:$0xff]  }
 0x32f   :  { %4631 = vmatpush1.bf16.msra.mxu0 %v8750_v39 }
 0x330   :  { %4632 = vmatprep.subr.bf16.mxu0 %v8757_v19  ;;  %v8831_v19 = vld [vmem:[%s12062_s4 + $0x2c4] ss:$16 sps:$4 sm:$0xff]  }
 0x331   :  { %7864 = vmatpush3.bf16.msra.mxu1 %v8758_v54 }
 0x332   :  { %7865 = vmatprep.subr.bf16.mxu1 %v8759_v23 }
 0x333   :  { %4633 = vmatpush1.bf16.msra.mxu0 %v8755_v55 }
 0x334   :  { %4634 = vmatprep.subr.bf16.mxu0 %v8762_v58  ;;  %v8829_v58 = vld [vmem:[%s12062_s4 + $0x2c0] ss:$16 sps:$4 sm:$0xff]  }
 0x335   :  { %7866 = vmatpush3.bf16.msra.mxu1 %v8763_v59 }
 0x336   :  { %7867 = vmatprep.subr.bf16.mxu1 %v8764_v60  ;;  %v8837_v60 = vld [vmem:[%s12062_s4 + $0x2a4] ss:$16 sps:$4 sm:$0xff]  }
 0x337   :  { %4635 = vmatpush1.bf16.msra.mxu0 %v8760_v57  ;;  %v8800_v57 = vld [vmem:[%s12061_s3 + $0x830] ss:$28 sps:$4 sm:$0xff]  }
 0x338   :  { %4636 = vmatprep.subr.bf16.mxu0 %v8767_v63  ;;  %v8801_v63 = vld [vmem:[%s12061_s3 + $0x9b8] ss:$28 sps:$4 sm:$0xff]  }
 0x339   :  { %7868 = vmatpush3.bf16.msra.mxu1 %v8768_v4 }
 0x33a   :  { %7869 = vmatprep.subr.bf16.mxu1 %v8769_v7  ;;  %v8835_v7 = vld [vmem:[%s12062_s4 + $0x2a0] ss:$16 sps:$4 sm:$0xff]  }
 0x33b   :  { %4637 = vmatpush1.bf16.msra.mxu0 %v8765_v5 }
 0x33c   :  { %7833 = vmatprep.subr.bf16.mxu0 %v8770_v8 }
 0x33d   :  { %7870 = vmatpush3.bf16.msra.mxu1 %v8771_v10  ;;  %v8802_v10 = vld [vmem:[%s12061_s3 + $0x7f8] ss:$28 sps:$4 sm:$0xff]  }
 0x33e   :  { %4655 = vmatmul.mubr.bf16.vlgmr.msra.gmra.mxu0 %v10331_v52  ;;  %7980 = vmatprep.subr.bf16.mxu1 %v9264_v0 }
 0x33f   :  { %7834 = vmatpush3.bf16.msra.mxu0 %v8772_v11  ;;  %4695 = vmatprep.mubr.bf16.mxu0 %v10092_v20  ;;  %v8779_v20 = vld [vmem:[%s12061_s3 + $0x2b8] ss:$28 sps:$4 sm:$0xff]  }
 0x340   :  { %7835 = vmatprep.subr.bf16.mxu0 %v8773_v50  ;;  %v11065_v16 = vpop.f32.mrf.mxu1  ;;  %4736 = vmatmul.mubr.bf16.vlgmr.msra.gmra.mxu1 %v10216_v40  ;;  %v8780_v40 = vld [vmem:[%s12061_s3 + $0xbb0] ss:$28 sps:$4 sm:$0xff]   ;;  %v8843_v11 = vld [vmem:[%s12062_s4 + $0x284] ss:$16 sps:$4 sm:$0xff]   ;;  %v8803_v50 = vld [vmem:[%s12061_s3 + $0x980] ss:$28 sps:$4 sm:$0xff]  }
 0x341   :  { %7981 = vmatpush3.bf16.msra.mxu1 %v8774_v12  ;;  %7996 = vmatprep.mubr.msk.bf16.mxu1 %vm9265_vm0, %v9264_v0  ;;  %v8841_v12 = vld [vmem:[%s12062_s4 + $0x280] ss:$16 sps:$4 sm:$0xff]  }
 0x342   :  { %v11076_v18 = vpop.f32.mrf.mxu1  ;;  %7982 = vmatprep.subr.bf16.mxu1 %v9264_v0 }
 0x343   :  { %7836 = vmatpush3.bf16.msra.mxu0 %v8775_v13  ;;  %v8804_v13 = vld [vmem:[%s12061_s3 + $0x7c0] ss:$28 sps:$4 sm:$0xff]  }
 0x344   :  { %7837 = vmatprep.subr.bf16.mxu0 %v8776_v14  ;;  %v4414_v21 = vpop.f32.mrf.mxu1  ;;  %v8849_v14 = vld [vmem:[%s12062_s4 + $0x264] ss:$16 sps:$4 sm:$0xff]  }
 0x345   :  { %7983 = vmatpush3.bf16.msra.mxu1 %v8777_v15  ;;  %v8805_v15 = vld [vmem:[%s12061_s3 + $0x948] ss:$28 sps:$4 sm:$0xff]   ;;  %v8807_v21 = vld [vmem:[%s12061_s3 + $0x910] ss:$28 sps:$4 sm:$0xff]  }
 0x346   :  { %v4415_v27 = vpop.f32.mrf.mxu1  ;;  %7984 = vmatprep.subr.bf16.mxu1 %v9264_v0 }
 0x347   :  { %7838 = vmatpush3.bf16.msra.mxu0 %v8778_v17  ;;  %v8847_v17 = vld [vmem:[%s12062_s4 + $0x260] ss:$16 sps:$4 sm:$0xff]   ;;  %v8861_v27 = vld [vmem:[%s12062_s4 + $0x224] ss:$16 sps:$4 sm:$0xff]  }
 0x348   :  { %7839 = vmatprep.subr.bf16.mxu0 %v8779_v20  ;;  %v8806_v20 = vld [vmem:[%s12061_s3 + $0x788] ss:$28 sps:$4 sm:$0xff]  }
 0x349   :  { %7985 = vmatpush3.bf16.msra.mxu1 %v8780_v40  ;;  %v8855_v40 = vld [vmem:[%s12062_s4 + $0x244] ss:$16 sps:$4 sm:$0xff]  }
 0x34a   :  { %7986 = vmatprep.subr.bf16.mxu1 %v9264_v0 }
 0x34b   :  { %7840 = vmatpush3.bf16.msra.mxu0 %v8781_v24  ;;  %v8853_v24 = vld [vmem:[%s12062_s4 + $0x240] ss:$16 sps:$4 sm:$0xff]  }
 0x34c   :  { %7841 = vmatprep.subr.bf16.mxu0 %v8782_v36  ;;  %v8808_v36 = vld [vmem:[%s12061_s3 + $0x750] ss:$28 sps:$4 sm:$0xff]  }
 0x34d   :  { %7987 = vmatpush3.bf16.msra.mxu1 %v8783_v28  ;;  %v8809_v28 = vld [vmem:[%s12061_s3 + $0x8d8] ss:$28 sps:$4 sm:$0xff]  }
 0x34e   :  { %7988 = vmatprep.subr.bf16.mxu1 %v9264_v0 }
 0x34f   :  { %7842 = vmatpush3.bf16.msra.mxu0 %v8784_v30 }
 0x350   :  { %7843 = vmatprep.subr.bf16.mxu0 %v8785_v31  ;;  %v8859_v31 = vld [vmem:[%s12062_s4 + $0x220] ss:$16 sps:$4 sm:$0xff]  }
 0x351   :  { %7989 = vmatpush3.bf16.msra.mxu1 %v8786_v34  ;;  %v8810_v34 = vld [vmem:[%s12061_s3 + $0x718] ss:$28 sps:$4 sm:$0xff]  }
 0x352   :  { %7990 = vmatprep.subr.bf16.mxu1 %v9264_v0 }
 0x353   :  { %7844 = vmatpush3.bf16.msra.mxu0 %v8787_v41  ;;  %v8867_v41 = vld [vmem:[%s12062_s4 + $0x204] ss:$16 sps:$4 sm:$0xff]  }
 0x354   :  { %7845 = vmatprep.subr.bf16.mxu0 %v8788_v42  ;;  %v8813_v42 = vld [vmem:[%s12062_s4 + $0xe4] ss:$16 sps:$4 sm:$0xff]  }
 0x355   :  { %7991 = vmatpush3.bf16.msra.mxu1 %v8789_v43 }
 0x356   :  { %7992 = vmatprep.subr.bf16.mxu1 %v9264_v0 }
 0x357   :  { %7846 = vmatpush3.bf16.msra.mxu0 %v8790_v37  ;;  %v8811_v37 = vld [vmem:[%s12062_s4 + $0xe0] ss:$16 sps:$4 sm:$0xff]  }
 0x358   :  { %7847 = vmatprep.subr.bf16.mxu0 %v8791_v44  ;;  %v8816_v44 = vld [vmem:[%s12062_s4 + $0xc4] ss:$16 sps:$4 sm:$0xff]  }
 0x359   :  { %7993 = vmatpush3.bf16.msra.mxu1 %v8792_v45 }
 0x35a   :  { %7994 = vmatprep.subr.bf16.mxu1 %v9264_v0  ;;  %v8798_v0 = vld [vmem:[%s12061_s3 + $0x868] ss:$28 sps:$4 sm:$0xff]  }
 0x35b   :  { %7848 = vmatpush3.bf16.msra.mxu0 %v8793_v46  ;;  %v8871_v46 = vld [vmem:[%s12062_s4 + $0x3e0] ss:$16 sps:$4 sm:$0xff]  }
 0x35c   :  { %7877 = vmatprep.subr.bf16.mxu0 %v8794_v47  ;;  %v8814_v47 = vld [vmem:[%s12062_s4 + $0xc0] ss:$16 sps:$4 sm:$0xff]  }
 0x35d   :  { %7995 = vmatpush3.bf16.msra.mxu1 %v8795_v48  ;;  %v8879_v48 = vld [vmem:[%s12062_s4 + $0x3c4] ss:$16 sps:$4 sm:$0xff]  }
 0x35e   :  { %v11147_v39 = vpop.f32.mrf.mxu0  ;;  %4696 = vmatmul.mubr.bf16.vlgmr.msra.gmra.mxu0 %v10097_v22  ;;  %v8799_v22 = vld [vmem:[%s12061_s3 + $0x9f0] ss:$28 sps:$4 sm:$0xff]   ;;  %6286 = vmatprep.subr.bf16.mxu1 %v8825_v51  ;;  %v8885_v51 = vld [vmem:[%s12062_s4 + $0x3a4] ss:$16 sps:$4 sm:$0xff]  }
 0x35f   :  { %7878 = vmatpush3.bf16.msra.mxu0 %v8796_v33  ;;  %4775 = vmatprep.mubr.bf16.mxu0 %v10276_v25  ;;  %v9220_v25 = vpop.eup %9219  ;;  %v8877_v33 = vld [vmem:[%s12062_s4 + $0x3c0] ss:$16 sps:$4 sm:$0xff]  }
 0x360   :  { %v11160_v54 = vpop.f32.mrf.mxu0  ;;  %7879 = vmatprep.subr.bf16.mxu0 %v8797_v49  ;;  %v11165_v55 = vpop.f32.mrf.mxu1  ;;  %7997 = vmatmul.mubr.bf16.vlgmr.msra.gmra.mxu1 %v10331_v52  ;;  %v4845_v4 = vadd.f32 1.0, %v9220_v25  ;;  %v8817_v49 = vld [vmem:[%s12062_s4 + $0xa0] ss:$16 sps:$4 sm:$0xff]   ;;  %v8828_v25 = vld [vmem:[%s12062_s4 + $0x64] ss:$16 sps:$4 sm:$0xff]  }
 0x361   :  { %6287 = vmatpush1.bf16.msra.mxu1 %v8823_v53  ;;  %v8822_v53 = vld [vmem:[%s12062_s4 + $0x84] ss:$16 sps:$4 sm:$0xff]  }
 0x362   :  { %v4373_v23 = vpop.f32.mrf.mxu0  ;;  %v11171_v59 = vpop.f32.mrf.mxu1  ;;  %6288 = vmatprep.subr.bf16.mxu1 %v8831_v19  ;;  %9221 = vrcp.f32 %v4845_v4  ;;  %v8820_v19 = vld [vmem:[%s12062_s4 + $0x80] ss:$16 sps:$4 sm:$0xff]   ;;  %v8900_v4 = vld [vmem:[%s12062_s4 + $0x344] ss:$16 sps:$4 sm:$0xff]  }
 0x363   :  { %7880 = vmatpush3.bf16.msra.mxu0 %v8798_v0  ;;  %v8883_v0 = vld [vmem:[%s12062_s4 + $0x3a0] ss:$16 sps:$4 sm:$0xff]  }
 0x364   :  { %v4374_v52 = vpop.f32.mrf.mxu0  ;;  %7881 = vmatprep.subr.bf16.mxu0 %v8799_v22  ;;  %v4496_v5 = vpop.f32.mrf.mxu1  ;;  %v8891_v22 = vld [vmem:[%s12062_s4 + $0x384] ss:$16 sps:$4 sm:$0xff]   ;;  %v8889_v23 = vld [vmem:[%s12062_s4 + $0x380] ss:$16 sps:$4 sm:$0xff]  }
 0x365   :  { %6289 = vmatpush1.bf16.msra.mxu1 %v8829_v58  ;;  %v8826_v58 = vld [vmem:[%s12062_s4 + $0x60] ss:$16 sps:$4 sm:$0xff]   ;;  %v7531_v5 = vmul.f32 -1.442695, %v10959_v35 }
 0x366   :  { %v4497_v8 = vpop.f32.mrf.mxu1  ;;  %6290 = vmatprep.subr.bf16.mxu1 %v8837_v60  ;;  %v8834_v60 = vld [vmem:[%s12062_s4 + $0x44] ss:$16 sps:$4 sm:$0xff]   ;;  %v8895_v52 = vld [vmem:[%s12062_s4 + $0x360] ss:$16 sps:$4 sm:$0xff]  }
 0x367   :  { %7882 = vmatpush3.bf16.msra.mxu0 %v8800_v57  ;;  %v8897_v57 = vld [vmem:[%s12062_s4 + $0x364] ss:$16 sps:$4 sm:$0xff]   ;;  %v8898_v8 = vld [vmem:[%s12062_s4 + $0x340] ss:$16 sps:$4 sm:$0xff]   ;;  %9223 = vpow2.f32 %v7531_v5 }
 0x368   :  { %7883 = vmatprep.subr.bf16.mxu0 %v8801_v63  ;;  %v8832_v63 = vld [vmem:[%s12062_s4 + $0x40] ss:$16 sps:$4 sm:$0xff]  }
 0x369   :  { %6291 = vmatpush1.bf16.msra.mxu1 %v8835_v7  ;;  %v8840_v7 = vld [vmem:[%s12062_s4 + $0x24] ss:$16 sps:$4 sm:$0xff]   ;;  %v8892_v5 = vld [vmem:[%s12062_s4 + $0x100] ss:$16 sps:$4 sm:$0xff]  }
 0x36a   :  { %6292 = vmatprep.subr.bf16.mxu1 %v8843_v11  ;;  %v8903_v11 = vld [vmem:[%s12062_s4 + $0x324] ss:$16 sps:$4 sm:$0xff]  }
 0x36b   :  { %7884 = vmatpush3.bf16.msra.mxu0 %v8802_v10  ;;  %v8838_v10 = vld [vmem:[%s12062_s4 + $0x20] ss:$16 sps:$4 sm:$0xff]  }
 0x36c   :  { %7885 = vmatprep.subr.bf16.mxu0 %v8803_v50  ;;  %v8846_v50 = vld [vmem:[%s12062_s4 + $0x4] ss:$16 sps:$4 sm:$0xff]  }
 0x36d   :  { %6293 = vmatpush1.bf16.msra.mxu1 %v8841_v12  ;;  %v11335_v12 = vld [vmem:[%s12060_s6 + $0xa] sm:$0xff] }
 0x36e   :  { %6294 = vmatprep.subr.bf16.mxu1 %v8849_v14  ;;  %v8901_v14 = vld [vmem:[%s12062_s4 + $0x320] ss:$16 sps:$4 sm:$0xff]  }
 0x36f   :  { %7886 = vmatpush3.bf16.msra.mxu0 %v8804_v13  ;;  %v9222_v30 = vpop.eup %9221  ;;  %v2131_v13 = vrot.slane %v11335_v12, %v9487_v62 }
 0x370   :  { %7887 = vmatprep.subr.bf16.mxu0 %v8805_v15  ;;  %v4866_v43 = vmul.f32 %v9222_v30, %v11104_v38  ;;  %v8873_v38 = vld [vmem:[%s12062_s4 + $0x3e4] ss:$16 sps:$4 sm:$0xff]   ;;  %v2135_v15 = vrot.slane %v11335_v12, %v10123_v29 }
 0x371   :  { %6295 = vmatpush1.bf16.msra.mxu1 %v8847_v17  ;;  %v8844_v17 = vld [vmem:[%s12062_s4] ss:$16 sps:$4 sm:$0xff]  }
 0x372   :  { %6296 = vmatprep.subr.bf16.mxu1 %v8855_v40  ;;  %v11255_v45 = vpack.c.bf16 %v4866_v43, %v4866_v43  ;;  %v8852_v40 = vld [vmem:[%s12062_s4 + $0x1e4] ss:$16 sps:$4 sm:$0xff]  }
 0x373   :  { %7888 = vmatpush3.bf16.msra.mxu0 %v8806_v20  ;;  %v8906_v20 = vld [vmem:[%s12062_s4 + $0x304] ss:$16 sps:$4 sm:$0xff]  }
 0x374   :  { %7889 = vmatprep.subr.bf16.mxu0 %v8807_v21  ;;  %v4370_v21 = vadd.f32 %v11147_v39, %v2131_v13  ;;  %v9224_v43 = vpop.eup %9223  ;;  %v8915_v13 = vld [vmem:[%s12062_s4 + $0x4a4] ss:$16 sps:$4 sm:$0xff]  }
 0x375   :  { %6297 = vmatpush1.bf16.msra.mxu1 %v8853_v24  ;;  %v8904_v24 = vld [vmem:[%s12062_s4 + $0x300] ss:$16 sps:$4 sm:$0xff]  }
 0x376   :  { %6298 = vmatprep.subr.bf16.mxu1 %v8861_v27  ;;  %v8850_v27 = vld [vmem:[%s12062_s4 + $0x1e0] ss:$16 sps:$4 sm:$0xff]   ;;  %v4411_v39 = vadd.f32 %v11065_v16, %v4370_v21 }
 0x377   :  { %7890 = vmatpush3.bf16.msra.mxu0 %v8808_v36  ;;  %v4372_v36 = vadd.f32 %v11160_v54, %v2135_v15  ;;  %v8856_v54 = vld [vmem:[%s12062_s4 + $0x1c0] ss:$16 sps:$4 sm:$0xff]  }
 0x378   :  { %7891 = vmatprep.subr.bf16.mxu0 %v8809_v28  ;;  %v8858_v28 = vld [vmem:[%s12062_s4 + $0x1c4] ss:$16 sps:$4 sm:$0xff]   ;;  %v8913_v15 = vld [vmem:[%s12062_s4 + $0x4a0] ss:$16 sps:$4 sm:$0xff]  }
 0x379   :  { %6299 = vmatpush1.bf16.msra.mxu1 %v8859_v31 }
 0x37a   :  { %6300 = vmatprep.subr.bf16.mxu1 %v8867_v41 }
 0x37b   :  { %7892 = vmatpush3.bf16.msra.mxu0 %v8810_v34  ;;  %v4413_v34 = vadd.f32 %v11076_v18, %v4372_v36  ;;  %v8916_v36 = vld [vmem:[%s12062_s4 + $0x480] ss:$16 sps:$4 sm:$0xff]  }
 0x37c   :  { %6245 = vmatprep.subr.bf16.mxu0 %v8813_v42  ;;  %v8864_v42 = vld [vmem:[%s12062_s4 + $0x1a4] ss:$16 sps:$4 sm:$0xff]  }
 0x37d   :  { %6301 = vmatpush1.bf16.msra.mxu1 %v8865_v32 }
 0x37e   :  { %4776 = vmatmul.mubr.bf16.vlgmr.msra.gmra.mxu0 %v10281_v26  ;;  %v8819_v26 = vld [vmem:[%s12062_s4 + $0xa4] ss:$16 sps:$4 sm:$0xff]   ;;  %6302 = vmatprep.subr.bf16.mxu1 %v8873_v38 }
 0x37f   :  { %6246 = vmatpush1.bf16.msra.mxu0 %v8811_v37  ;;  %6277 = vmatprep.mubr.bf16.mxu0 %v11255_v45 }
 0x380   :  { %6247 = vmatprep.subr.bf16.mxu0 %v8816_v44 }
 0x381   :  { %6303 = vmatpush2.bf16.msra.mxu1 %v8871_v46 }
 0x382   :  { %6304 = vmatprep.subr.bf16.mxu1 %v8879_v48  ;;  %v4844_v48 = vadd.f32 1.0, %v9224_v43  ;;  %v8927_v43 = vld [vmem:[%s12062_s4 + $0x424] ss:$16 sps:$4 sm:$0xff]  }
 0x383   :  { %6248 = vmatpush1.bf16.msra.mxu0 %v8814_v47  ;;  %v8862_v47 = vld [vmem:[%s12062_s4 + $0x1a0] ss:$16 sps:$4 sm:$0xff]  }
 0x384   :  { %6249 = vmatprep.subr.bf16.mxu0 %v8819_v26 }
 0x385   :  { %6305 = vmatpush2.bf16.msra.mxu1 %v8877_v33 }
 0x386   :  { %6306 = vmatprep.subr.bf16.mxu1 %v8885_v51 }
 0x387   :  { %6250 = vmatpush1.bf16.msra.mxu0 %v8817_v49 }
 0x388   :  { %6251 = vmatprep.subr.bf16.mxu0 %v8822_v53  ;;  %v8876_v53 = vld [vmem:[%s12062_s4 + $0x164] ss:$16 sps:$4 sm:$0xff]  }
 0x389   :  { %6307 = vmatpush2.bf16.msra.mxu1 %v8883_v0  ;;  %v8874_v0 = vld [vmem:[%s12062_s4 + $0x160] ss:$16 sps:$4 sm:$0xff]  }
 0x38a   :  { %6308 = vmatprep.subr.bf16.mxu1 %v8891_v22  ;;  %v8880_v22 = vld [vmem:[%s12062_s4 + $0x140] ss:$16 sps:$4 sm:$0xff]  }
 0x38b   :  { %6252 = vmatpush1.bf16.msra.mxu0 %v8820_v19  ;;  %v8882_v19 = vld [vmem:[%s12062_s4 + $0x144] ss:$16 sps:$4 sm:$0xff]  }
 0x38c   :  { %6253 = vmatprep.subr.bf16.mxu0 %v8828_v25  ;;  %v8888_v25 = vld [vmem:[%s12062_s4 + $0x124] ss:$16 sps:$4 sm:$0xff]  }
 0x38d   :  { %6309 = vmatpush2.bf16.msra.mxu1 %v8889_v23 }
 0x38e   :  { %6310 = vmatprep.subr.bf16.mxu1 %v8897_v57  ;;  %v8886_v57 = vld [vmem:[%s12062_s4 + $0x120] ss:$16 sps:$4 sm:$0xff]  }
 0x38f   :  { %6254 = vmatpush1.bf16.msra.mxu0 %v8826_v58 }
 0x390   :  { %6255 = vmatprep.subr.bf16.mxu0 %v8834_v60 }
 0x391   :  { %6311 = vmatpush2.bf16.msra.mxu1 %v8895_v52  ;;  %v8894_v52 = vld [vmem:[%s12062_s4 + $0x104] ss:$16 sps:$4 sm:$0xff]  }
 0x392   :  { %6312 = vmatprep.subr.bf16.mxu1 %v8900_v4 }
 0x393   :  { %6256 = vmatpush1.bf16.msra.mxu0 %v8832_v63 }
 0x394   :  { %6257 = vmatprep.subr.bf16.mxu0 %v8840_v7 }
 0x395   :  { %6313 = vmatpush2.bf16.msra.mxu1 %v8898_v8  ;;  %v8909_v8 = vld [vmem:[%s12062_s4 + $0x4e4] ss:$16 sps:$4 sm:$0xff]  }
 0x396   :  { %6314 = vmatprep.subr.bf16.mxu1 %v8903_v11 }
 0x397   :  { %6258 = vmatpush1.bf16.msra.mxu0 %v8838_v10  ;;  %v8907_v10 = vld [vmem:[%s12062_s4 + $0x4e0] ss:$16 sps:$4 sm:$0xff]  }
 0x398   :  { %6259 = vmatprep.subr.bf16.mxu0 %v8846_v50  ;;  %v8912_v50 = vld [vmem:[%s12062_s4 + $0x4c4] ss:$16 sps:$4 sm:$0xff]  }
 0x399   :  { %6315 = vmatpush2.bf16.msra.mxu1 %v8901_v14 }
 0x39a   :  { %6316 = vmatprep.subr.bf16.mxu1 %v8906_v20 }
 0x39b   :  { %6260 = vmatpush1.bf16.msra.mxu0 %v8844_v17 }
 0x39c   :  { %6261 = vmatprep.subr.bf16.mxu0 %v8852_v40  ;;  %v8918_v40 = vld [vmem:[%s12062_s4 + $0x484] ss:$16 sps:$4 sm:$0xff]  }
 0x39d   :  { %6317 = vmatpush2.bf16.msra.mxu1 %v8904_v24 }
 0x39e   :  { %v4451_v30 = vpop.f32.mrf.mxu0 }
 0x39f   :  { %v4452_v31 = vadd.f32 %v4451_v30, %v4411_v39  ;;  %6262 = vmatpush2.bf16.msra.mxu0 %v8850_v27  ;;  %v8984_v39 = vld [vmem:[%s12062_s4 + $0x6e4] ss:$16 sps:$4 sm:$0xff]   ;;  %v8982_v30 = vld [vmem:[%s12062_s4 + $0x6e0] ss:$16 sps:$4 sm:$0xff]  }
 0x3a0   :  { %v4453_v41 = vpop.f32.mrf.mxu0  ;;  %6263 = vmatprep.subr.bf16.mxu0 %v8858_v28  ;;  %v11373_v37 = vpop.f32.mrf.mxu1  ;;  %v8921_v28 = vld [vmem:[%s12062_s4 + $0x464] ss:$16 sps:$4 sm:$0xff]   ;;  %6368 = vmatprep.subr.bf16.mxu1 %v8984_v39  ;;  %v2143_v39 = vrot.slane %v11335_v12, %v411_v9 }
 0x3a1   :  { %v4493_v32 = vadd.f32 %v11165_v55, %v4452_v31  ;;  %v4454_v16 = vadd.f32 %v4453_v41, %v4413_v34  ;;  %v8870_v55 = vld [vmem:[%s12062_s4 + $0x184] ss:$16 sps:$4 sm:$0xff]   ;;  %v8919_v31 = vld [vmem:[%s12062_s4 + $0x460] ss:$16 sps:$4 sm:$0xff]  }
 0x3a2   :  { %v4455_v44 = vpop.f32.mrf.mxu0  ;;  %v11376_v46 = vpop.f32.mrf.mxu1  ;;  %v8924_v34 = vld [vmem:[%s12062_s4 + $0x444] ss:$16 sps:$4 sm:$0xff]   ;;  %v8988_v41 = vld [vmem:[%s12062_s4 + $0x6c0] ss:$16 sps:$4 sm:$0xff]  }
 0x3a3   :  { %v7533_v38 = vmul.f32 -1.442695, %v4493_v32  ;;  %v4495_v18 = vadd.f32 %v11171_v59, %v4454_v16  ;;  %6264 = vmatpush2.bf16.msra.mxu0 %v8856_v54  ;;  %v8868_v59 = vld [vmem:[%s12062_s4 + $0x180] ss:$16 sps:$4 sm:$0xff]   ;;  %v8990_v54 = vld [vmem:[%s12062_s4 + $0x6c4] ss:$16 sps:$4 sm:$0xff]  }
 0x3a4   :  { %v4456_v26 = vpop.f32.mrf.mxu0  ;;  %6265 = vmatprep.subr.bf16.mxu0 %v8864_v42  ;;  %v4537_v49 = vpop.f32.mrf.mxu1  ;;  %v8922_v42 = vld [vmem:[%s12062_s4 + $0x440] ss:$16 sps:$4 sm:$0xff]  }
 0x3a5   :  { %9225 = vpow2.f32 %v7533_v38  ;;  %v7534_v33 = vmul.f32 -1.442695, %v4495_v18  ;;  %v8994_v16 = vld [vmem:[%s12062_s4 + $0x6a0] ss:$16 sps:$4 sm:$0xff]   ;;  %v8930_v38 = vld [vmem:[%s12062_s4 + $0x404] ss:$16 sps:$4 sm:$0xff]  }
 0x3a6   :  { %v4538_v51 = vpop.f32.mrf.mxu1  ;;  %v8925_v44 = vld [vmem:[%s12062_s4 + $0x420] ss:$16 sps:$4 sm:$0xff]   ;;  %v8933_v26 = vld [vmem:[%s12062_s4 + $0x5e4] ss:$16 sps:$4 sm:$0xff]  }
 0x3a7   :  { %9227 = vpow2.f32 %v7534_v33  ;;  %6266 = vmatpush2.bf16.msra.mxu0 %v8862_v47  ;;  %v9000_v47 = vld [vmem:[%s12062_s4 + $0x680] ss:$16 sps:$4 sm:$0xff]   ;;  %v8936_v51 = vld [vmem:[%s12062_s4 + $0x5c4] ss:$16 sps:$4 sm:$0xff]  }
 0x3a8   :  { %9229 = vrcp.f32 %v4844_v48  ;;  %6267 = vmatprep.subr.bf16.mxu0 %v8870_v55  ;;  %v8928_v48 = vld [vmem:[%s12062_s4 + $0x400] ss:$16 sps:$4 sm:$0xff]   ;;  %v9008_v55 = vld [vmem:[%s12062_s4 + $0x664] ss:$16 sps:$4 sm:$0xff]  }
 0x3a9   :  { %v9006_v33 = vld [vmem:[%s12062_s4 + $0x660] ss:$16 sps:$4 sm:$0xff]  }
 0x3aa   :  { %v8931_v49 = vld [vmem:[%s12062_s4 + $0x5e0] ss:$16 sps:$4 sm:$0xff]  }
 0x3ab   :  { %6268 = vmatpush2.bf16.msra.mxu0 %v8868_v59  ;;  %v9014_v59 = vld [vmem:[%s12062_s4 + $0x644] ss:$16 sps:$4 sm:$0xff]  }
 0x3ac   :  { %6269 = vmatprep.subr.bf16.mxu0 %v8876_v53 }
 0x3af   :  { %6270 = vmatpush2.bf16.msra.mxu0 %v8874_v0  ;;  %v9012_v0 = vld [vmem:[%s12062_s4 + $0x640] ss:$16 sps:$4 sm:$0xff]  }
 0x3b0   :  { %6271 = vmatprep.subr.bf16.mxu0 %v8882_v19  ;;  %v8934_v19 = vld [vmem:[%s12062_s4 + $0x5c0] ss:$16 sps:$4 sm:$0xff]  }
 0x3b2   :  { %v9226_v23 = vpop.eup %9225 }
 0x3b3   :  { %v4846_v58 = vadd.f32 1.0, %v9226_v23  ;;  %6272 = vmatpush2.bf16.msra.mxu0 %v8880_v22 }
 0x3b4   :  { %v9228_v60 = vpop.eup %9227  ;;  %6273 = vmatprep.subr.bf16.mxu0 %v8888_v25  ;;  %v8939_v25 = vld [vmem:[%s12062_s4 + $0x5a4] ss:$16 sps:$4 sm:$0xff]  }
 0x3b5   :  { %v9230_v63 = vpop.eup %9229  ;;  %9231 = vrcp.f32 %v4846_v58  ;;  %v4847_v4 = vadd.f32 1.0, %v9228_v60  ;;  %v9020_v58 = vld [vmem:[%s12062_s4 + $0x624] ss:$16 sps:$4 sm:$0xff]   ;;  %v9018_v60 = vld [vmem:[%s12062_s4 + $0x620] ss:$16 sps:$4 sm:$0xff]  }
 0x3b6   :  { %v4865_v7 = vmul.f32 %v9230_v63, %v10959_v35  ;;  %v8910_v35 = vld [vmem:[%s12062_s4 + $0x4c0] ss:$16 sps:$4 sm:$0xff]  }
 0x3b7   :  { %9233 = vrcp.f32 %v4847_v4  ;;  %6274 = vmatpush2.bf16.msra.mxu0 %v8886_v57  ;;  %v8937_v63 = vld [vmem:[%s12062_s4 + $0x5a0] ss:$16 sps:$4 sm:$0xff]  }
 0x3b8   :  { %6275 = vmatprep.subr.bf16.mxu0 %v8894_v52  ;;  %v11418_v11 = vpack.c.bf16 %v4865_v7, %v4865_v7 }
 0x3bb   :  { %6276 = vmatpush2.bf16.msra.mxu0 %v8892_v5  ;;  %v8942_v5 = vld [vmem:[%s12062_s4 + $0x584] ss:$16 sps:$4 sm:$0xff]  }
 0x3bc   :  { %6327 = vmatprep.subr.bf16.mxu0 %v8909_v8  ;;  %v9026_v8 = vld [vmem:[%s12062_s4 + $0x604] ss:$16 sps:$4 sm:$0xff]  }
 0x3be   :  { %6278 = vmatmul.mubr.bf16.vlgmr.msra.gmra.mxu0 %v11418_v11 }
 0x3bf   :  { %6328 = vmatpush1.bf16.msra.mxu0 %v8907_v10  ;;  %v9024_v10 = vld [vmem:[%s12062_s4 + $0x600] ss:$16 sps:$4 sm:$0xff]  }
 0x3c0   :  { %6329 = vmatprep.subr.bf16.mxu0 %v8912_v50 }
 0x3c2   :  { %v9232_v14 = vpop.eup %9231 }
 0x3c3   :  { %6330 = vmatpush1.bf16.msra.mxu0 %v8910_v35  ;;  %v4867_v20 = vmul.f32 %v9232_v14, %v4493_v32  ;;  %v8996_v32 = vld [vmem:[%s12062_s4 + $0x6a4] ss:$16 sps:$4 sm:$0xff]   ;;  %v8940_v35 = vld [vmem:[%s12062_s4 + $0x580] ss:$16 sps:$4 sm:$0xff]   ;;  %v9032_v14 = vld [vmem:[%s12062_s4 + $0xec] ss:$16 sps:$4 sm:$0xff]  }
 0x3c4   :  { %v9234_v17 = vpop.eup %9233  ;;  %6331 = vmatprep.subr.bf16.mxu0 %v8915_v13  ;;  %v8945_v13 = vld [vmem:[%s12062_s4 + $0x564] ss:$16 sps:$4 sm:$0xff]  }
 0x3c5   :  { %v4868_v21 = vmul.f32 %v9234_v17, %v4495_v18  ;;  %v11441_v27 = vpack.c.bf16 %v4867_v20, %v4867_v20  ;;  %v9002_v18 = vld [vmem:[%s12062_s4 + $0x684] ss:$16 sps:$4 sm:$0xff]   ;;  %v8946_v20 = vld [vmem:[%s12062_s4 + $0x540] ss:$16 sps:$4 sm:$0xff]  }
 0x3c6   :  { %v8948_v17 = vld [vmem:[%s12062_s4 + $0x544] ss:$16 sps:$4 sm:$0xff]  }
 0x3c7   :  { %v11436_v24 = vpack.c.bf16 %v4868_v21, %v4868_v21  ;;  %6332 = vmatpush1.bf16.msra.mxu0 %v8913_v15  ;;  %v8943_v15 = vld [vmem:[%s12062_s4 + $0x560] ss:$16 sps:$4 sm:$0xff]   ;;  %v2139_v21 = vrot.slane %v11335_v12, %v407_v6 }
 0x3c8   :  { %6333 = vmatprep.subr.bf16.mxu0 %v8918_v40  ;;  %v8951_v40 = vld [vmem:[%s12062_s4 + $0x524] ss:$16 sps:$4 sm:$0xff]   ;;  %v8952_v6 = vld [vmem:[%s12062_s4 + $0x500] ss:$16 sps:$4 sm:$0xff]  }
 0x3c9   :  { %6318 = vmatprep.mubr.bf16.mxu1 %v11436_v24 }
 0x3ca   :  { %6319 = vmatmul.mubr.bf16.vlgmr.msra.gmra.mxu1 %v11441_v27 }
 0x3cb   :  { %6334 = vmatpush1.bf16.msra.mxu0 %v8916_v36  ;;  %6369 = vmatpush1.bf16.msra.mxu1 %v8982_v30  ;;  %v8949_v36 = vld [vmem:[%s12062_s4 + $0x520] ss:$16 sps:$4 sm:$0xff]   ;;  %v4534_v30 = vadd.f32 %v11373_v37, %v2139_v21 }
 0x3cc   :  { %6335 = vmatprep.subr.bf16.mxu0 %v8921_v28  ;;  %6400 = vmatprep.mubr.bf16.mxu1 %v9266_v3  ;;  %v8954_v28 = vld [vmem:[%s12062_s4 + $0x504] ss:$16 sps:$4 sm:$0xff]  }
 0x3cd   :  { %6370 = vmatprep.subr.bf16.mxu1 %v8990_v54 }
 0x3cf   :  { %6336 = vmatpush1.bf16.msra.mxu0 %v8919_v31  ;;  %6371 = vmatpush1.bf16.msra.mxu1 %v8988_v41  ;;  %v8957_v31 = vld [vmem:[%s12062_s4 + $0x2ec] ss:$16 sps:$4 sm:$0xff]  }
 0x3d0   :  { %6337 = vmatprep.subr.bf16.mxu0 %v8924_v34  ;;  %6372 = vmatprep.subr.bf16.mxu1 %v8996_v32  ;;  %v4536_v34 = vadd.f32 %v11376_v46, %v2143_v39 }
 0x3d3   :  { %6338 = vmatpush1.bf16.msra.mxu0 %v8922_v42  ;;  %6373 = vmatpush1.bf16.msra.mxu1 %v8994_v16 }
 0x3d4   :  { %6339 = vmatprep.subr.bf16.mxu0 %v8927_v43  ;;  %6374 = vmatprep.subr.bf16.mxu1 %v9002_v18 }
 0x3d7   :  { %6340 = vmatpush1.bf16.msra.mxu0 %v8925_v44  ;;  %6375 = vmatpush1.bf16.msra.mxu1 %v9000_v47 }
 0x3d8   :  { %6341 = vmatprep.subr.bf16.mxu0 %v8930_v38  ;;  %6376 = vmatprep.subr.bf16.mxu1 %v9008_v55 }
 0x3db   :  { %6342 = vmatpush1.bf16.msra.mxu0 %v8928_v48  ;;  %6377 = vmatpush1.bf16.msra.mxu1 %v9006_v33 }
 0x3dc   :  { %6343 = vmatprep.subr.bf16.mxu0 %v8933_v26  ;;  %6378 = vmatprep.subr.bf16.mxu1 %v9014_v59 }
 0x3de   :  { %v4574_v53 = vpop.f32.mrf.mxu0 }
 0x3df   :  { %6344 = vmatpush2.bf16.msra.mxu0 %v8931_v49  ;;  %6379 = vmatpush1.bf16.msra.mxu1 %v9012_v0  ;;  %v4575_v54 = vadd.f32 %v4574_v53, %v4534_v30  ;;  %v8973_v30 = vld [vmem:[%s12062_s4 + $0x228] ss:$16 sps:$4 sm:$0xff]  }
 0x3e0   :  { %v4576_v22 = vpop.f32.mrf.mxu0  ;;  %6345 = vmatprep.subr.bf16.mxu0 %v8936_v51  ;;  %v4615_v23 = vpop.f32.mrf.mxu1  ;;  %6380 = vmatprep.subr.bf16.mxu1 %v9020_v58 }
 0x3e1   :  { %v4577_v41 = vadd.f32 %v4576_v22, %v4536_v34  ;;  %v4616_v42 = vadd.f32 %v4615_v23, %v4575_v54  ;;  %v8976_v54 = vld [vmem:[%s12062_s4 + $0x208] ss:$16 sps:$4 sm:$0xff]  }
 0x3e2   :  { %v4578_v57 = vpop.f32.mrf.mxu0  ;;  %v4617_v52 = vpop.f32.mrf.mxu1 }
 0x3e3   :  { %6346 = vmatpush2.bf16.msra.mxu0 %v8934_v19  ;;  %6381 = vmatpush1.bf16.msra.mxu1 %v9018_v60  ;;  %v4618_v43 = vadd.f32 %v4617_v52, %v4577_v41 }
 0x3e4   :  { %v4579_v4 = vpop.f32.mrf.mxu0  ;;  %6347 = vmatprep.subr.bf16.mxu0 %v8939_v25  ;;  %v4619_v7 = vpop.f32.mrf.mxu1  ;;  %6382 = vmatprep.subr.bf16.mxu1 %v9026_v8  ;;  %v8960_v8 = vld [vmem:[%s12062_s4 + $0x2cc] ss:$16 sps:$4 sm:$0xff]  }
 0x3e6   :  { %v4620_v50 = vpop.f32.mrf.mxu1 }
 0x3e7   :  { %6348 = vmatpush2.bf16.msra.mxu0 %v8937_v63  ;;  %6383 = vmatpush1.bf16.msra.mxu1 %v9024_v10  ;;  %v8958_v50 = vld [vmem:[%s12062_s4 + $0x2c8] ss:$16 sps:$4 sm:$0xff]  }
 0x3e8   :  { %6349 = vmatprep.subr.bf16.mxu0 %v8942_v5  ;;  %6409 = vmatprep.subr.bf16.mxu1 %v9032_v14  ;;  %v8955_v5 = vld [vmem:[%s12062_s4 + $0x2e8] ss:$16 sps:$4 sm:$0xff]   ;;  %v8966_v14 = vld [vmem:[%s12062_s4 + $0x28c] ss:$16 sps:$4 sm:$0xff]  }
 0x3eb   :  { %6350 = vmatpush2.bf16.msra.mxu0 %v8940_v35  ;;  %v8963_v35 = vld [vmem:[%s12062_s4 + $0x2ac] ss:$16 sps:$4 sm:$0xff]  }
 0x3ec   :  { %6351 = vmatprep.subr.bf16.mxu0 %v8945_v13  ;;  %v8961_v13 = vld [vmem:[%s12062_s4 + $0x2a8] ss:$16 sps:$4 sm:$0xff]  }
 0x3ef   :  { %6352 = vmatpush2.bf16.msra.mxu0 %v8943_v15  ;;  %v8969_v15 = vld [vmem:[%s12062_s4 + $0x26c] ss:$16 sps:$4 sm:$0xff]  }
 0x3f0   :  { %6353 = vmatprep.subr.bf16.mxu0 %v8948_v17  ;;  %v8967_v17 = vld [vmem:[%s12062_s4 + $0x268] ss:$16 sps:$4 sm:$0xff]  }
 0x3f3   :  { %6354 = vmatpush2.bf16.msra.mxu0 %v8946_v20  ;;  %v8972_v20 = vld [vmem:[%s12062_s4 + $0x24c] ss:$16 sps:$4 sm:$0xff]  }
 0x3f4   :  { %6355 = vmatprep.subr.bf16.mxu0 %v8951_v40  ;;  %v2147_v40 = vrot.slane %v11335_v12, %v415_v56  ;;  %v8978_v56 = vld [vmem:[%s12062_s4 + $0x20c] ss:$16 sps:$4 sm:$0xff]  }
 0x3f7   :  { %6356 = vmatpush2.bf16.msra.mxu0 %v8949_v36  ;;  %v8970_v36 = vld [vmem:[%s12062_s4 + $0x248] ss:$16 sps:$4 sm:$0xff]  }
 0x3f8   :  { %6357 = vmatprep.subr.bf16.mxu0 %v8954_v28  ;;  %v8975_v28 = vld [vmem:[%s12062_s4 + $0x22c] ss:$16 sps:$4 sm:$0xff]  }
 0x3fb   :  { %6358 = vmatpush2.bf16.msra.mxu0 %v8952_v6 }
 0x3fc   :  { %6450 = vmatprep.subr.bf16.mxu0 %v8957_v31 }
 0x3fe   :  { %v4656_v9 = vpop.f32.mrf.mxu0 }
 0x3ff   :  { %v4657_v37 = vadd.f32 %v4656_v9, %v4616_v42  ;;  %v8981_v42 = vld [vmem:[%s12062_s4 + $0x3ec] ss:$16 sps:$4 sm:$0xff]  }
 0x400   :  { %v4658_v32 = vpop.f32.mrf.mxu0  ;;  %v7871_v38 = vpop.f32.mrf.mxu1 }
 0x401   :  { %v7535_v16 = vmul.f32 -1.442695, %v4657_v37  ;;  %v4659_v44 = vadd.f32 %v4658_v32, %v4618_v43  ;;  %v8979_v32 = vld [vmem:[%s12062_s4 + $0x3e8] ss:$16 sps:$4 sm:$0xff]  }
 0x402   :  { %v4660_v18 = vpop.f32.mrf.mxu0  ;;  %v7872_v48 = vpop.f32.mrf.mxu1 }
 0x403   :  { %9235 = vpow2.f32 %v7535_v16  ;;  %v7536_v47 = vmul.f32 -1.442695, %v4659_v44  ;;  %v7873_v12 = vadd.f32 %v7872_v48, %v7871_v38  ;;  %v8987_v16 = vld [vmem:[%s12062_s4 + $0x3cc] ss:$16 sps:$4 sm:$0xff]   ;;  %v8985_v38 = vld [vmem:[%s12062_s4 + $0x3c8] ss:$16 sps:$4 sm:$0xff]  }
 0x404   :  { %v4661_v26 = vpop.f32.mrf.mxu0  ;;  %v7874_v55 = vpop.f32.mrf.mxu1  ;;  %v8993_v18 = vld [vmem:[%s12062_s4 + $0x3ac] ss:$16 sps:$4 sm:$0xff]  }
 0x405   :  { %9237 = vpow2.f32 %v7536_v47  ;;  %v8991_v47 = vld [vmem:[%s12062_s4 + $0x3a8] ss:$16 sps:$4 sm:$0xff]   ;;  %v8999_v48 = vld [vmem:[%s12062_s4 + $0x38c] ss:$16 sps:$4 sm:$0xff]  }
 0x406   :  { %v7875_v46 = vpop.f32.mrf.mxu1  ;;  %v8997_v26 = vld [vmem:[%s12062_s4 + $0x388] ss:$16 sps:$4 sm:$0xff]   ;;  %v9005_v55 = vld [vmem:[%s12062_s4 + $0x36c] ss:$16 sps:$4 sm:$0xff]  }
 0x407   :  { %v9003_v46 = vld [vmem:[%s12062_s4 + $0x368] ss:$16 sps:$4 sm:$0xff]  }
 0x410   :  { %v9236_v33 = vpop.eup %9235 }
 0x411   :  { %v4848_v49 = vadd.f32 1.0, %v9236_v33 }
 0x412   :  { %v9238_v51 = vpop.eup %9237 }
 0x413   :  { %9239 = vrcp.f32 %v4848_v49  ;;  %v4849_v59 = vadd.f32 1.0, %v9238_v51  ;;  %v9011_v49 = vld [vmem:[%s12062_s4 + $0x34c] ss:$16 sps:$4 sm:$0xff]  }
 0x415   :  { %9241 = vrcp.f32 %v4849_v59  ;;  %v9009_v59 = vld [vmem:[%s12062_s4 + $0x348] ss:$16 sps:$4 sm:$0xff]  }
 0x41e   :  { %v7849_v53 = vpop.f32.mrf.mxu0 }
 0x420   :  { %v9240_v0 = vpop.eup %9239  ;;  %v7850_v19 = vpop.f32.mrf.mxu0 }
 0x421   :  { %v4817_v22 = vpop.f32.mrf.mxu1  ;;  %v4869_v23 = vmul.f32 %v9240_v0, %v4657_v37  ;;  %v7851_v21 = vadd.f32 %v7850_v19, %v7849_v53  ;;  %v9017_v53 = vld [vmem:[%s12062_s4 + $0x32c] ss:$16 sps:$4 sm:$0xff]   ;;  %v9015_v0 = vld [vmem:[%s12062_s4 + $0x328] ss:$16 sps:$4 sm:$0xff]  }
 0x422   :  { %v9242_v25 = vpop.eup %9241  ;;  %v7852_v58 = vpop.f32.mrf.mxu0  ;;  %v9023_v19 = vld [vmem:[%s12062_s4 + $0x30c] ss:$16 sps:$4 sm:$0xff]  }
 0x423   :  { %v4870_v57 = vmul.f32 %v9242_v25, %v4659_v44  ;;  %v7998_v60 = vpop.f32.mrf.mxu1  ;;  %v11585_v7 = vpack.c.bf16 %v4869_v23, %v4869_v23  ;;  %v4698_v39 = vadd.f32 %v7851_v21, %v2147_v40  ;;  %v9029_v25 = vld [vmem:[%s12062_s4 + $0x6ec] ss:$16 sps:$4 sm:$0xff]   ;;  %v9027_v23 = vld [vmem:[%s12062_s4 + $0x6e8] ss:$16 sps:$4 sm:$0xff]  }
 0x424   :  { %v7853_v52 = vpop.f32.mrf.mxu0  ;;  %v9059_v40 = vld [vmem:[%s12062_s4 + $0x64c] ss:$16 sps:$4 sm:$0xff]   ;;  %v9054_v21 = vld [vmem:[%s12062_s4 + $0x68] ss:$16 sps:$4 sm:$0xff]  }
 0x425   :  { %v11580_v63 = vpack.c.bf16 %v4870_v57, %v4870_v57  ;;  %v4820_v4 = vpop.f32.mrf.mxu1  ;;  %v4738_v31 = vadd.f32 %v7873_v12, %v4698_v39  ;;  %v9035_v57 = vld [vmem:[%s12062_s4 + $0x6cc] ss:$16 sps:$4 sm:$0xff]   ;;  %v9030_v52 = vld [vmem:[%s12062_s4 + $0xe8] ss:$16 sps:$4 sm:$0xff]  }
 0x426   :  { %v9065_v39 = vld [vmem:[%s12062_s4 + $0x62c] ss:$16 sps:$4 sm:$0xff]  }
 0x427   :  { %v7999_v10 = vpop.f32.mrf.mxu1  ;;  %6359 = vmatprep.mubr.bf16.mxu0 %v11580_v63 }
 0x428   :  { %6360 = vmatmul.mubr.bf16.vlgmr.msra.gmra.mxu0 %v11585_v7  ;;  %v9036_v10 = vld [vmem:[%s12062_s4 + $0xc8] ss:$16 sps:$4 sm:$0xff]  }
 0x429   :  { %6451 = vmatpush1.bf16.msra.mxu0 %v8955_v5  ;;  %6482 = vmatprep.mubr.bf16.mxu0 %v11436_v24  ;;  %v8964_v24 = vld [vmem:[%s12062_s4 + $0x288] ss:$16 sps:$4 sm:$0xff]  }
 0x42a   :  { %6452 = vmatprep.subr.bf16.mxu0 %v8960_v8  ;;  %v9033_v5 = vld [vmem:[%s12062_s4 + $0x6c8] ss:$16 sps:$4 sm:$0xff]   ;;  %v9038_v8 = vld [vmem:[%s12062_s4 + $0xcc] ss:$16 sps:$4 sm:$0xff]  }
 0x42d   :  { %6453 = vmatpush1.bf16.msra.mxu0 %v8958_v50  ;;  %v9044_v50 = vld [vmem:[%s12062_s4 + $0xac] ss:$16 sps:$4 sm:$0xff]  }
 0x42e   :  { %6454 = vmatprep.subr.bf16.mxu0 %v8963_v35  ;;  %v9047_v35 = vld [vmem:[%s12062_s4 + $0x68c] ss:$16 sps:$4 sm:$0xff]  }
 0x431   :  { %6455 = vmatpush1.bf16.msra.mxu0 %v8961_v13  ;;  %v9045_v13 = vld [vmem:[%s12062_s4 + $0x688] ss:$16 sps:$4 sm:$0xff]  }
 0x432   :  { %6456 = vmatprep.subr.bf16.mxu0 %v8966_v14  ;;  %v9050_v14 = vld [vmem:[%s12062_s4 + $0x8c] ss:$16 sps:$4 sm:$0xff]  }
 0x435   :  { %6457 = vmatpush1.bf16.msra.mxu0 %v8964_v24  ;;  %v9053_v24 = vld [vmem:[%s12062_s4 + $0x66c] ss:$16 sps:$4 sm:$0xff]  }
 0x436   :  { %6458 = vmatprep.subr.bf16.mxu0 %v8969_v15  ;;  %v9048_v15 = vld [vmem:[%s12062_s4 + $0x88] ss:$16 sps:$4 sm:$0xff]  }
 0x439   :  { %6459 = vmatpush1.bf16.msra.mxu0 %v8967_v17  ;;  %v9051_v17 = vld [vmem:[%s12062_s4 + $0x668] ss:$16 sps:$4 sm:$0xff]  }
 0x43a   :  { %6460 = vmatprep.subr.bf16.mxu0 %v8972_v20  ;;  %v9056_v20 = vld [vmem:[%s12062_s4 + $0x6c] ss:$16 sps:$4 sm:$0xff]  }
 0x43d   :  { %6461 = vmatpush1.bf16.msra.mxu0 %v8970_v36  ;;  %v9057_v36 = vld [vmem:[%s12062_s4 + $0x648] ss:$16 sps:$4 sm:$0xff]  }
 0x43e   :  { %v7893_v61 = vpop.f32.mrf.mxu0  ;;  %6462 = vmatprep.subr.bf16.mxu0 %v8975_v28  ;;  %v9062_v28 = vld [vmem:[%s12062_s4 + $0x4c] ss:$16 sps:$4 sm:$0xff]  }
 0x440   :  { %v7894_v6 = vpop.f32.mrf.mxu0 }
 0x441   :  { %v7895_v34 = vadd.f32 %v7894_v6, %v7893_v61  ;;  %6463 = vmatpush1.bf16.msra.mxu0 %v8973_v30  ;;  %v9060_v30 = vld [vmem:[%s12062_s4 + $0x48] ss:$16 sps:$4 sm:$0xff]   ;;  %v9071_v6 = vld [vmem:[%s12062_s4 + $0x60c] ss:$16 sps:$4 sm:$0xff]  }
 0x442   :  { %v7896_v41 = vpop.f32.mrf.mxu0  ;;  %6464 = vmatprep.subr.bf16.mxu0 %v8978_v56  ;;  %v9063_v61 = vld [vmem:[%s12062_s4 + $0x628] ss:$16 sps:$4 sm:$0xff]   ;;  %v9068_v56 = vld [vmem:[%s12062_s4 + $0x2c] ss:$16 sps:$4 sm:$0xff]  }
 0x443   :  { %v4778_v9 = vadd.f32 %v7895_v34, %v4738_v31  ;;  %v9066_v34 = vld [vmem:[%s12062_s4 + $0x28] ss:$16 sps:$4 sm:$0xff]   ;;  %v9074_v41 = vld [vmem:[%s12062_s4 + $0xc] ss:$16 sps:$4 sm:$0xff]  }
 0x444   :  { %v7897_v43 = vpop.f32.mrf.mxu0 }
 0x445   :  { %v4818_v37 = vadd.f32 %v4817_v22, %v4778_v9  ;;  %6465 = vmatpush1.bf16.msra.mxu0 %v8976_v54  ;;  %v9021_v22 = vld [vmem:[%s12062_s4 + $0x308] ss:$16 sps:$4 sm:$0xff]  }
 0x446   :  { %6466 = vmatprep.subr.bf16.mxu0 %v8981_v42  ;;  %v9069_v54 = vld [vmem:[%s12062_s4 + $0x608] ss:$16 sps:$4 sm:$0xff]   ;;  %v11782_v42 = vld [vmem:[%s12060_s6 + $0x11] sm:$0xf] }
 0x447   :  { %v7537_v44 = vmul.f32 -1.442695, %v4818_v37 }
 0x449   :  { %9243 = vpow2.f32 %v7537_v44  ;;  %6467 = vmatpush2.bf16.msra.mxu0 %v8979_v32  ;;  %v5108_v32 = vrot.slane %v11782_v42, %v9493_v1  ;;  %v5112_v44 = vrot.slane %v11782_v42, %v9496_v2  ;;  %v9080_v1 = vld [vmem:[%s12062_s4 + $0x1cc] ss:$16 sps:$4 sm:$0xff]   ;;  %v9078_v2 = vld [vmem:[%s12062_s4 + $0x1c8] ss:$16 sps:$4 sm:$0xff]  }
 0x44a   :  { %6468 = vmatprep.subr.bf16.mxu0 %v8987_v16  ;;  %v9077_v16 = vld [vmem:[%s12062_s4 + $0x1ec] ss:$16 sps:$4 sm:$0xff]  }
 0x44d   :  { %6469 = vmatpush2.bf16.msra.mxu0 %v8985_v38  ;;  %v9075_v38 = vld [vmem:[%s12062_s4 + $0x1e8] ss:$16 sps:$4 sm:$0xff]  }
 0x44e   :  { %6470 = vmatprep.subr.bf16.mxu0 %v8993_v18 }
 0x451   :  { %6471 = vmatpush2.bf16.msra.mxu0 %v8991_v47 }
 0x452   :  { %6472 = vmatprep.subr.bf16.mxu0 %v8999_v48 }
 0x455   :  { %6473 = vmatpush2.bf16.msra.mxu0 %v8997_v26 }
 0x456   :  { %v9244_v33 = vpop.eup %9243  ;;  %6474 = vmatprep.subr.bf16.mxu0 %v9005_v55 }
 0x457   :  { %v4850_v51 = vadd.f32 1.0, %v9244_v33  ;;  %v9083_v33 = vld [vmem:[%s12062_s4 + $0x1ac] ss:$16 sps:$4 sm:$0xff]  }
 0x459   :  { %9245 = vrcp.f32 %v4850_v51  ;;  %6475 = vmatpush2.bf16.msra.mxu0 %v9003_v46 }
 0x45a   :  { %6476 = vmatprep.subr.bf16.mxu0 %v9011_v49 }
 0x45d   :  { %6477 = vmatpush2.bf16.msra.mxu0 %v9009_v59  ;;  %v9081_v59 = vld [vmem:[%s12062_s4 + $0x1a8] ss:$16 sps:$4 sm:$0xff]  }
 0x45e   :  { %6478 = vmatprep.subr.bf16.mxu0 %v9017_v53  ;;  %v9086_v53 = vld [vmem:[%s12062_s4 + $0x18c] ss:$16 sps:$4 sm:$0xff]  }
 0x461   :  { %6479 = vmatpush2.bf16.msra.mxu0 %v9015_v0  ;;  %v9084_v0 = vld [vmem:[%s12062_s4 + $0x188] ss:$16 sps:$4 sm:$0xff]  }
 0x462   :  { %6480 = vmatprep.subr.bf16.mxu0 %v9023_v19  ;;  %v9089_v19 = vld [vmem:[%s12062_s4 + $0x16c] ss:$16 sps:$4 sm:$0xff]  }
 0x465   :  { %6481 = vmatpush2.bf16.msra.mxu0 %v9021_v22  ;;  %v9087_v22 = vld [vmem:[%s12062_s4 + $0x168] ss:$16 sps:$4 sm:$0xff]  }
 0x466   :  { %v9246_v58 = vpop.eup %9245  ;;  %6532 = vmatprep.subr.bf16.mxu0 %v9029_v25  ;;  %v9092_v25 = vld [vmem:[%s12062_s4 + $0x14c] ss:$16 sps:$4 sm:$0xff]  }
 0x467   :  { %v4871_v60 = vmul.f32 %v9246_v58, %v4818_v37  ;;  %v9072_v37 = vld [vmem:[%s12062_s4 + $0x8] ss:$16 sps:$4 sm:$0xff]   ;;  %v9095_v58 = vld [vmem:[%s12062_s4 + $0x12c] ss:$16 sps:$4 sm:$0xff]  }
 0x468   :  { %6483 = vmatmul.mubr.bf16.vlgmr.msra.gmra.mxu0 %v11441_v27  ;;  %v9041_v27 = vld [vmem:[%s12062_s4 + $0x6ac] ss:$16 sps:$4 sm:$0xff]  }
 0x469   :  { %v11696_v4 = vpack.c.bf16 %v4871_v60, %v4871_v60  ;;  %6533 = vmatpush1.bf16.msra.mxu0 %v9027_v23  ;;  %6564 = vmatprep.mubr.bf16.mxu0 %v9266_v3  ;;  %v9039_v3 = vld [vmem:[%s12062_s4 + $0x6a8] ss:$16 sps:$4 sm:$0xff]   ;;  %v9098_v60 = vld [vmem:[%s12062_s4 + $0x10c] ss:$16 sps:$4 sm:$0xff]  }
 0x46a   :  { %6534 = vmatprep.subr.bf16.mxu0 %v9035_v57  ;;  %v9090_v23 = vld [vmem:[%s12062_s4 + $0x148] ss:$16 sps:$4 sm:$0xff]  }
 0x46b   :  { %6401 = vmatmul.mubr.bf16.vlgmr.msra.gmra.mxu1 %v11696_v4  ;;  %v9093_v57 = vld [vmem:[%s12062_s4 + $0x128] ss:$16 sps:$4 sm:$0xff]  }
 0x46c   :  { %6410 = vmatpush1.bf16.msra.mxu1 %v9030_v52  ;;  %6441 = vmatprep.mubr.bf16.mxu1 %v11255_v45  ;;  %v9042_v45 = vld [vmem:[%s12062_s4 + $0xa8] ss:$16 sps:$4 sm:$0xff]  }
 0x46d   :  { %6535 = vmatpush1.bf16.msra.mxu0 %v9033_v5  ;;  %6411 = vmatprep.subr.bf16.mxu1 %v9038_v8  ;;  %v9096_v52 = vld [vmem:[%s12062_s4 + $0x108] ss:$16 sps:$4 sm:$0xff]   ;;  %v9104_v8 = vld [vmem:[%s12062_s4 + $0x4cc] ss:$16 sps:$4 sm:$0xff]  }
 0x46e   :  { %6536 = vmatprep.subr.bf16.mxu0 %v9041_v27  ;;  %v9099_v5 = vld [vmem:[%s12062_s4 + $0x4e8] ss:$16 sps:$4 sm:$0xff]  }
 0x46f   :  { %v9102_v27 = vld [vmem:[%s12062_s4 + $0x4c8] ss:$16 sps:$4 sm:$0xff]  }
 0x470   :  { %6412 = vmatpush1.bf16.msra.mxu1 %v9036_v10  ;;  %v9107_v10 = vld [vmem:[%s12062_s4 + $0x4ac] ss:$16 sps:$4 sm:$0xff]  }
 0x471   :  { %6537 = vmatpush1.bf16.msra.mxu0 %v9039_v3  ;;  %6413 = vmatprep.subr.bf16.mxu1 %v9044_v50  ;;  %v9105_v3 = vld [vmem:[%s12062_s4 + $0x4a8] ss:$16 sps:$4 sm:$0xff]   ;;  %v9113_v50 = vld [vmem:[%s12062_s4 + $0x46c] ss:$16 sps:$4 sm:$0xff]  }
 0x472   :  { %6538 = vmatprep.subr.bf16.mxu0 %v9047_v35  ;;  %v9147_v35 = vld [vmem:[%s12063_s5 + $0x78] sm:$0xff]  }
 0x474   :  { %6414 = vmatpush1.bf16.msra.mxu1 %v9042_v45  ;;  %v9148_v45 = vld [vmem:[%s12063_s5 + $0x38] sm:$0xff]  }
 0x475   :  { %6539 = vmatpush1.bf16.msra.mxu0 %v9045_v13  ;;  %6415 = vmatprep.subr.bf16.mxu1 %v9050_v14  ;;  %v9111_v13 = vld [vmem:[%s12062_s4 + $0x468] ss:$16 sps:$4 sm:$0xff]   ;;  %v9116_v14 = vld [vmem:[%s12062_s4 + $0x44c] ss:$16 sps:$4 sm:$0xff]  }
 0x476   :  { %6540 = vmatprep.subr.bf16.mxu0 %v9053_v24  ;;  %v9149_v24 = vld [vmem:[%s12063_s5 + $0x70] sm:$0xff]  }
 0x478   :  { %6416 = vmatpush1.bf16.msra.mxu1 %v9048_v15  ;;  %v9150_v15 = vld [vmem:[%s12063_s5 + $0x30] sm:$0xff]  }
 0x479   :  { %6541 = vmatpush1.bf16.msra.mxu0 %v9051_v17  ;;  %6417 = vmatprep.subr.bf16.mxu1 %v9056_v20  ;;  %v9114_v17 = vld [vmem:[%s12062_s4 + $0x448] ss:$16 sps:$4 sm:$0xff]   ;;  %v9119_v20 = vld [vmem:[%s12062_s4 + $0x42c] ss:$16 sps:$4 sm:$0xff]  }
 0x47a   :  { %6542 = vmatprep.subr.bf16.mxu0 %v9059_v40  ;;  %v9151_v40 = vld [vmem:[%s12063_s5 + $0x68] sm:$0xff]  }
 0x47c   :  { %6418 = vmatpush1.bf16.msra.mxu1 %v9054_v21  ;;  %v9152_v21 = vld [vmem:[%s12063_s5 + $0x28] sm:$0xff]  }
 0x47d   :  { %6543 = vmatpush1.bf16.msra.mxu0 %v9057_v36  ;;  %6419 = vmatprep.subr.bf16.mxu1 %v9062_v28  ;;  %v9117_v36 = vld [vmem:[%s12062_s4 + $0x428] ss:$16 sps:$4 sm:$0xff]   ;;  %v9122_v28 = vld [vmem:[%s12062_s4 + $0x40c] ss:$16 sps:$4 sm:$0xff]  }
 0x47e   :  { %v6279_v12 = vpop.f32.mrf.mxu0  ;;  %6544 = vmatprep.subr.bf16.mxu0 %v9065_v39  ;;  %v9153_v39 = vld [vmem:[%s12063_s5 + $0x60] sm:$0xff]  }
 0x47f   :  { %v6280_v18 = vadd.f32 %v6279_v12, %v5108_v32  ;;  %v9155_v12 = vld [vmem:[%s12063_s5 + $0x58] sm:$0xff]   ;;  %v9160_v32 = vld [vmem:[%s12063_s5 + $0x8] sm:$0xff]  }
 0x480   :  { %6420 = vmatpush1.bf16.msra.mxu1 %v9060_v30  ;;  %v6281_v31 = vpop.f32.mrf.mxu0  ;;  %v9154_v30 = vld [vmem:[%s12063_s5 + $0x20] sm:$0xff]  }
 0x481   :  { %6545 = vmatpush1.bf16.msra.mxu0 %v9063_v61  ;;  %6421 = vmatprep.subr.bf16.mxu1 %v9068_v56  ;;  %v6282_v48 = vadd.f32 %v6281_v31, %v5112_v44  ;;  %v9120_v61 = vld [vmem:[%s12062_s4 + $0x408] ss:$16 sps:$4 sm:$0xff]   ;;  %v9125_v56 = vld [vmem:[%s12062_s4 + $0x5ec] ss:$16 sps:$4 sm:$0xff]   ;;  %v9161_v44 = vld [vmem:[%s12063_s5 + $0x40] sm:$0xff]  }
 0x482   :  { %v6283_v9 = vpop.f32.mrf.mxu0  ;;  %6546 = vmatprep.subr.bf16.mxu0 %v9071_v6  ;;  %v9156_v6 = vld [vmem:[%s12063_s5 + $0x18] sm:$0xff]  }
 0x483   :  { %v9123_v31 = vld [vmem:[%s12062_s4 + $0x5e8] ss:$16 sps:$4 sm:$0xff]  }
 0x484   :  { %6422 = vmatpush1.bf16.msra.mxu1 %v9066_v34  ;;  %v6284_v43 = vpop.f32.mrf.mxu0  ;;  %v9128_v34 = vld [vmem:[%s12062_s4 + $0x5cc] ss:$16 sps:$4 sm:$0xff]   ;;  %v9126_v9 = vld [vmem:[%s12062_s4 + $0x5c8] ss:$16 sps:$4 sm:$0xff]  }
 0x485   :  { %6547 = vmatpush1.bf16.msra.mxu0 %v9069_v54  ;;  %6423 = vmatprep.subr.bf16.mxu1 %v9074_v41  ;;  %v9157_v54 = vld [vmem:[%s12063_s5 + $0x50] sm:$0xff]   ;;  %v9131_v43 = vld [vmem:[%s12062_s4 + $0x5ac] ss:$16 sps:$4 sm:$0xff]  }
 0x486   :  { %7908 = vmatprep.subr.bf16.mxu0 %v9147_v35  ;;  %v9158_v41 = vld [vmem:[%s12063_s5 + $0x10] sm:$0xff]  }
 0x488   :  { %6424 = vmatpush1.bf16.msra.mxu1 %v9072_v37  ;;  %6565 = vmatmul.mubr.bf16.vlgmr.msra.gmra.mxu0 %v11696_v4  ;;  %v9101_v4 = vld [vmem:[%s12062_s4 + $0x4ec] ss:$16 sps:$4 sm:$0xff]  }
 0x489   :  { %6425 = vmatprep.subr.bf16.mxu1 %v9077_v16  ;;  %7909 = vmatpush3.bf16.msra.mxu0 %v9148_v45  ;;  %v9159_v37 = vld [vmem:[%s12063_s5 + $0x48] sm:$0xff]  }
 0x48a   :  { %v6320_v47 = vpop.f32.mrf.mxu1  ;;  %7910 = vmatprep.subr.bf16.mxu0 %v9149_v24  ;;  %v9129_v16 = vld [vmem:[%s12062_s4 + $0x5a8] ss:$16 sps:$4 sm:$0xff]  }
 0x48b   :  { %v11801_v26 = vadd.f32 %v6320_v47, %v6280_v18  ;;  %v9162_v18 = vld [vmem:[%s12063_s5] sm:$0xff]   ;;  %v9137_v47 = vld [vmem:[%s12062_s4 + $0x56c] ss:$16 sps:$4 sm:$0xff]  }
 0x48c   :  { %6426 = vmatpush2.bf16.msra.mxu1 %v9075_v38  ;;  %v6322_v55 = vpop.f32.mrf.mxu1  ;;  %v9134_v38 = vld [vmem:[%s12062_s4 + $0x58c] ss:$16 sps:$4 sm:$0xff]  }
 0x48d   :  { %v11806_v46 = vadd.f32 %v6322_v55, %v6282_v48  ;;  %6427 = vmatprep.subr.bf16.mxu1 %v9080_v1  ;;  %7911 = vmatpush3.bf16.msra.mxu0 %v9150_v15  ;;  %v9132_v1 = vld [vmem:[%s12062_s4 + $0x588] ss:$16 sps:$4 sm:$0xff]   ;;  %v9140_v55 = vld [vmem:[%s12062_s4 + $0x54c] ss:$16 sps:$4 sm:$0xff]  }
 0x48e   :  { %v6324_v49 = vpop.f32.mrf.mxu1  ;;  %7912 = vmatprep.subr.bf16.mxu0 %v9151_v40  ;;  %v9135_v48 = vld [vmem:[%s12062_s4 + $0x568] ss:$16 sps:$4 sm:$0xff]  }
 0x48f   :  { %v9141_v49 = vld [vmem:[%s12062_s4 + $0x528] ss:$16 sps:$4 sm:$0xff]  }
 0x490   :  { %6428 = vmatpush2.bf16.msra.mxu1 %v9078_v2  ;;  %v6325_v51 = vpop.f32.mrf.mxu1  ;;  %v9138_v2 = vld [vmem:[%s12062_s4 + $0x548] ss:$16 sps:$4 sm:$0xff]  }
 0x491   :  { %6429 = vmatprep.subr.bf16.mxu1 %v9083_v33  ;;  %7913 = vmatpush3.bf16.msra.mxu0 %v9152_v21  ;;  %v9143_v33 = vld [vmem:[%s12062_s4 + $0x52c] ss:$16 sps:$4 sm:$0xff]  }
 0x492   :  { %7914 = vmatprep.subr.bf16.mxu0 %v9153_v39  ;;  %v9146_v51 = vld [vmem:[%s12062_s4 + $0x50c] ss:$16 sps:$4 sm:$0xff]  }
 0x493   :  { %v9167_v45 = vld [vmem:[%s12063_s5 + $0xe8] sm:$0xff]   ;;  %v9171_v40 = vld [vmem:[%s12063_s5 + $0xd8] sm:$0xff]  }
 0x494   :  { %6430 = vmatpush2.bf16.msra.mxu1 %v9081_v59  ;;  %v9144_v59 = vld [vmem:[%s12062_s4 + $0x508] ss:$16 sps:$4 sm:$0xff]  }
 0x495   :  { %6431 = vmatprep.subr.bf16.mxu1 %v9086_v53  ;;  %7915 = vmatpush3.bf16.msra.mxu0 %v9154_v30  ;;  %v9172_v21 = vld [vmem:[%s12063_s5 + $0x98] sm:$0xff]   ;;  %v9174_v30 = vld [vmem:[%s12063_s5 + $0x90] sm:$0xff]  }
 0x496   :  { %7916 = vmatprep.subr.bf16.mxu0 %v9155_v12  ;;  %v9175_v12 = vld [vmem:[%s12063_s5 + $0xc8] sm:$0xff]  }
 0x498   :  { %6432 = vmatpush2.bf16.msra.mxu1 %v9084_v0 }
 0x499   :  { %6433 = vmatprep.subr.bf16.mxu1 %v9089_v19  ;;  %7917 = vmatpush3.bf16.msra.mxu0 %v9156_v6 }
 0x49a   :  { %7918 = vmatprep.subr.bf16.mxu0 %v9157_v54 }
 0x49c   :  { %6434 = vmatpush2.bf16.msra.mxu1 %v9087_v22 }
 0x49d   :  { %6435 = vmatprep.subr.bf16.mxu1 %v9092_v25  ;;  %7919 = vmatpush3.bf16.msra.mxu0 %v9158_v41 }
 0x49e   :  { %7920 = vmatprep.subr.bf16.mxu0 %v9159_v37  ;;  %v9178_v37 = vld [vmem:[%s12063_s5 + $0x80] sm:$0xff]  }
 0x4a0   :  { %6436 = vmatpush2.bf16.msra.mxu1 %v9090_v23 }
 0x4a1   :  { %6437 = vmatprep.subr.bf16.mxu1 %v9095_v58  ;;  %7921 = vmatpush3.bf16.msra.mxu0 %v9160_v32 }
 0x4a2   :  { %7922 = vmatprep.subr.bf16.mxu0 %v9161_v44 }
 0x4a4   :  { %6438 = vmatpush2.bf16.msra.mxu1 %v9093_v57 }
 0x4a5   :  { %6439 = vmatprep.subr.bf16.mxu1 %v9098_v60  ;;  %7923 = vmatpush3.bf16.msra.mxu0 %v9162_v18 }
 0x4a8   :  { %6440 = vmatpush2.bf16.msra.mxu1 %v9096_v52 }
 0x4a9   :  { %6491 = vmatprep.subr.bf16.mxu1 %v9101_v4 }
 0x4ab   :  { %6442 = vmatmul.mubr.bf16.vlgmr.msra.gmra.mxu1 %v11418_v11  ;;  %v9110_v11 = vld [vmem:[%s12062_s4 + $0x48c] ss:$16 sps:$4 sm:$0xff]  }
 0x4ac   :  { %6492 = vmatpush1.bf16.msra.mxu1 %v9099_v5  ;;  %6523 = vmatprep.mubr.bf16.mxu1 %v11580_v63  ;;  %v9108_v63 = vld [vmem:[%s12062_s4 + $0x488] ss:$16 sps:$4 sm:$0xff]  }
 0x4ad   :  { %6493 = vmatprep.subr.bf16.mxu1 %v9104_v8 }
 0x4b0   :  { %6494 = vmatpush1.bf16.msra.mxu1 %v9102_v27 }
 0x4b1   :  { %6495 = vmatprep.subr.bf16.mxu1 %v9107_v10 }
 0x4b4   :  { %6496 = vmatpush1.bf16.msra.mxu1 %v9105_v3 }
 0x4b5   :  { %6497 = vmatprep.subr.bf16.mxu1 %v9110_v11 }
 0x4b8   :  { %6498 = vmatpush1.bf16.msra.mxu1 %v9108_v63  ;;  %v9165_v63 = vld [vmem:[%s12063_s5 + $0xf0] sm:$0xff]  }
 0x4b9   :  { %6499 = vmatprep.subr.bf16.mxu1 %v9113_v50  ;;  %v9166_v50 = vld [vmem:[%s12063_s5 + $0xb0] sm:$0xff]  }
 0x4bc   :  { %6500 = vmatpush1.bf16.msra.mxu1 %v9111_v13 }
 0x4bd   :  { %6501 = vmatprep.subr.bf16.mxu1 %v9116_v14  ;;  %v9168_v14 = vld [vmem:[%s12063_s5 + $0xa8] sm:$0xff]  }
 0x4c0   :  { %6502 = vmatpush1.bf16.msra.mxu1 %v9114_v17  ;;  %v9169_v17 = vld [vmem:[%s12063_s5 + $0xe0] sm:$0xff]  }
 0x4c1   :  { %6503 = vmatprep.subr.bf16.mxu1 %v9119_v20  ;;  %v9170_v20 = vld [vmem:[%s12063_s5 + $0xa0] sm:$0xff]  }
 0x4c4   :  { %6504 = vmatpush1.bf16.msra.mxu1 %v9117_v36 }
 0x4c5   :  { %6505 = vmatprep.subr.bf16.mxu1 %v9122_v28  ;;  %v9173_v28 = vld [vmem:[%s12063_s5 + $0xd0] sm:$0xff]  }
 0x4c8   :  { %6506 = vmatpush1.bf16.msra.mxu1 %v9120_v61 }
 0x4c9   :  { %6507 = vmatprep.subr.bf16.mxu1 %v9125_v56 }
 0x4cc   :  { %6508 = vmatpush2.bf16.msra.mxu1 %v9123_v31  ;;  %v9176_v31 = vld [vmem:[%s12063_s5 + $0x88] sm:$0xff]  }
 0x4cd   :  { %6509 = vmatprep.subr.bf16.mxu1 %v9128_v34 }
 0x4d0   :  { %6510 = vmatpush2.bf16.msra.mxu1 %v9126_v9  ;;  %v9177_v9 = vld [vmem:[%s12063_s5 + $0xc0] sm:$0xff]  }
 0x4d1   :  { %6511 = vmatprep.subr.bf16.mxu1 %v9131_v43 }
 0x4d4   :  { %6512 = vmatpush2.bf16.msra.mxu1 %v9129_v16 }
 0x4d5   :  { %6513 = vmatprep.subr.bf16.mxu1 %v9134_v38 }
 0x4d8   :  { %6514 = vmatpush2.bf16.msra.mxu1 %v9132_v1  ;;  %v5116_v1 = vrot.slane %v11782_v42, %v9487_v62 }
 0x4d9   :  { %6515 = vmatprep.subr.bf16.mxu1 %v9137_v47  ;;  %v5120_v47 = vrot.slane %v11782_v42, %v10123_v29 }
 0x4dc   :  { %6516 = vmatpush2.bf16.msra.mxu1 %v9135_v48 }
 0x4dd   :  { %6517 = vmatprep.subr.bf16.mxu1 %v9140_v55 }
 0x4e0   :  { %6518 = vmatpush2.bf16.msra.mxu1 %v9138_v2 }
 0x4e1   :  { %6519 = vmatprep.subr.bf16.mxu1 %v9143_v33 }
 0x4e4   :  { %6520 = vmatpush2.bf16.msra.mxu1 %v9141_v49 }
 0x4e5   :  { %6521 = vmatprep.subr.bf16.mxu1 %v9146_v51 }
 0x4e8   :  { %6522 = vmatpush2.bf16.msra.mxu1 %v9144_v59  ;;  %v6361_v53 = vpop.f32.mrf.mxu0 }
 0x4e9   :  { %v6362_v0 = vadd.f32 %v6361_v53, %v11801_v26 }
 0x4ea   :  { %v6363_v19 = vpop.f32.mrf.mxu0 }
 0x4eb   :  { %v6364_v22 = vadd.f32 %v6363_v19, %v11806_v46  ;;  %6524 = vmatmul.mubr.bf16.vlgmr.msra.gmra.mxu1 %v11585_v7  ;;  %v9163_v7 = vld [vmem:[%s12063_s5 + $0xf8] sm:$0xff]  }
 0x4ec   :  { %v6365_v25 = vpop.f32.mrf.mxu0  ;;  %v9164_v46 = vld [vmem:[%s12063_s5 + $0xb8] sm:$0xff]   ;;  %7930 = vmatprep.subr.bf16.mxu1 %v9163_v7 }
 0x4ed   :  { %7931 = vmatpush3.bf16.msra.mxu1 %v9164_v46  ;;  %v7766_v46 = vld [vmem:[%s12060_s6 + $0x15] ss:$0 sm:$0xff] }
 0x4ee   :  { %v6366_v23 = vpop.f32.mrf.mxu0  ;;  %7932 = vmatprep.subr.bf16.mxu1 %v9165_v63 }
 0x4f1   :  { %7933 = vmatpush3.bf16.msra.mxu1 %v9166_v50 }
 0x4f2   :  { %7934 = vmatprep.subr.bf16.mxu1 %v9167_v45 }
 0x4f5   :  { %7935 = vmatpush3.bf16.msra.mxu1 %v9168_v14 }
 0x4f6   :  { %7936 = vmatprep.subr.bf16.mxu1 %v9169_v17 }
 0x4f9   :  { %7937 = vmatpush3.bf16.msra.mxu1 %v9170_v20 }
 0x4fa   :  { %7938 = vmatprep.subr.bf16.mxu1 %v9171_v40 }
 0x4fd   :  { %7939 = vmatpush3.bf16.msra.mxu1 %v9172_v21 }
 0x4fe   :  { %7940 = vmatprep.subr.bf16.mxu1 %v9173_v28 }
 0x501   :  { %7941 = vmatpush3.bf16.msra.mxu1 %v9174_v30 }
 0x502   :  { %7942 = vmatprep.subr.bf16.mxu1 %v9175_v12 }
 0x505   :  { %7943 = vmatpush3.bf16.msra.mxu1 %v9176_v31 }
 0x506   :  { %7944 = vmatprep.subr.bf16.mxu1 %v9177_v9 }
 0x509   :  { %7945 = vmatpush3.bf16.msra.mxu1 %v9178_v37 }
 0x528   :  { %v11993_v58 = vpop.f32.mrf.mxu0 }
 0x52a   :  { %v11995_v57 = vpop.f32.mrf.mxu0 }
 0x52b   :  { %v6402_v60 = vpop.f32.mrf.mxu1 }
 0x52c   :  { %v6403_v52 = vadd.f32 %v6402_v60, %v6362_v0  ;;  %v6488_v4 = vpop.f32.mrf.mxu0 }
 0x52d   :  { %v6404_v5 = vpop.f32.mrf.mxu1 }
 0x52e   :  { %v7762_v8 = vmul.f32 -1.442695, %v6403_v52  ;;  %v6405_v27 = vadd.f32 %v6404_v5, %v6364_v22  ;;  %v6489_v10 = vpop.f32.mrf.mxu0 }
 0x52f   :  { %v6406_v3 = vpop.f32.mrf.mxu1 }
 0x530   :  { %9247 = vpow2.f32 %v7762_v8  ;;  %v7763_v26 = vmul.f32 -1.442695, %v6405_v27 }
 0x531   :  { %v6407_v11 = vpop.f32.mrf.mxu1 }
 0x532   :  { %9249 = vpow2.f32 %v7763_v26 }
 0x53d   :  { %v9248_v35 = vpop.eup %9247 }
 0x53e   :  { %v6585_v13 = vadd.f32 1.0, %v9248_v35 }
 0x53f   :  { %v9250_v24 = vpop.eup %9249 }
 0x540   :  { %9251 = vrcp.f32 %v6585_v13  ;;  %v6586_v15 = vadd.f32 1.0, %v9250_v24 }
 0x542   :  { %9253 = vrcp.f32 %v6586_v15 }
 0x548   :  { %v6566_v36 = vpop.f32.mrf.mxu0 }
 0x54a   :  { %v6568_v39 = vpop.f32.mrf.mxu0 }
 0x54c   :  { %v6570_v61 = vpop.f32.mrf.mxu0 }
 0x54d   :  { %v9252_v56 = vpop.eup %9251 }
 0x54e   :  { %v6571_v6 = vpop.f32.mrf.mxu0  ;;  %v6597_v54 = vmul.f32 %v9252_v56, %v6403_v52 }
 0x54f   :  { %v9254_v34 = vpop.eup %9253 }
 0x550   :  { %v6598_v41 = vmul.f32 %v9254_v34, %v6405_v27  ;;  %v6602_v32 = vpack.c.bf16 %v6597_v54, %v6597_v54 }
 0x552   :  { %v6603_v43 = vpack.c.bf16 %v6598_v41, %v6598_v41 }
 0x554   :  { %6900 = vmatprep.mubr.bf16.mxu0 %v6603_v43 }
 0x555   :  { %6901 = vmatmul.mubr.bf16.vlgmr.msra.gmra.mxu0 %v6602_v32 }
 0x56b   :  { %v6443_v16 = vpop.f32.mrf.mxu1 }
 0x56c   :  { %v6444_v48 = vadd.f32 %v6443_v16, %v5116_v1 }
 0x56d   :  { %v6445_v44 = vpop.f32.mrf.mxu1 }
 0x56e   :  { %v6446_v55 = vadd.f32 %v6445_v44, %v5120_v47  ;;  %v6485_v2 = vadd.f32 %v11993_v58, %v6444_v48 }
 0x56f   :  { %v6447_v38 = vpop.f32.mrf.mxu1 }
 0x570   :  { %v6487_v51 = vadd.f32 %v11995_v57, %v6446_v55 }
 0x571   :  { %v6448_v18 = vpop.f32.mrf.mxu1 }
 0x5ab   :  { %v6525_v33 = vpop.f32.mrf.mxu1 }
 0x5ac   :  { %v6526_v49 = vadd.f32 %v6525_v33, %v6485_v2 }
 0x5ad   :  { %v6527_v59 = vpop.f32.mrf.mxu1 }
 0x5ae   :  { %v6567_v53 = vadd.f32 %v6566_v36, %v6526_v49  ;;  %v6528_v0 = vadd.f32 %v6527_v59, %v6487_v51 }
 0x5af   :  { %v6529_v19 = vpop.f32.mrf.mxu1 }
 0x5b0   :  { %v7764_v22 = vmul.f32 -1.442695, %v6567_v53  ;;  %v6569_v25 = vadd.f32 %v6568_v39, %v6528_v0 }
 0x5b1   :  { %v6530_v23 = vpop.f32.mrf.mxu1 }
 0x5b2   :  { %9255 = vpow2.f32 %v7764_v22  ;;  %v7765_v62 = vmul.f32 -1.442695, %v6569_v25 }
 0x5b4   :  { %9257 = vpow2.f32 %v7765_v62 }
 0x5bf   :  { %v9256_v60 = vpop.eup %9255 }
 0x5c0   :  { %v6587_v29 = vadd.f32 1.0, %v9256_v60 }
 0x5c1   :  { %v9258_v42 = vpop.eup %9257 }
 0x5c2   :  { %9259 = vrcp.f32 %v6587_v29  ;;  %v6588_v52 = vadd.f32 1.0, %v9258_v42 }
 0x5c4   :  { %9261 = vrcp.f32 %v6588_v52 }
 0x5cf   :  { %v9260_v58 = vpop.eup %9259 }
 0x5d0   :  { %v6599_v5 = vmul.f32 %v9260_v58, %v6567_v53 }
 0x5d1   :  { %v9262_v4 = vpop.eup %9261 }
 0x5d2   :  { %v6600_v57 = vmul.f32 %v9262_v4, %v6569_v25  ;;  %v6604_v27 = vpack.c.bf16 %v6599_v5, %v6599_v5 }
 0x5d4   :  { %v6605_v8 = vpack.c.bf16 %v6600_v57, %v6600_v57 }
 0x5d6   :  { %6940 = vmatprep.mubr.bf16.mxu1 %v6605_v8 }
 0x5d7   :  { %6941 = vmatmul.mubr.bf16.vlgmr.msra.gmra.mxu1 %v6604_v27 }
 0x615   :  { %v7924_v10 = vpop.f32.mrf.mxu0 }
 0x617   :  { %v7925_v3 = vpop.f32.mrf.mxu0 }
 0x618   :  { %v7926_v26 = vadd.f32 %v7925_v3, %v7924_v10 }
 0x619   :  { %v7927_v11 = vpop.f32.mrf.mxu0 }
 0x61a   :  { %v6903_v35 = vadd.f32 %v7926_v26, %v7766_v46 }
 0x61b   :  { %v7928_v7 = vpop.f32.mrf.mxu0 }
 0x697   :  { %v7946_v63 = vpop.f32.mrf.mxu1 }
 0x699   :  { %v7947_v50 = vpop.f32.mrf.mxu1 }
 0x69a   :  { %v7948_v45 = vadd.f32 %v7947_v50, %v7946_v63 }
 0x69b   :  { %v7949_v13 = vpop.f32.mrf.mxu1 }
 0x69c   :  { %v6943_v14 = vadd.f32 %v7948_v45, %v6903_v35 }
 0x69d   :  { %v7950_v24 = vpop.f32.mrf.mxu1 }
 0x69e   :  { %6948 = vst [vmem:[%s12064_s7] sm:$0xff] %v6943_v14 }

</bundles_post_ra>
